<compile_context>
chip_gen: v6e
topology: v6e:2x2x1
jax: 0.10.0
libtpu: 0.0.40
codegen_flags: <defaults>
</compile_context>

<pallas_src>
import functools

import numpy as np
import jax
import jax.numpy as jnp
from jax.experimental import pallas as pl
from jax.experimental.pallas import tpu as pltpu


# ----------------------------------------------------------------------------
# Fused Pallas kernel (whole forward pass, single grid step)
# ----------------------------------------------------------------------------

def _fused_kernel(x_ref, wstack_ref, attn_w_ref, tanh_w_ref, bias_ref,
                  o_ref, pad_ref, *, B, H, WC, lrelu_slope):
    """Entire OutModel forward; activations stay in vregs/VMEM.

    x_ref      : (B, H, W*C) input, channels zero-padded to C=8.
    wstack_ref : (10, 3*W*C, W*C) bf16 banded 3x3 conv weights
                 [hdr1, hdr2, hdr3, hdr4, rb1f, rb1s, rb2f, rb2s, rb3f, rb3s].
    attn_w_ref : (W*C, W*C) bf16 banded 1x1 attention weights.
    tanh_w_ref : (7*W*C, W*C) bf16 banded 7x7 conv weights (reflect width pad,
                 Cout padded to C).
    bias_ref   : (12, W*C) f32 lane-tiled biases (module order incl. attn, tanh).
    o_ref      : (B, H, W*C) output (lane-dense; extra channels sliced outside).
    pad_ref    : (B, H+2, W*C) f32 scratch for zero height padding.
    """
    f32, bf16 = jnp.float32, jnp.bfloat16
    R = B * H

    # Zero the padding scratch once; rows 0 and H+1 stay zero afterwards.
    pad_ref[...] = jnp.zeros(pad_ref.shape, f32)

    def conv3(act, w_idx, b_idx):
        # act: (B, H, WC) f32.  3x3 "same" conv as ONE K=3*WC matmul:
        # LHS columns are laid out [kh, w_src, cin] to match the folded band.
        pad_ref[:, 1:H + 1, :] = act
        lhs = jnp.concatenate(
            [pad_ref[:, kh:kh + H, :] for kh in range(3)],
            axis=-1).reshape(R, 3 * WC).astype(bf16)
        y = jnp.dot(lhs, wstack_ref[w_idx], preferred_element_type=f32)
        return (y + bias_ref[b_idx:b_idx + 1, :]).reshape(B, H, WC)

    def lrelu(v):
        return jnp.where(v > 0, v, lrelu_slope * v)

    def relu(v):
        return jnp.maximum(v, 0.0)

    x = x_ref[...].astype(f32)

    # headers: 3x3 "same" conv + LeakyReLU
    x0 = lrelu(conv3(x,  0, 0))
    x1 = lrelu(conv3(x0, 1, 1))
    x2 = lrelu(conv3(x1, 2, 2))
    x3 = lrelu(conv3(x2, 3, 3))

    # m_extral_attention: sigmoid(1x1 conv) multiplicative gate
    x3f = x3.reshape(R, WC)
    gate = jax.nn.sigmoid(
        jnp.dot(x3f.astype(bf16), attn_w_ref[...],
                preferred_element_type=f32) + bias_ref[4:5, :])
    m = (x3f * gate).reshape(B, H, WC)

    # residual branch: 3x3 conv + ReLU, skips added BEFORE the *_s convs
    m = relu(conv3(m,      4, 5))    # m_rb_first_f
    m = relu(conv3(m + x2, 5, 6))    # m_rb_first_s
    m = relu(conv3(m,      6, 7))    # m_rb_second_f
    m = relu(conv3(m + x1, 7, 8))    # m_rb_second_s
    m = relu(conv3(m,      8, 9))    # m_rb_third_f
    m = relu(conv3(m + x0, 9, 10))   # m_rb_third_s

    # padding_input(m_x6, k=7, 'reflect'): mirror 3 rows top/bottom per sample;
    # the width-direction reflect is already folded into the 7x7 band weights.
    top = jnp.concatenate([m[:, 3:4], m[:, 2:3], m[:, 1:2]], axis=1)
    bot = jnp.concatenate([m[:, H - 2:H - 1], m[:, H - 3:H - 2],
                           m[:, H - 4:H - 3]], axis=1)
    mp = jnp.concatenate([top, m, bot], axis=1).astype(bf16)   # (B, H+6, WC)

    # m_conv_tahn: 7x7 valid conv + tanh, ONE K=7*WC matmul
    lhs7 = jnp.concatenate(
        [mp[:, kh:kh + H, :] for kh in range(7)],
        axis=-1).reshape(R, 7 * WC)
    y = jnp.tanh(jnp.dot(lhs7, tanh_w_ref[...], preferred_element_type=f32)
                 + bias_ref[11:12, :])
    o_ref[...] = y.reshape(B, H, WC).astype(o_ref.dtype)


# ----------------------------------------------------------------------------
# Parameter preprocessing (layout plumbing, done once outside the kernel)
# ----------------------------------------------------------------------------

_CONV3_ORDER = ("header_first", "header_second", "header_third", "header_forth",
                "rb1f", "rb1s", "rb2f", "rb2s", "rb3f", "rb3s")
_BIAS_ORDER = ("header_first", "header_second", "header_third", "header_forth",
               "attn", "rb1f", "rb1s", "rb2f", "rb2s", "rb3f", "rb3s",
               "conv_tanh")


def _shift_selector(W, KW, pad, mode):
    """S[kw, ws, wo] = 1 where output column wo reads source column ws for tap kw."""
    S = np.zeros((KW, W, W), np.float32)
    for kw in range(KW):
        for wo in range(W):
            ws = wo + kw - pad
            if ws < 0:
                if mode != "reflect":
                    continue                      # zero padding: drop the term
                ws = -ws
            elif ws >= W:
                if mode != "reflect":
                    continue
                ws = 2 * W - 2 - ws
            S[kw, ws, wo] += 1.0
    return S


def _band_weights_folded(w_hwio, W, mode, cin_pad=None, cout_pad=None):
    """(KH,KW,Cin,Cout) HWIO kernel -> (KH*W*Cin_pad, W*Cout_pad) banded bf16."""
    KH, KW, Cin, Cout = w_hwio.shape
    if cin_pad is not None and cin_pad > Cin:
        w_hwio = jnp.pad(w_hwio, ((0, 0), (0, 0), (0, cin_pad - Cin), (0, 0)))
        Cin = cin_pad
    if cout_pad is not None and cout_pad > Cout:
        w_hwio = jnp.pad(w_hwio, ((0, 0), (0, 0), (0, 0), (0, cout_pad - Cout)))
        Cout = cout_pad
    pad = (KW - 1) // 2
    S = jnp.asarray(_shift_selector(W, KW, pad, mode), jnp.float32)
    M = jnp.einsum("kso,hkic->hsioc", S, w_hwio.astype(jnp.float32))
    return M.reshape(KH * W * Cin, W * Cout).astype(jnp.bfloat16)


def _tile_bias(b, W, c_pad):
    bp = jnp.pad(b, (0, c_pad - b.shape[0])) if b.shape[0] < c_pad else b
    return jnp.tile(bp, W).astype(jnp.float32)   # (W*c_pad,)


def prepare_params(params, W, c_pad=8):
    """Fold kh taps + kw taps + width padding into single banded matrices,
    pack the ten 3x3 convs into one stack and all biases into one table."""
    bands = [_band_weights_folded(params[n][0], W, "zero",
                                  cin_pad=c_pad, cout_pad=c_pad)
             for n in _CONV3_ORDER]
    conv_stack = jnp.stack(bands, axis=0)                     # (10, 3*W*c, W*c)

    wa = params["attn"][0]
    attn_w = _band_weights_folded(wa.reshape(1, 1, *wa.shape), W, "zero",
                                  cin_pad=c_pad, cout_pad=c_pad)   # (W*c, W*c)

    tanh_w = _band_weights_folded(params["conv_tanh"][0], W, "reflect",
                                  cin_pad=c_pad, cout_pad=c_pad)   # (7*W*c, W*c)

    biases = jnp.stack([_tile_bias(params[n][1], W, c_pad)
                        for n in _BIAS_ORDER], axis=0)             # (12, W*c)

    return {"conv_stack": conv_stack, "attn_w": attn_w,
            "tanh_w": tanh_w, "biases": biases}


# ----------------------------------------------------------------------------
# OutModel: deterministic params + forward
# ----------------------------------------------------------------------------

def init_params(key, cin=3, c=8, cout=3):
    ks = jax.random.split(key, 12)

    def conv_p(k, kh, kw, ci, co):
        w = (jax.random.normal(k, (kh, kw, ci, co), jnp.float32)
             * (0.1 / jnp.sqrt(kh * kw * ci)))
        return w, jnp.zeros((co,), jnp.float32)

    return {
        "header_first":  conv_p(ks[0], 3, 3, cin, c),
        "header_second": conv_p(ks[1], 3, 3, c, c),
        "header_third":  conv_p(ks[2], 3, 3, c, c),
        "header_forth":  conv_p(ks[3], 3, 3, c, c),
        "attn": (jax.random.normal(ks[4], (c, c), jnp.float32) * 0.1,
                 jnp.zeros((c,), jnp.float32)),
        "rb1f": conv_p(ks[5], 3, 3, c, c),
        "rb1s": conv_p(ks[6], 3, 3, c, c),
        "rb2f": conv_p(ks[7], 3, 3, c, c),
        "rb2s": conv_p(ks[8], 3, 3, c, c),
        "rb3f": conv_p(ks[9], 3, 3, c, c),
        "rb3s": conv_p(ks[10], 3, 3, c, c),
        "conv_tanh": conv_p(ks[11], 7, 7, c, cout),
    }


@functools.partial(jax.jit, static_argnames=("cout",))
def out_model_forward(prepped, x_nhwc, cout=3):
    B, H, W, Cin = x_nhwc.shape
    conv_stack = prepped["conv_stack"]
    attn_w = prepped["attn_w"]
    tanh_w = prepped["tanh_w"]
    biases = prepped["biases"]

    WC = conv_stack.shape[-1]            # W * C_pad  (lane-dense width)
    C = WC // W

    # lane-dense (H, W*C) layout; zero-pad input channels to C (band weights
    # for header_first were built with the matching Cin padding)
    xp = jnp.pad(x_nhwc, ((0, 0), (0, 0), (0, 0), (0, C - Cin))
                 ).reshape(B, H, WC)

    # Single grid step: batch is stacked into the matmul M dimension inside
    # the kernel (per review: grid=(B,) is a serial loop on v5e/v6e and the
    # batched single call also wins for B=2 @ 16x16 on v7x).
    y2d = pl.pallas_call(
        functools.partial(_fused_kernel, B=B, H=H, WC=WC, lrelu_slope=0.2),
        grid=(1,),
        in_specs=[
            pl.BlockSpec((B, H, WC), lambda i: (0, 0, 0)),
            pl.BlockSpec(conv_stack.shape, lambda i: (0, 0, 0)),
            pl.BlockSpec(attn_w.shape, lambda i: (0, 0)),
            pl.BlockSpec(tanh_w.shape, lambda i: (0, 0)),
            pl.BlockSpec(biases.shape, lambda i: (0, 0)),
        ],
        out_specs=pl.BlockSpec((B, H, WC), lambda i: (0, 0, 0)),
        out_shape=jax.ShapeDtypeStruct((B, H, WC), x_nhwc.dtype),
        scratch_shapes=[pltpu.VMEM((B, H + 2, WC), jnp.float32)],
        compiler_params=pltpu.CompilerParams(
            dimension_semantics=("arbitrary",),
            vmem_limit_bytes=32 * 1024 * 1024),
    )(xp, conv_stack, attn_w, tanh_w, biases)

    # slice the real output channels off the lane-dense (padded) tile
    return y2d.reshape(B, H, W, C)[..., :cout]


if __name__ == "__main__":
    key = jax.random.PRNGKey(0)
    pkey, xkey = jax.random.split(key)

    params = init_params(pkey, cin=3, c=8, cout=3)
    # NHWC input; corresponds to PyTorch NCHW (2, 3, 16, 16)
    x = jax.random.normal(xkey, (2, 16, 16, 3), jnp.float32)

    prepped = prepare_params(params, W=x.shape[2], c_pad=8)
    y = out_model_forward(prepped, x, cout=3)
    y = jax.block_until_ready(y)
    assert y.shape == (2, 16, 16, 3), y.shape
    assert bool(jnp.all(jnp.isfinite(y)))
    print("KERNEL_OK")
</pallas_src>

<mosaic_0001>
module attributes {stable_mosaic.version = 11 : i64} {
  func.func @_fused_kernel(%arg0: i32, %arg1: memref<2x16x128xf32, #tpu.memory_space<vmem>>, %arg2: memref<10x384x128xbf16, #tpu.memory_space<vmem>>, %arg3: memref<128x128xbf16, #tpu.memory_space<vmem>>, %arg4: memref<896x128xbf16, #tpu.memory_space<vmem>>, %arg5: memref<12x128xf32, #tpu.memory_space<vmem>>, %arg6: memref<2x16x128xf32, #tpu.memory_space<vmem>>, %arg7: memref<2x18x128xf32, #tpu.memory_space<vmem>>) attributes {dimension_semantics = [#tpu.dimension_semantics<arbitrary>], iteration_bounds = array<i64: 1>, scalar_prefetch = 0 : i64, scratch_operands = 1 : i64, tpu.core_type = #tpu.core_type<tc>, window_params = [{pipeline_mode = #tpu.pipeline_mode<synchronous>, transform_indices = @transform_0, window_bounds = array<i64: 2, 16, 128>}, {pipeline_mode = #tpu.pipeline_mode<synchronous>, transform_indices = @transform_1, window_bounds = array<i64: 10, 384, 128>}, {pipeline_mode = #tpu.pipeline_mode<synchronous>, transform_indices = @transform_2, window_bounds = array<i64: 128, 128>}, {pipeline_mode = #tpu.pipeline_mode<synchronous>, transform_indices = @transform_3, window_bounds = array<i64: 896, 128>}, {pipeline_mode = #tpu.pipeline_mode<synchronous>, transform_indices = @transform_4, window_bounds = array<i64: 12, 128>}, {pipeline_mode = #tpu.pipeline_mode<synchronous>, transform_indices = @transform_5, window_bounds = array<i64: 2, 16, 128>}]} {
    %cst = arith.constant 0.000000e+00 : f32
    %0 = vector.broadcast %cst : f32 to vector<2x18x128xf32>
    %c0 = arith.constant 0 : index
    %c0_0 = arith.constant 0 : index
    %c0_1 = arith.constant 0 : index
    %1 = vector.load %arg7[%c0, %c0_0, %c0_1] : memref<2x18x128xf32, #tpu.memory_space<vmem>>, vector<2x18x128xf32>
    tpu.vector_store %arg7[%c0, %c0_0, %c0_1], %0 {strides = array<i32>} : memref<2x18x128xf32, #tpu.memory_space<vmem>>, vector<2x18x128xf32>,
    %c0_2 = arith.constant 0 : index
    %c0_3 = arith.constant 0 : index
    %c0_4 = arith.constant 0 : index
    %2 = vector.load %arg1[%c0_2, %c0_3, %c0_4] : memref<2x16x128xf32, #tpu.memory_space<vmem>>, vector<2x16x128xf32>
    %c0_5 = arith.constant 0 : index
    %c1 = arith.constant 1 : index
    %c0_6 = arith.constant 0 : index
    %3 = vector.load %arg7[%c0_5, %c1, %c0_6] : memref<2x18x128xf32, #tpu.memory_space<vmem>>, vector<2x16x128xf32>
    tpu.vector_store %arg7[%c0_5, %c1, %c0_6], %2 {strides = array<i32>} : memref<2x18x128xf32, #tpu.memory_space<vmem>>, vector<2x16x128xf32>,
    %c0_7 = arith.constant 0 : index
    %c0_8 = arith.constant 0 : index
    %c0_9 = arith.constant 0 : index
    %4 = vector.load %arg7[%c0_7, %c0_8, %c0_9] : memref<2x18x128xf32, #tpu.memory_space<vmem>>, vector<2x16x128xf32>
    %c0_10 = arith.constant 0 : index
    %c1_11 = arith.constant 1 : index
    %c0_12 = arith.constant 0 : index
    %5 = vector.load %arg7[%c0_10, %c1_11, %c0_12] : memref<2x18x128xf32, #tpu.memory_space<vmem>>, vector<2x16x128xf32>
    %c0_13 = arith.constant 0 : index
    %c2 = arith.constant 2 : index
    %c0_14 = arith.constant 0 : index
    %6 = vector.load %arg7[%c0_13, %c2, %c0_14] : memref<2x18x128xf32, #tpu.memory_space<vmem>>, vector<2x16x128xf32>
    %7 = tpu.concatenate %4, %5, %6 in 2 : vector<2x16x128xf32>, vector<2x16x128xf32>, vector<2x16x128xf32> -> vector<2x16x384xf32>
    %8 = vector.shape_cast %7 : vector<2x16x384xf32> to vector<32x384xf32>
    %9 = arith.truncf %8 : vector<32x384xf32> to vector<32x384xbf16>
    %c0_15 = arith.constant 0 : index
    %c0_16 = arith.constant 0 : index
    %c0_17 = arith.constant 0 : index
    %10 = vector.load %arg2[%c0_15, %c0_16, %c0_17] : memref<10x384x128xbf16, #tpu.memory_space<vmem>>, vector<1x384x128xbf16>
    %11 = vector.shape_cast %10 : vector<1x384x128xbf16> to vector<384x128xbf16>
    %cst_18 = arith.constant dense<0.000000e+00> : vector<32x128xf32>
    %12 = tpu.matmul %9, %11, %cst_18 {dimension_numbers = #tpu.dot_dimension_numbers<[1], [0], [0], [1], [0, 0, 1, 1], [], []>} : vector<32x384xbf16>, vector<384x128xbf16>, vector<32x128xf32> -> vector<32x128xf32>
    %c0_19 = arith.constant 0 : index
    %c0_20 = arith.constant 0 : index
    %13 = vector.load %arg5[%c0_19, %c0_20] : memref<12x128xf32, #tpu.memory_space<vmem>>, vector<1x128xf32>
    %14 = vector.broadcast %13 : vector<1x128xf32> to vector<32x128xf32>
    %15 = arith.addf %12, %14 : vector<32x128xf32>
    %16 = vector.shape_cast %15 : vector<32x128xf32> to vector<2x16x128xf32>
    %cst_21 = arith.constant 0.000000e+00 : f32
    %17 = vector.broadcast %cst_21 : f32 to vector<2x16x128xf32>
    %18 = arith.cmpf ogt, %16, %17 : vector<2x16x128xf32>
    %cst_22 = arith.constant 2.000000e-01 : f32
    %19 = vector.broadcast %cst_22 : f32 to vector<2x16x128xf32>
    %20 = arith.mulf %19, %16 : vector<2x16x128xf32>
    %21 = arith.select %18, %16, %20 : vector<2x16x128xi1>, vector<2x16x128xf32>
    %c0_23 = arith.constant 0 : index
    %c1_24 = arith.constant 1 : index
    %c0_25 = arith.constant 0 : index
    %22 = vector.load %arg7[%c0_23, %c1_24, %c0_25] : memref<2x18x128xf32, #tpu.memory_space<vmem>>, vector<2x16x128xf32>
    tpu.vector_store %arg7[%c0_23, %c1_24, %c0_25], %21 {strides = array<i32>} : memref<2x18x128xf32, #tpu.memory_space<vmem>>, vector<2x16x128xf32>,
    %c0_26 = arith.constant 0 : index
    %c0_27 = arith.constant 0 : index
    %c0_28 = arith.constant 0 : index
    %23 = vector.load %arg7[%c0_26, %c0_27, %c0_28] : memref<2x18x128xf32, #tpu.memory_space<vmem>>, vector<2x16x128xf32>
    %c0_29 = arith.constant 0 : index
    %c1_30 = arith.constant 1 : index
    %c0_31 = arith.constant 0 : index
    %24 = vector.load %arg7[%c0_29, %c1_30, %c0_31] : memref<2x18x128xf32, #tpu.memory_space<vmem>>, vector<2x16x128xf32>
    %c0_32 = arith.constant 0 : index
    %c2_33 = arith.constant 2 : index
    %c0_34 = arith.constant 0 : index
    %25 = vector.load %arg7[%c0_32, %c2_33, %c0_34] : memref<2x18x128xf32, #tpu.memory_space<vmem>>, vector<2x16x128xf32>
    %26 = tpu.concatenate %23, %24, %25 in 2 : vector<2x16x128xf32>, vector<2x16x128xf32>, vector<2x16x128xf32> -> vector<2x16x384xf32>
    %27 = vector.shape_cast %26 : vector<2x16x384xf32> to vector<32x384xf32>
    %28 = arith.truncf %27 : vector<32x384xf32> to vector<32x384xbf16>
    %c1_35 = arith.constant 1 : index
    %c0_36 = arith.constant 0 : index
    %c0_37 = arith.constant 0 : index
    %29 = vector.load %arg2[%c1_35, %c0_36, %c0_37] : memref<10x384x128xbf16, #tpu.memory_space<vmem>>, vector<1x384x128xbf16>
    %30 = vector.shape_cast %29 : vector<1x384x128xbf16> to vector<384x128xbf16>
    %cst_38 = arith.constant dense<0.000000e+00> : vector<32x128xf32>
    %31 = tpu.matmul %28, %30, %cst_38 {dimension_numbers = #tpu.dot_dimension_numbers<[1], [0], [0], [1], [0, 0, 1, 1], [], []>} : vector<32x384xbf16>, vector<384x128xbf16>, vector<32x128xf32> -> vector<32x128xf32>
    %c1_39 = arith.constant 1 : index
    %c0_40 = arith.constant 0 : index
    %32 = vector.load %arg5[%c1_39, %c0_40] : memref<12x128xf32, #tpu.memory_space<vmem>>, vector<1x128xf32>
    %33 = vector.broadcast %32 : vector<1x128xf32> to vector<32x128xf32>
    %34 = arith.addf %31, %33 : vector<32x128xf32>
    %35 = vector.shape_cast %34 : vector<32x128xf32> to vector<2x16x128xf32>
    %cst_41 = arith.constant 0.000000e+00 : f32
    %36 = vector.broadcast %cst_41 : f32 to vector<2x16x128xf32>
    %37 = arith.cmpf ogt, %35, %36 : vector<2x16x128xf32>
    %cst_42 = arith.constant 2.000000e-01 : f32
    %38 = vector.broadcast %cst_42 : f32 to vector<2x16x128xf32>
    %39 = arith.mulf %38, %35 : vector<2x16x128xf32>
    %40 = arith.select %37, %35, %39 : vector<2x16x128xi1>, vector<2x16x128xf32>
    %c0_43 = arith.constant 0 : index
    %c1_44 = arith.constant 1 : index
    %c0_45 = arith.constant 0 : index
    %41 = vector.load %arg7[%c0_43, %c1_44, %c0_45] : memref<2x18x128xf32, #tpu.memory_space<vmem>>, vector<2x16x128xf32>
    tpu.vector_store %arg7[%c0_43, %c1_44, %c0_45], %40 {strides = array<i32>} : memref<2x18x128xf32, #tpu.memory_space<vmem>>, vector<2x16x128xf32>,
    %c0_46 = arith.constant 0 : index
    %c0_47 = arith.constant 0 : index
    %c0_48 = arith.constant 0 : index
    %42 = vector.load %arg7[%c0_46, %c0_47, %c0_48] : memref<2x18x128xf32, #tpu.memory_space<vmem>>, vector<2x16x128xf32>
    %c0_49 = arith.constant 0 : index
    %c1_50 = arith.constant 1 : index
    %c0_51 = arith.constant 0 : index
    %43 = vector.load %arg7[%c0_49, %c1_50, %c0_51] : memref<2x18x128xf32, #tpu.memory_space<vmem>>, vector<2x16x128xf32>
    %c0_52 = arith.constant 0 : index
    %c2_53 = arith.constant 2 : index
    %c0_54 = arith.constant 0 : index
    %44 = vector.load %arg7[%c0_52, %c2_53, %c0_54] : memref<2x18x128xf32, #tpu.memory_space<vmem>>, vector<2x16x128xf32>
    %45 = tpu.concatenate %42, %43, %44 in 2 : vector<2x16x128xf32>, vector<2x16x128xf32>, vector<2x16x128xf32> -> vector<2x16x384xf32>
    %46 = vector.shape_cast %45 : vector<2x16x384xf32> to vector<32x384xf32>
    %47 = arith.truncf %46 : vector<32x384xf32> to vector<32x384xbf16>
    %c2_55 = arith.constant 2 : index
    %c0_56 = arith.constant 0 : index
    %c0_57 = arith.constant 0 : index
    %48 = vector.load %arg2[%c2_55, %c0_56, %c0_57] : memref<10x384x128xbf16, #tpu.memory_space<vmem>>, vector<1x384x128xbf16>
    %49 = vector.shape_cast %48 : vector<1x384x128xbf16> to vector<384x128xbf16>
    %cst_58 = arith.constant dense<0.000000e+00> : vector<32x128xf32>
    %50 = tpu.matmul %47, %49, %cst_58 {dimension_numbers = #tpu.dot_dimension_numbers<[1], [0], [0], [1], [0, 0, 1, 1], [], []>} : vector<32x384xbf16>, vector<384x128xbf16>, vector<32x128xf32> -> vector<32x128xf32>
    %c2_59 = arith.constant 2 : index
    %c0_60 = arith.constant 0 : index
    %51 = vector.load %arg5[%c2_59, %c0_60] : memref<12x128xf32, #tpu.memory_space<vmem>>, vector<1x128xf32>
    %52 = vector.broadcast %51 : vector<1x128xf32> to vector<32x128xf32>
    %53 = arith.addf %50, %52 : vector<32x128xf32>
    %54 = vector.shape_cast %53 : vector<32x128xf32> to vector<2x16x128xf32>
    %cst_61 = arith.constant 0.000000e+00 : f32
    %55 = vector.broadcast %cst_61 : f32 to vector<2x16x128xf32>
    %56 = arith.cmpf ogt, %54, %55 : vector<2x16x128xf32>
    %cst_62 = arith.constant 2.000000e-01 : f32
    %57 = vector.broadcast %cst_62 : f32 to vector<2x16x128xf32>
    %58 = arith.mulf %57, %54 : vector<2x16x128xf32>
    %59 = arith.select %56, %54, %58 : vector<2x16x128xi1>, vector<2x16x128xf32>
    %c0_63 = arith.constant 0 : index
    %c1_64 = arith.constant 1 : index
    %c0_65 = arith.constant 0 : index
    %60 = vector.load %arg7[%c0_63, %c1_64, %c0_65] : memref<2x18x128xf32, #tpu.memory_space<vmem>>, vector<2x16x128xf32>
    tpu.vector_store %arg7[%c0_63, %c1_64, %c0_65], %59 {strides = array<i32>} : memref<2x18x128xf32, #tpu.memory_space<vmem>>, vector<2x16x128xf32>,
    %c0_66 = arith.constant 0 : index
    %c0_67 = arith.constant 0 : index
    %c0_68 = arith.constant 0 : index
    %61 = vector.load %arg7[%c0_66, %c0_67, %c0_68] : memref<2x18x128xf32, #tpu.memory_space<vmem>>, vector<2x16x128xf32>
    %c0_69 = arith.constant 0 : index
    %c1_70 = arith.constant 1 : index
    %c0_71 = arith.constant 0 : index
    %62 = vector.load %arg7[%c0_69, %c1_70, %c0_71] : memref<2x18x128xf32, #tpu.memory_space<vmem>>, vector<2x16x128xf32>
    %c0_72 = arith.constant 0 : index
    %c2_73 = arith.constant 2 : index
    %c0_74 = arith.constant 0 : index
    %63 = vector.load %arg7[%c0_72, %c2_73, %c0_74] : memref<2x18x128xf32, #tpu.memory_space<vmem>>, vector<2x16x128xf32>
    %64 = tpu.concatenate %61, %62, %63 in 2 : vector<2x16x128xf32>, vector<2x16x128xf32>, vector<2x16x128xf32> -> vector<2x16x384xf32>
    %65 = vector.shape_cast %64 : vector<2x16x384xf32> to vector<32x384xf32>
    %66 = arith.truncf %65 : vector<32x384xf32> to vector<32x384xbf16>
    %c3 = arith.constant 3 : index
    %c0_75 = arith.constant 0 : index
    %c0_76 = arith.constant 0 : index
    %67 = vector.load %arg2[%c3, %c0_75, %c0_76] : memref<10x384x128xbf16, #tpu.memory_space<vmem>>, vector<1x384x128xbf16>
    %68 = vector.shape_cast %67 : vector<1x384x128xbf16> to vector<384x128xbf16>
    %cst_77 = arith.constant dense<0.000000e+00> : vector<32x128xf32>
    %69 = tpu.matmul %66, %68, %cst_77 {dimension_numbers = #tpu.dot_dimension_numbers<[1], [0], [0], [1], [0, 0, 1, 1], [], []>} : vector<32x384xbf16>, vector<384x128xbf16>, vector<32x128xf32> -> vector<32x128xf32>
    %c3_78 = arith.constant 3 : index
    %c0_79 = arith.constant 0 : index
    %70 = vector.load %arg5[%c3_78, %c0_79] : memref<12x128xf32, #tpu.memory_space<vmem>>, vector<1x128xf32>
    %71 = vector.broadcast %70 : vector<1x128xf32> to vector<32x128xf32>
    %72 = arith.addf %69, %71 : vector<32x128xf32>
    %73 = vector.shape_cast %72 : vector<32x128xf32> to vector<2x16x128xf32>
    %cst_80 = arith.constant 0.000000e+00 : f32
    %74 = vector.broadcast %cst_80 : f32 to vector<2x16x128xf32>
    %75 = arith.cmpf ogt, %73, %74 : vector<2x16x128xf32>
    %cst_81 = arith.constant 2.000000e-01 : f32
    %76 = vector.broadcast %cst_81 : f32 to vector<2x16x128xf32>
    %77 = arith.mulf %76, %73 : vector<2x16x128xf32>
    %78 = arith.select %75, %73, %77 : vector<2x16x128xi1>, vector<2x16x128xf32>
    %79 = vector.shape_cast %78 : vector<2x16x128xf32> to vector<32x128xf32>
    %80 = arith.truncf %79 : vector<32x128xf32> to vector<32x128xbf16>
    %c0_82 = arith.constant 0 : index
    %c0_83 = arith.constant 0 : index
    %81 = vector.load %arg3[%c0_82, %c0_83] : memref<128x128xbf16, #tpu.memory_space<vmem>>, vector<128x128xbf16>
    %cst_84 = arith.constant dense<0.000000e+00> : vector<32x128xf32>
    %82 = tpu.matmul %80, %81, %cst_84 {dimension_numbers = #tpu.dot_dimension_numbers<[1], [0], [0], [1], [0, 0, 1, 1], [], []>} : vector<32x128xbf16>, vector<128x128xbf16>, vector<32x128xf32> -> vector<32x128xf32>
    %c4 = arith.constant 4 : index
    %c0_85 = arith.constant 0 : index
    %83 = vector.load %arg5[%c4, %c0_85] : memref<12x128xf32, #tpu.memory_space<vmem>>, vector<1x128xf32>
    %84 = vector.broadcast %83 : vector<1x128xf32> to vector<32x128xf32>
    %85 = arith.addf %82, %84 : vector<32x128xf32>
    %86 = arith.negf %85 : vector<32x128xf32>
    %87 = math.exp %86 : vector<32x128xf32>
    %cst_86 = arith.constant 1.000000e+00 : f32
    %88 = vector.broadcast %cst_86 : f32 to vector<32x128xf32>
    %89 = arith.addf %88, %87 : vector<32x128xf32>
    %90 = arith.divf %88, %89 : vector<32x128xf32>
    %91 = arith.mulf %79, %90 : vector<32x128xf32>
    %92 = vector.shape_cast %91 : vector<32x128xf32> to vector<2x16x128xf32>
    %c0_87 = arith.constant 0 : index
    %c1_88 = arith.constant 1 : index
    %c0_89 = arith.constant 0 : index
    %93 = vector.load %arg7[%c0_87, %c1_88, %c0_89] : memref<2x18x128xf32, #tpu.memory_space<vmem>>, vector<2x16x128xf32>
    tpu.vector_store %arg7[%c0_87, %c1_88, %c0_89], %92 {strides = array<i32>} : memref<2x18x128xf32, #tpu.memory_space<vmem>>, vector<2x16x128xf32>,
    %c0_90 = arith.constant 0 : index
    %c0_91 = arith.constant 0 : index
    %c0_92 = arith.constant 0 : index
    %94 = vector.load %arg7[%c0_90, %c0_91, %c0_92] : memref<2x18x128xf32, #tpu.memory_space<vmem>>, vector<2x16x128xf32>
    %c0_93 = arith.constant 0 : index
    %c1_94 = arith.constant 1 : index
    %c0_95 = arith.constant 0 : index
    %95 = vector.load %arg7[%c0_93, %c1_94, %c0_95] : memref<2x18x128xf32, #tpu.memory_space<vmem>>, vector<2x16x128xf32>
    %c0_96 = arith.constant 0 : index
    %c2_97 = arith.constant 2 : index
    %c0_98 = arith.constant 0 : index
    %96 = vector.load %arg7[%c0_96, %c2_97, %c0_98] : memref<2x18x128xf32, #tpu.memory_space<vmem>>, vector<2x16x128xf32>
    %97 = tpu.concatenate %94, %95, %96 in 2 : vector<2x16x128xf32>, vector<2x16x128xf32>, vector<2x16x128xf32> -> vector<2x16x384xf32>
    %98 = vector.shape_cast %97 : vector<2x16x384xf32> to vector<32x384xf32>
    %99 = arith.truncf %98 : vector<32x384xf32> to vector<32x384xbf16>
    %c4_99 = arith.constant 4 : index
    %c0_100 = arith.constant 0 : index
    %c0_101 = arith.constant 0 : index
    %100 = vector.load %arg2[%c4_99, %c0_100, %c0_101] : memref<10x384x128xbf16, #tpu.memory_space<vmem>>, vector<1x384x128xbf16>
    %101 = vector.shape_cast %100 : vector<1x384x128xbf16> to vector<384x128xbf16>
    %cst_102 = arith.constant dense<0.000000e+00> : vector<32x128xf32>
    %102 = tpu.matmul %99, %101, %cst_102 {dimension_numbers = #tpu.dot_dimension_numbers<[1], [0], [0], [1], [0, 0, 1, 1], [], []>} : vector<32x384xbf16>, vector<384x128xbf16>, vector<32x128xf32> -> vector<32x128xf32>
    %c5 = arith.constant 5 : index
    %c0_103 = arith.constant 0 : index
    %103 = vector.load %arg5[%c5, %c0_103] : memref<12x128xf32, #tpu.memory_space<vmem>>, vector<1x128xf32>
    %104 = vector.broadcast %103 : vector<1x128xf32> to vector<32x128xf32>
    %105 = arith.addf %102, %104 : vector<32x128xf32>
    %106 = vector.shape_cast %105 : vector<32x128xf32> to vector<2x16x128xf32>
    %cst_104 = arith.constant 0.000000e+00 : f32
    %107 = vector.broadcast %cst_104 : f32 to vector<2x16x128xf32>
    %108 = arith.maximumf %106, %107 : vector<2x16x128xf32>
    %109 = arith.addf %108, %59 : vector<2x16x128xf32>
    %c0_105 = arith.constant 0 : index
    %c1_106 = arith.constant 1 : index
    %c0_107 = arith.constant 0 : index
    %110 = vector.load %arg7[%c0_105, %c1_106, %c0_107] : memref<2x18x128xf32, #tpu.memory_space<vmem>>, vector<2x16x128xf32>
    tpu.vector_store %arg7[%c0_105, %c1_106, %c0_107], %109 {strides = array<i32>} : memref<2x18x128xf32, #tpu.memory_space<vmem>>, vector<2x16x128xf32>,
    %c0_108 = arith.constant 0 : index
    %c0_109 = arith.constant 0 : index
    %c0_110 = arith.constant 0 : index
    %111 = vector.load %arg7[%c0_108, %c0_109, %c0_110] : memref<2x18x128xf32, #tpu.memory_space<vmem>>, vector<2x16x128xf32>
    %c0_111 = arith.constant 0 : index
    %c1_112 = arith.constant 1 : index
    %c0_113 = arith.constant 0 : index
    %112 = vector.load %arg7[%c0_111, %c1_112, %c0_113] : memref<2x18x128xf32, #tpu.memory_space<vmem>>, vector<2x16x128xf32>
    %c0_114 = arith.constant 0 : index
    %c2_115 = arith.constant 2 : index
    %c0_116 = arith.constant 0 : index
    %113 = vector.load %arg7[%c0_114, %c2_115, %c0_116] : memref<2x18x128xf32, #tpu.memory_space<vmem>>, vector<2x16x128xf32>
    %114 = tpu.concatenate %111, %112, %113 in 2 : vector<2x16x128xf32>, vector<2x16x128xf32>, vector<2x16x128xf32> -> vector<2x16x384xf32>
    %115 = vector.shape_cast %114 : vector<2x16x384xf32> to vector<32x384xf32>
    %116 = arith.truncf %115 : vector<32x384xf32> to vector<32x384xbf16>
    %c5_117 = arith.constant 5 : index
    %c0_118 = arith.constant 0 : index
    %c0_119 = arith.constant 0 : index
    %117 = vector.load %arg2[%c5_117, %c0_118, %c0_119] : memref<10x384x128xbf16, #tpu.memory_space<vmem>>, vector<1x384x128xbf16>
    %118 = vector.shape_cast %117 : vector<1x384x128xbf16> to vector<384x128xbf16>
    %cst_120 = arith.constant dense<0.000000e+00> : vector<32x128xf32>
    %119 = tpu.matmul %116, %118, %cst_120 {dimension_numbers = #tpu.dot_dimension_numbers<[1], [0], [0], [1], [0, 0, 1, 1], [], []>} : vector<32x384xbf16>, vector<384x128xbf16>, vector<32x128xf32> -> vector<32x128xf32>
    %c6 = arith.constant 6 : index
    %c0_121 = arith.constant 0 : index
    %120 = vector.load %arg5[%c6, %c0_121] : memref<12x128xf32, #tpu.memory_space<vmem>>, vector<1x128xf32>
    %121 = vector.broadcast %120 : vector<1x128xf32> to vector<32x128xf32>
    %122 = arith.addf %119, %121 : vector<32x128xf32>
    %123 = vector.shape_cast %122 : vector<32x128xf32> to vector<2x16x128xf32>
    %cst_122 = arith.constant 0.000000e+00 : f32
    %124 = vector.broadcast %cst_122 : f32 to vector<2x16x128xf32>
    %125 = arith.maximumf %123, %124 : vector<2x16x128xf32>
    %c0_123 = arith.constant 0 : index
    %c1_124 = arith.constant 1 : index
    %c0_125 = arith.constant 0 : index
    %126 = vector.load %arg7[%c0_123, %c1_124, %c0_125] : memref<2x18x128xf32, #tpu.memory_space<vmem>>, vector<2x16x128xf32>
    tpu.vector_store %arg7[%c0_123, %c1_124, %c0_125], %125 {strides = array<i32>} : memref<2x18x128xf32, #tpu.memory_space<vmem>>, vector<2x16x128xf32>,
    %c0_126 = arith.constant 0 : index
    %c0_127 = arith.constant 0 : index
    %c0_128 = arith.constant 0 : index
    %127 = vector.load %arg7[%c0_126, %c0_127, %c0_128] : memref<2x18x128xf32, #tpu.memory_space<vmem>>, vector<2x16x128xf32>
    %c0_129 = arith.constant 0 : index
    %c1_130 = arith.constant 1 : index
    %c0_131 = arith.constant 0 : index
    %128 = vector.load %arg7[%c0_129, %c1_130, %c0_131] : memref<2x18x128xf32, #tpu.memory_space<vmem>>, vector<2x16x128xf32>
    %c0_132 = arith.constant 0 : index
    %c2_133 = arith.constant 2 : index
    %c0_134 = arith.constant 0 : index
    %129 = vector.load %arg7[%c0_132, %c2_133, %c0_134] : memref<2x18x128xf32, #tpu.memory_space<vmem>>, vector<2x16x128xf32>
    %130 = tpu.concatenate %127, %128, %129 in 2 : vector<2x16x128xf32>, vector<2x16x128xf32>, vector<2x16x128xf32> -> vector<2x16x384xf32>
    %131 = vector.shape_cast %130 : vector<2x16x384xf32> to vector<32x384xf32>
    %132 = arith.truncf %131 : vector<32x384xf32> to vector<32x384xbf16>
    %c6_135 = arith.constant 6 : index
    %c0_136 = arith.constant 0 : index
    %c0_137 = arith.constant 0 : index
    %133 = vector.load %arg2[%c6_135, %c0_136, %c0_137] : memref<10x384x128xbf16, #tpu.memory_space<vmem>>, vector<1x384x128xbf16>
    %134 = vector.shape_cast %133 : vector<1x384x128xbf16> to vector<384x128xbf16>
    %cst_138 = arith.constant dense<0.000000e+00> : vector<32x128xf32>
    %135 = tpu.matmul %132, %134, %cst_138 {dimension_numbers = #tpu.dot_dimension_numbers<[1], [0], [0], [1], [0, 0, 1, 1], [], []>} : vector<32x384xbf16>, vector<384x128xbf16>, vector<32x128xf32> -> vector<32x128xf32>
    %c7 = arith.constant 7 : index
    %c0_139 = arith.constant 0 : index
    %136 = vector.load %arg5[%c7, %c0_139] : memref<12x128xf32, #tpu.memory_space<vmem>>, vector<1x128xf32>
    %137 = vector.broadcast %136 : vector<1x128xf32> to vector<32x128xf32>
    %138 = arith.addf %135, %137 : vector<32x128xf32>
    %139 = vector.shape_cast %138 : vector<32x128xf32> to vector<2x16x128xf32>
    %cst_140 = arith.constant 0.000000e+00 : f32
    %140 = vector.broadcast %cst_140 : f32 to vector<2x16x128xf32>
    %141 = arith.maximumf %139, %140 : vector<2x16x128xf32>
    %142 = arith.addf %141, %40 : vector<2x16x128xf32>
    %c0_141 = arith.constant 0 : index
    %c1_142 = arith.constant 1 : index
    %c0_143 = arith.constant 0 : index
    %143 = vector.load %arg7[%c0_141, %c1_142, %c0_143] : memref<2x18x128xf32, #tpu.memory_space<vmem>>, vector<2x16x128xf32>
    tpu.vector_store %arg7[%c0_141, %c1_142, %c0_143], %142 {strides = array<i32>} : memref<2x18x128xf32, #tpu.memory_space<vmem>>, vector<2x16x128xf32>,
    %c0_144 = arith.constant 0 : index
    %c0_145 = arith.constant 0 : index
    %c0_146 = arith.constant 0 : index
    %144 = vector.load %arg7[%c0_144, %c0_145, %c0_146] : memref<2x18x128xf32, #tpu.memory_space<vmem>>, vector<2x16x128xf32>
    %c0_147 = arith.constant 0 : index
    %c1_148 = arith.constant 1 : index
    %c0_149 = arith.constant 0 : index
    %145 = vector.load %arg7[%c0_147, %c1_148, %c0_149] : memref<2x18x128xf32, #tpu.memory_space<vmem>>, vector<2x16x128xf32>
    %c0_150 = arith.constant 0 : index
    %c2_151 = arith.constant 2 : index
    %c0_152 = arith.constant 0 : index
    %146 = vector.load %arg7[%c0_150, %c2_151, %c0_152] : memref<2x18x128xf32, #tpu.memory_space<vmem>>, vector<2x16x128xf32>
    %147 = tpu.concatenate %144, %145, %146 in 2 : vector<2x16x128xf32>, vector<2x16x128xf32>, vector<2x16x128xf32> -> vector<2x16x384xf32>
    %148 = vector.shape_cast %147 : vector<2x16x384xf32> to vector<32x384xf32>
    %149 = arith.truncf %148 : vector<32x384xf32> to vector<32x384xbf16>
    %c7_153 = arith.constant 7 : index
    %c0_154 = arith.constant 0 : index
    %c0_155 = arith.constant 0 : index
    %150 = vector.load %arg2[%c7_153, %c0_154, %c0_155] : memref<10x384x128xbf16, #tpu.memory_space<vmem>>, vector<1x384x128xbf16>
    %151 = vector.shape_cast %150 : vector<1x384x128xbf16> to vector<384x128xbf16>
    %cst_156 = arith.constant dense<0.000000e+00> : vector<32x128xf32>
    %152 = tpu.matmul %149, %151, %cst_156 {dimension_numbers = #tpu.dot_dimension_numbers<[1], [0], [0], [1], [0, 0, 1, 1], [], []>} : vector<32x384xbf16>, vector<384x128xbf16>, vector<32x128xf32> -> vector<32x128xf32>
    %c8 = arith.constant 8 : index
    %c0_157 = arith.constant 0 : index
    %153 = vector.load %arg5[%c8, %c0_157] : memref<12x128xf32, #tpu.memory_space<vmem>>, vector<1x128xf32>
    %154 = vector.broadcast %153 : vector<1x128xf32> to vector<32x128xf32>
    %155 = arith.addf %152, %154 : vector<32x128xf32>
    %156 = vector.shape_cast %155 : vector<32x128xf32> to vector<2x16x128xf32>
    %cst_158 = arith.constant 0.000000e+00 : f32
    %157 = vector.broadcast %cst_158 : f32 to vector<2x16x128xf32>
    %158 = arith.maximumf %156, %157 : vector<2x16x128xf32>
    %c0_159 = arith.constant 0 : index
    %c1_160 = arith.constant 1 : index
    %c0_161 = arith.constant 0 : index
    %159 = vector.load %arg7[%c0_159, %c1_160, %c0_161] : memref<2x18x128xf32, #tpu.memory_space<vmem>>, vector<2x16x128xf32>
    tpu.vector_store %arg7[%c0_159, %c1_160, %c0_161], %158 {strides = array<i32>} : memref<2x18x128xf32, #tpu.memory_space<vmem>>, vector<2x16x128xf32>,
    %c0_162 = arith.constant 0 : index
    %c0_163 = arith.constant 0 : index
    %c0_164 = arith.constant 0 : index
    %160 = vector.load %arg7[%c0_162, %c0_163, %c0_164] : memref<2x18x128xf32, #tpu.memory_space<vmem>>, vector<2x16x128xf32>
    %c0_165 = arith.constant 0 : index
    %c1_166 = arith.constant 1 : index
    %c0_167 = arith.constant 0 : index
    %161 = vector.load %arg7[%c0_165, %c1_166, %c0_167] : memref<2x18x128xf32, #tpu.memory_space<vmem>>, vector<2x16x128xf32>
    %c0_168 = arith.constant 0 : index
    %c2_169 = arith.constant 2 : index
    %c0_170 = arith.constant 0 : index
    %162 = vector.load %arg7[%c0_168, %c2_169, %c0_170] : memref<2x18x128xf32, #tpu.memory_space<vmem>>, vector<2x16x128xf32>
    %163 = tpu.concatenate %160, %161, %162 in 2 : vector<2x16x128xf32>, vector<2x16x128xf32>, vector<2x16x128xf32> -> vector<2x16x384xf32>
    %164 = vector.shape_cast %163 : vector<2x16x384xf32> to vector<32x384xf32>
    %165 = arith.truncf %164 : vector<32x384xf32> to vector<32x384xbf16>
    %c8_171 = arith.constant 8 : index
    %c0_172 = arith.constant 0 : index
    %c0_173 = arith.constant 0 : index
    %166 = vector.load %arg2[%c8_171, %c0_172, %c0_173] : memref<10x384x128xbf16, #tpu.memory_space<vmem>>, vector<1x384x128xbf16>
    %167 = vector.shape_cast %166 : vector<1x384x128xbf16> to vector<384x128xbf16>
    %cst_174 = arith.constant dense<0.000000e+00> : vector<32x128xf32>
    %168 = tpu.matmul %165, %167, %cst_174 {dimension_numbers = #tpu.dot_dimension_numbers<[1], [0], [0], [1], [0, 0, 1, 1], [], []>} : vector<32x384xbf16>, vector<384x128xbf16>, vector<32x128xf32> -> vector<32x128xf32>
    %c9 = arith.constant 9 : index
    %c0_175 = arith.constant 0 : index
    %169 = vector.load %arg5[%c9, %c0_175] : memref<12x128xf32, #tpu.memory_space<vmem>>, vector<1x128xf32>
    %170 = vector.broadcast %169 : vector<1x128xf32> to vector<32x128xf32>
    %171 = arith.addf %168, %170 : vector<32x128xf32>
    %172 = vector.shape_cast %171 : vector<32x128xf32> to vector<2x16x128xf32>
    %cst_176 = arith.constant 0.000000e+00 : f32
    %173 = vector.broadcast %cst_176 : f32 to vector<2x16x128xf32>
    %174 = arith.maximumf %172, %173 : vector<2x16x128xf32>
    %175 = arith.addf %174, %21 : vector<2x16x128xf32>
    %c0_177 = arith.constant 0 : index
    %c1_178 = arith.constant 1 : index
    %c0_179 = arith.constant 0 : index
    %176 = vector.load %arg7[%c0_177, %c1_178, %c0_179] : memref<2x18x128xf32, #tpu.memory_space<vmem>>, vector<2x16x128xf32>
    tpu.vector_store %arg7[%c0_177, %c1_178, %c0_179], %175 {strides = array<i32>} : memref<2x18x128xf32, #tpu.memory_space<vmem>>, vector<2x16x128xf32>,
    %c0_180 = arith.constant 0 : index
    %c0_181 = arith.constant 0 : index
    %c0_182 = arith.constant 0 : index
    %177 = vector.load %arg7[%c0_180, %c0_181, %c0_182] : memref<2x18x128xf32, #tpu.memory_space<vmem>>, vector<2x16x128xf32>
    %c0_183 = arith.constant 0 : index
    %c1_184 = arith.constant 1 : index
    %c0_185 = arith.constant 0 : index
    %178 = vector.load %arg7[%c0_183, %c1_184, %c0_185] : memref<2x18x128xf32, #tpu.memory_space<vmem>>, vector<2x16x128xf32>
    %c0_186 = arith.constant 0 : index
    %c2_187 = arith.constant 2 : index
    %c0_188 = arith.constant 0 : index
    %179 = vector.load %arg7[%c0_186, %c2_187, %c0_188] : memref<2x18x128xf32, #tpu.memory_space<vmem>>, vector<2x16x128xf32>
    %180 = tpu.concatenate %177, %178, %179 in 2 : vector<2x16x128xf32>, vector<2x16x128xf32>, vector<2x16x128xf32> -> vector<2x16x384xf32>
    %181 = vector.shape_cast %180 : vector<2x16x384xf32> to vector<32x384xf32>
    %182 = arith.truncf %181 : vector<32x384xf32> to vector<32x384xbf16>
    %c9_189 = arith.constant 9 : index
    %c0_190 = arith.constant 0 : index
    %c0_191 = arith.constant 0 : index
    %183 = vector.load %arg2[%c9_189, %c0_190, %c0_191] : memref<10x384x128xbf16, #tpu.memory_space<vmem>>, vector<1x384x128xbf16>
    %184 = vector.shape_cast %183 : vector<1x384x128xbf16> to vector<384x128xbf16>
    %cst_192 = arith.constant dense<0.000000e+00> : vector<32x128xf32>
    %185 = tpu.matmul %182, %184, %cst_192 {dimension_numbers = #tpu.dot_dimension_numbers<[1], [0], [0], [1], [0, 0, 1, 1], [], []>} : vector<32x384xbf16>, vector<384x128xbf16>, vector<32x128xf32> -> vector<32x128xf32>
    %c10 = arith.constant 10 : index
    %c0_193 = arith.constant 0 : index
    %186 = vector.load %arg5[%c10, %c0_193] : memref<12x128xf32, #tpu.memory_space<vmem>>, vector<1x128xf32>
    %187 = vector.broadcast %186 : vector<1x128xf32> to vector<32x128xf32>
    %188 = arith.addf %185, %187 : vector<32x128xf32>
    %189 = vector.shape_cast %188 : vector<32x128xf32> to vector<2x16x128xf32>
    %cst_194 = arith.constant 0.000000e+00 : f32
    %190 = vector.broadcast %cst_194 : f32 to vector<2x16x128xf32>
    %191 = arith.maximumf %189, %190 : vector<2x16x128xf32>
    %192 = vector.extract_strided_slice %191 {offsets = [0, 3, 0], sizes = [2, 1, 128], strides = [1, 1, 1]} : vector<2x16x128xf32> to vector<2x1x128xf32>
    %193 = vector.extract_strided_slice %191 {offsets = [0, 2, 0], sizes = [2, 1, 128], strides = [1, 1, 1]} : vector<2x16x128xf32> to vector<2x1x128xf32>
    %194 = vector.extract_strided_slice %191 {offsets = [0, 1, 0], sizes = [2, 1, 128], strides = [1, 1, 1]} : vector<2x16x128xf32> to vector<2x1x128xf32>
    %195 = tpu.concatenate %192, %193, %194 in 1 : vector<2x1x128xf32>, vector<2x1x128xf32>, vector<2x1x128xf32> -> vector<2x3x128xf32>
    %196 = vector.extract_strided_slice %191 {offsets = [0, 14, 0], sizes = [2, 1, 128], strides = [1, 1, 1]} : vector<2x16x128xf32> to vector<2x1x128xf32>
    %197 = vector.extract_strided_slice %191 {offsets = [0, 13, 0], sizes = [2, 1, 128], strides = [1, 1, 1]} : vector<2x16x128xf32> to vector<2x1x128xf32>
    %198 = vector.extract_strided_slice %191 {offsets = [0, 12, 0], sizes = [2, 1, 128], strides = [1, 1, 1]} : vector<2x16x128xf32> to vector<2x1x128xf32>
    %199 = tpu.concatenate %196, %197, %198 in 1 : vector<2x1x128xf32>, vector<2x1x128xf32>, vector<2x1x128xf32> -> vector<2x3x128xf32>
    %200 = tpu.concatenate %195, %191, %199 in 1 : vector<2x3x128xf32>, vector<2x16x128xf32>, vector<2x3x128xf32> -> vector<2x22x128xf32>
    %201 = arith.truncf %200 : vector<2x22x128xf32> to vector<2x22x128xbf16>
    %202 = vector.extract_strided_slice %201 {offsets = [0, 0, 0], sizes = [2, 16, 128], strides = [1, 1, 1]} : vector<2x22x128xbf16> to vector<2x16x128xbf16>
    %203 = vector.extract_strided_slice %201 {offsets = [0, 1, 0], sizes = [2, 16, 128], strides = [1, 1, 1]} : vector<2x22x128xbf16> to vector<2x16x128xbf16>
    %204 = vector.extract_strided_slice %201 {offsets = [0, 2, 0], sizes = [2, 16, 128], strides = [1, 1, 1]} : vector<2x22x128xbf16> to vector<2x16x128xbf16>
    %205 = vector.extract_strided_slice %201 {offsets = [0, 3, 0], sizes = [2, 16, 128], strides = [1, 1, 1]} : vector<2x22x128xbf16> to vector<2x16x128xbf16>
    %206 = vector.extract_strided_slice %201 {offsets = [0, 4, 0], sizes = [2, 16, 128], strides = [1, 1, 1]} : vector<2x22x128xbf16> to vector<2x16x128xbf16>
    %207 = vector.extract_strided_slice %201 {offsets = [0, 5, 0], sizes = [2, 16, 128], strides = [1, 1, 1]} : vector<2x22x128xbf16> to vector<2x16x128xbf16>
    %208 = vector.extract_strided_slice %201 {offsets = [0, 6, 0], sizes = [2, 16, 128], strides = [1, 1, 1]} : vector<2x22x128xbf16> to vector<2x16x128xbf16>
    %209 = tpu.concatenate %202, %203, %204, %205, %206, %207, %208 in 2 : vector<2x16x128xbf16>, vector<2x16x128xbf16>, vector<2x16x128xbf16>, vector<2x16x128xbf16>, vector<2x16x128xbf16>, vector<2x16x128xbf16>, vector<2x16x128xbf16> -> vector<2x16x896xbf16>
    %210 = vector.shape_cast %209 : vector<2x16x896xbf16> to vector<32x896xbf16>
    %c0_195 = arith.constant 0 : index
    %c0_196 = arith.constant 0 : index
    %211 = vector.load %arg4[%c0_195, %c0_196] : memref<896x128xbf16, #tpu.memory_space<vmem>>, vector<896x128xbf16>
    %cst_197 = arith.constant dense<0.000000e+00> : vector<32x128xf32>
    %212 = tpu.matmul %210, %211, %cst_197 {dimension_numbers = #tpu.dot_dimension_numbers<[1], [0], [0], [1], [0, 0, 1, 1], [], []>} : vector<32x896xbf16>, vector<896x128xbf16>, vector<32x128xf32> -> vector<32x128xf32>
    %c11 = arith.constant 11 : index
    %c0_198 = arith.constant 0 : index
    %213 = vector.load %arg5[%c11, %c0_198] : memref<12x128xf32, #tpu.memory_space<vmem>>, vector<1x128xf32>
    %214 = vector.broadcast %213 : vector<1x128xf32> to vector<32x128xf32>
    %215 = arith.addf %212, %214 : vector<32x128xf32>
    %216 = math.tanh %215 : vector<32x128xf32>
    %217 = vector.shape_cast %216 : vector<32x128xf32> to vector<2x16x128xf32>
    %c0_199 = arith.constant 0 : index
    %c0_200 = arith.constant 0 : index
    %c0_201 = arith.constant 0 : index
    %218 = vector.load %arg6[%c0_199, %c0_200, %c0_201] : memref<2x16x128xf32, #tpu.memory_space<vmem>>, vector<2x16x128xf32>
    tpu.vector_store %arg6[%c0_199, %c0_200, %c0_201], %217 {strides = array<i32>} : memref<2x16x128xf32, #tpu.memory_space<vmem>>, vector<2x16x128xf32>,
    return
  }
  func.func @transform_0(%arg0: i32) -> (i32, i32, i32) {
    %c0_i32 = arith.constant 0 : i32
    %c0_i32_0 = arith.constant 0 : i32
    %c0_i32_1 = arith.constant 0 : i32
    %c0_i32_2 = arith.constant 0 : i32
    return %c0_i32, %c0_i32_0, %c0_i32_1 : i32, i32, i32
  }
  func.func @transform_1(%arg0: i32) -> (i32, i32, i32) {
    %c0_i32 = arith.constant 0 : i32
    %c0_i32_0 = arith.constant 0 : i32
    %c0_i32_1 = arith.constant 0 : i32
    %c0_i32_2 = arith.constant 0 : i32
    return %c0_i32, %c0_i32_0, %c0_i32_1 : i32, i32, i32
  }
  func.func @transform_2(%arg0: i32) -> (i32, i32) {
    %c0_i32 = arith.constant 0 : i32
    %c0_i32_0 = arith.constant 0 : i32
    %c0_i32_1 = arith.constant 0 : i32
    return %c0_i32, %c0_i32_0 : i32, i32
  }
  func.func @transform_3(%arg0: i32) -> (i32, i32) {
    %c0_i32 = arith.constant 0 : i32
    %c0_i32_0 = arith.constant 0 : i32
    %c0_i32_1 = arith.constant 0 : i32
    return %c0_i32, %c0_i32_0 : i32, i32
  }
  func.func @transform_4(%arg0: i32) -> (i32, i32) {
    %c0_i32 = arith.constant 0 : i32
    %c0_i32_0 = arith.constant 0 : i32
    %c0_i32_1 = arith.constant 0 : i32
    return %c0_i32, %c0_i32_0 : i32, i32
  }
  func.func @transform_5(%arg0: i32) -> (i32, i32, i32) {
    %c0_i32 = arith.constant 0 : i32
    %c0_i32_0 = arith.constant 0 : i32
    %c0_i32_1 = arith.constant 0 : i32
    %c0_i32_2 = arith.constant 0 : i32
    return %c0_i32, %c0_i32_0, %c0_i32_1 : i32, i32, i32
  }
}

</mosaic_0001>

<bundles_post_ra>
// kernel: out_model_forward.1
= control target key start
LH: loop header
LB: loop body
LE: loop exit
PB: predicated region body
PF: predicated region fallthrough
CT: control target
= control target key end

     0   :  { %10 = vsyncpa [#allocation4], 0  ;;  %s5677_s18 = smov [#allocation3]   ;;  %s6131_s0 = inlined_call_operand.vmem [shape: f32[2,16,128], index: 0, kind: input, shape index: {}]   ;;  %s6132_s1 = inlined_call_operand.hbm [shape: bf16[10,384,128], index: 1, kind: input, shape index: {}]   ;;  %s6133_s2 = inlined_call_operand.vmem [shape: bf16[128,128], index: 2, kind: input, shape index: {}]   ;;  %s6134_s3 = inlined_call_operand.vmem [shape: bf16[896,128], index: 3, kind: input, shape index: {}]   ;;  %s6135_s4 = inlined_call_operand.vmem [shape: f32[12,128], index: 4, kind: input, shape index: {}]   ;;  %s6136_s5 = inlined_call_operand.vmem [shape: f32[2,16,128], index: 5, kind: output, shape index: {}]  }
   0x1   :  { %s18_s19 = sshll.u32 %s5677_s18, 4  ;;  %s19_s19 = int_to_ptr.vmem [resolvable:$true] %s18_s19 }
   0x2   :  { %s5663_s20 = scalar_lea.vmem %s19_s19, 30720  ;;  %p5668_p1 = scmp.lt.s32.totalorder %s19_s19, %s19_s19 }
   0x3   :  { %p5664_p0 = scmp.ne.s32.totalorder %s19_s19, %s5663_s20  ;;  %p5669_p2 = scmp.lt.s32.totalorder %s5663_s20, %s5663_s20 }
   0x5   :  { %p5670_p3 = por %p5669_p2, %p5668_p1 }
   0x7   :  { %p5671_p4 = pnand %p5670_p3, %p5664_p0 }
   0x9   :  { %5674 = shalt.err (!%p5671_p4)
}
   0xa   :  { %s5678_s21 = smov 64   ;;  %s5679_s22 = smov 4  }
   0xb   :  { %24 = dma.hbm_to_vmem [thread:$0]  %s6132_s1, 30720, %s19_s19, [#allocation4], %s5678_s21, %s5678_s21, %s5679_s22  }
   0xc   :  { %5675 = dma.done.wait [#allocation4], 30720  }
   0xd   :  { %5676 = vsyncadd [#allocation4], 4294936576  ;;  %v5680_v0 = vmov 0.0   ;;  %v5327_v1 = vld [vmem:[#allocation3 + $0x78] sm:$0xff]   ;;  %v5330_v4 = vld [vmem:[#allocation3 + $0x70] sm:$0xff]  }
   0xe   :  { %35 = vst [vmem:[#allocation2] sm:$0xff] %v5680_v0  ;;  %36 = vst [vmem:[#allocation2 + $0x8] sm:$0xff] %v5680_v0  ;;  %v5328_v2 = vld [vmem:[#allocation3 + $0xb8] sm:$0xff]   ;;  %4599 = vmatprep.subr.bf16.mxu0 %v5327_v1  ;;  %v5331_v5 = vld [vmem:[#allocation3 + $0xb0] sm:$0xff]  }
   0xf   :  { %37 = vst [vmem:[#allocation2 + $0x10] sm:$0x3] %v5680_v0  ;;  %38 = vst [vmem:[#allocation2 + $0x18] sm:$0xff] %v5680_v0  ;;  %v5329_v3 = vld [vmem:[#allocation3 + $0x38] sm:$0xff]   ;;  %5083 = vmatprep.subr.bf16.mxu1 %v5328_v2  ;;  %v5332_v6 = vld [vmem:[#allocation3 + $0x30] sm:$0xff]  }
  0x10   :  { %39 = vst [vmem:[#allocation2 + $0x20] sm:$0xff] %v5680_v0  ;;  %40 = vst [vmem:[#allocation2 + $0x28] sm:$0x3] %v5680_v0  ;;  %4600 = vmatpush3.bf16.msra.mxu0 %v5329_v3  ;;  %5084 = vmatpush3.bf16.msra.mxu1 %v5328_v2  ;;  %v5333_v7 = vld [vmem:[#allocation3 + $0x68] sm:$0xff]   ;;  %v5336_v10 = vld [vmem:[#allocation3 + $0x60] sm:$0xff]  }
  0x11   :  { %4601 = vmatprep.subr.bf16.mxu0 %v5330_v4  ;;  %5085 = vmatprep.subr.bf16.mxu1 %v5331_v5  ;;  %v5334_v8 = vld [vmem:[#allocation3 + $0xa8] sm:$0xff]   ;;  %v5337_v11 = vld [vmem:[#allocation3 + $0xa0] sm:$0xff]   ;;  %v5339_v13 = vld [vmem:[#allocation3 + $0x58] sm:$0xff]  }
  0x12   :  { %v5335_v9 = vld [vmem:[#allocation3 + $0x28] sm:$0xff]   ;;  %v5338_v12 = vld [vmem:[#allocation3 + $0x20] sm:$0xff]   ;;  %v5340_v14 = vld [vmem:[#allocation3 + $0x98] sm:$0xff]  }
  0x13   :  { %v5341_v15 = vld [vmem:[#allocation3 + $0x18] sm:$0xff]   ;;  %v5342_v16 = vld [vmem:[#allocation3 + $0x50] sm:$0xff]   ;;  %v5345_v19 = vld [vmem:[#allocation3 + $0x48] sm:$0xff]  }
  0x14   :  { %4602 = vmatpush3.bf16.msra.mxu0 %v5332_v6  ;;  %5086 = vmatpush3.bf16.msra.mxu1 %v5331_v5  ;;  %v5343_v17 = vld [vmem:[#allocation3 + $0x90] sm:$0xff]   ;;  %v5346_v20 = vld [vmem:[#allocation3 + $0x88] sm:$0xff]   ;;  %v5348_v22 = vld [vmem:[#allocation3 + $0x40] sm:$0xff]  }
  0x15   :  { %4603 = vmatprep.subr.bf16.mxu0 %v5333_v7  ;;  %5087 = vmatprep.subr.bf16.mxu1 %v5334_v8  ;;  %v5344_v18 = vld [vmem:[#allocation3 + $0x10] sm:$0xff]   ;;  %v5347_v21 = vld [vmem:[#allocation3 + $0x8] sm:$0xff]   ;;  %v5349_v23 = vld [vmem:[#allocation3 + $0x80] sm:$0xff]  }
  0x16   :  { %v41_v24 = vld [vmem:[%s6131_s0] sm:$0xff]  ;;  %v42_v25 = vld [vmem:[%s6131_s0 + $0x8] sm:$0xff]  ;;  %v43_v26 = vld [vmem:[%s6131_s0 + $0x10] sm:$0xff] }
  0x17   :  { %v44_v27 = vld [vmem:[%s6131_s0 + $0x18] sm:$0xff]  ;;  %45 = vst [vmem:[#allocation2 + $0x1] sm:$0xff] %v41_v24  ;;  %46 = vst [vmem:[#allocation2 + $0x9] sm:$0xff] %v42_v25  ;;  %v62_v28 = vpack.c.bf16 %v42_v25, %v41_v24  ;;  %v5350_v29 = vld [vmem:[#allocation3] sm:$0xff]  }
  0x18   :  { %4604 = vmatpush3.bf16.msra.mxu0 %v5335_v9  ;;  %5088 = vmatpush3.bf16.msra.mxu1 %v5334_v8  ;;  %47 = vst [vmem:[#allocation2 + $0x19] sm:$0xff] %v43_v26  ;;  %48 = vst [vmem:[#allocation2 + $0x21] sm:$0xff] %v44_v27  ;;  %v5351_v30 = vld [vmem:[#allocation3 + $0x138] sm:$0xff]   ;;  %v65_v37 = vpack.c.bf16 %v44_v27, %v43_v26  ;;  %v5353_v41 = vld [vmem:[#allocation3 + $0x130] sm:$0xff]  }
  0x19   :  { %4605 = vmatprep.subr.bf16.mxu0 %v5336_v10  ;;  %5089 = vmatprep.subr.bf16.mxu1 %v5337_v11  ;;  %v5352_v38 = vld [vmem:[#allocation3 + $0xf8] sm:$0xff]   ;;  %v5354_v46 = vld [vmem:[#allocation3 + $0xf0] sm:$0xff]   ;;  %v5356_v48 = vld [vmem:[#allocation3 + $0x128] sm:$0xff]  }
  0x1a   :  { %296 = vmatprep.mubr.bf16.mxu0 %v62_v28  ;;  %v5355_v47 = vld [vmem:[#allocation3 + $0x178] sm:$0xff]   ;;  %v5357_v49 = vld [vmem:[#allocation3 + $0xe8] sm:$0xff]   ;;  %v5358_v50 = vld [vmem:[#allocation3 + $0x170] sm:$0xff]  }
  0x1b   :  { %v5359_v51 = vld [vmem:[#allocation3 + $0x120] sm:$0xff]   ;;  %v5361_v53 = vld [vmem:[#allocation3 + $0x168] sm:$0xff]   ;;  %v5362_v54 = vld [vmem:[#allocation3 + $0x118] sm:$0xff]  }
  0x1c   :  { %4606 = vmatpush3.bf16.msra.mxu0 %v5338_v12  ;;  %5090 = vmatpush3.bf16.msra.mxu1 %v5337_v11  ;;  %v5360_v52 = vld [vmem:[#allocation3 + $0xe0] sm:$0xff]   ;;  %v5363_v55 = vld [vmem:[#allocation3 + $0xd8] sm:$0xff]   ;;  %v5365_v57 = vld [vmem:[#allocation3 + $0x110] sm:$0xff]  }
  0x1d   :  { %4607 = vmatprep.subr.bf16.mxu0 %v5339_v13  ;;  %5091 = vmatprep.subr.bf16.mxu1 %v5340_v14  ;;  %v5364_v56 = vld [vmem:[#allocation3 + $0x160] sm:$0xff]   ;;  %v5366_v58 = vld [vmem:[#allocation3 + $0xd0] sm:$0xff]   ;;  %v5367_v59 = vld [vmem:[#allocation3 + $0x158] sm:$0xff]  }
  0x1e   :  { %v50_v31 = vld [vmem:[#allocation2 + $0x8] sm:$0xff]  ;;  %v49_v36 = vld [vmem:[#allocation2] sm:$0xff]  ;;  %v5368_v60 = vld [vmem:[#allocation3 + $0x108] sm:$0xff]  }
  0x1f   :  { %v57_v32 = vld [vmem:[#allocation2 + $0x2] sm:$0xff]  ;;  %v58_v33 = vld [vmem:[#allocation2 + $0xa] sm:$0xff]  ;;  %v59_v34 = vld [vmem:[#allocation2 + $0x1a] sm:$0xff]  ;;  %v61_v39 = vpack.c.bf16 %v50_v31, %v49_v36 }
  0x20   :  { %4608 = vmatpush3.bf16.msra.mxu0 %v5341_v15  ;;  %5092 = vmatpush3.bf16.msra.mxu1 %v5340_v14  ;;  %v63_v35 = vpack.c.bf16 %v58_v33, %v57_v32  ;;  %v60_v40 = vld [vmem:[#allocation2 + $0x22] sm:$0xff]  ;;  %v51_v44 = vld [vmem:[#allocation2 + $0x18] sm:$0xff]  ;;  %v5371_v63 = vld [vmem:[#allocation3 + $0x100] sm:$0xff]  }
  0x21   :  { %4609 = vmatprep.subr.bf16.mxu0 %v5342_v16  ;;  %5093 = vmatprep.subr.bf16.mxu1 %v5343_v17  ;;  %v52_v42 = vld [vmem:[#allocation2 + $0x20] sm:$0xff]  ;;  %v66_v43 = vpack.c.bf16 %v60_v40, %v59_v34  ;;  %v5369_v61 = vld [vmem:[#allocation3 + $0xc8] sm:$0xff]   ;;  %v5372_v0 = vld [vmem:[#allocation3 + $0xc0] sm:$0xff]  }
  0x22   :  { %5099 = vmatprep.mubr.bf16.mxu1 %v63_v35  ;;  %v64_v45 = vpack.c.bf16 %v52_v42, %v51_v44  ;;  %v5370_v62 = vld [vmem:[#allocation3 + $0x150] sm:$0xff]   ;;  %v5373_v1 = vld [vmem:[#allocation3 + $0x148] sm:$0xff]   ;;  %v5374_v2 = vld [vmem:[#allocation3 + $0x140] sm:$0xff]  }
  0x23   :  { %v5375_v3 = vld [vmem:[#allocation3 + $0x1f8] sm:$0xff]   ;;  %v4279_v7 = vld [vmem:[%s6135_s4] ss:$0 sm:$0xff] }
  0x24   :  { %4610 = vmatpush3.bf16.msra.mxu0 %v5344_v18  ;;  %5094 = vmatpush3.bf16.msra.mxu1 %v5343_v17 }
  0x25   :  { %4611 = vmatprep.subr.bf16.mxu0 %v5345_v19  ;;  %5095 = vmatprep.subr.bf16.mxu1 %v5346_v20 }
  0x28   :  { %4612 = vmatpush3.bf16.msra.mxu0 %v5347_v21  ;;  %5096 = vmatpush3.bf16.msra.mxu1 %v5346_v20 }
  0x29   :  { %4613 = vmatprep.subr.bf16.mxu0 %v5348_v22  ;;  %5097 = vmatprep.subr.bf16.mxu1 %v5349_v23 }
  0x2c   :  { %4614 = vmatpush3.bf16.msra.mxu0 %v5350_v29  ;;  %5098 = vmatpush3.bf16.msra.mxu1 %v5349_v23 }
  0x2d   :  { %4637 = vmatprep.subr.bf16.mxu0 %v5351_v30  ;;  %5103 = vmatprep.subr.bf16.mxu1 %v5355_v47 }
  0x2f   :  { %297 = vmatmul.mubr.bf16.vlgmr.msra.gmra.mxu0 %v61_v39  ;;  %5100 = vmatmul.mubr.bf16.vlgmr.msra.gmra.mxu1 %v66_v43 }
  0x30   :  { %304 = vmatprep.mubr.bf16.mxu0 %v65_v37  ;;  %4638 = vmatpush3.bf16.msra.mxu0 %v5352_v38  ;;  %v5376_v38 = vld [vmem:[#allocation3 + $0x1b8] sm:$0xff]  }
  0x31   :  { %4639 = vmatprep.subr.bf16.mxu0 %v5353_v41  ;;  %5104 = vmatpush3.bf16.msra.mxu1 %v5355_v47 }
  0x32   :  { %5105 = vmatprep.subr.bf16.mxu1 %v5358_v50 }
  0x34   :  { %4640 = vmatpush3.bf16.msra.mxu0 %v5354_v46 }
  0x35   :  { %4641 = vmatprep.subr.bf16.mxu0 %v5356_v48  ;;  %5106 = vmatpush3.bf16.msra.mxu1 %v5358_v50 }
  0x36   :  { %5107 = vmatprep.subr.bf16.mxu1 %v5361_v53 }
  0x37   :  { %305 = vmatmul.mubr.bf16.gmra.mxu0 %v64_v45 }
  0x38   :  { %4642 = vmatpush3.bf16.msra.mxu0 %v5357_v49 }
  0x39   :  { %4643 = vmatprep.subr.bf16.mxu0 %v5359_v51  ;;  %5108 = vmatpush3.bf16.msra.mxu1 %v5361_v53  ;;  %v5378_v53 = vld [vmem:[#allocation3 + $0x238] sm:$0xff]  }
  0x3a   :  { %5109 = vmatprep.subr.bf16.mxu1 %v5364_v56 }
  0x3c   :  { %4644 = vmatpush3.bf16.msra.mxu0 %v5360_v52  ;;  %v5377_v52 = vld [vmem:[#allocation3 + $0x1f0] sm:$0xff]  }
  0x3d   :  { %4645 = vmatprep.subr.bf16.mxu0 %v5362_v54  ;;  %5110 = vmatpush3.bf16.msra.mxu1 %v5364_v56  ;;  %v5379_v54 = vld [vmem:[#allocation3 + $0x1b0] sm:$0xff]  }
  0x3e   :  { %5111 = vmatprep.subr.bf16.mxu1 %v5367_v59  ;;  %v5381_v56 = vld [vmem:[#allocation3 + $0x230] sm:$0xff]  }
  0x40   :  { %4646 = vmatpush3.bf16.msra.mxu0 %v5363_v55  ;;  %v5380_v55 = vld [vmem:[#allocation3 + $0x1e8] sm:$0xff]  }
  0x41   :  { %4647 = vmatprep.subr.bf16.mxu0 %v5365_v57  ;;  %5112 = vmatpush3.bf16.msra.mxu1 %v5367_v59  ;;  %v5382_v57 = vld [vmem:[#allocation3 + $0x1a8] sm:$0xff]  }
  0x42   :  { %5113 = vmatprep.subr.bf16.mxu1 %v5370_v62  ;;  %v5384_v59 = vld [vmem:[#allocation3 + $0x228] sm:$0xff]  }
  0x44   :  { %4648 = vmatpush3.bf16.msra.mxu0 %v5366_v58  ;;  %v5383_v58 = vld [vmem:[#allocation3 + $0x1e0] sm:$0xff]  }
  0x45   :  { %4649 = vmatprep.subr.bf16.mxu0 %v5368_v60  ;;  %5114 = vmatpush3.bf16.msra.mxu1 %v5370_v62  ;;  %v5385_v60 = vld [vmem:[#allocation3 + $0x1a0] sm:$0xff]  }
  0x46   :  { %5115 = vmatprep.subr.bf16.mxu1 %v5373_v1  ;;  %v5387_v62 = vld [vmem:[#allocation3 + $0x220] sm:$0xff]  }
  0x48   :  { %4650 = vmatpush3.bf16.msra.mxu0 %v5369_v61  ;;  %v5386_v61 = vld [vmem:[#allocation3 + $0x1d8] sm:$0xff]  }
  0x49   :  { %4651 = vmatprep.subr.bf16.mxu0 %v5371_v63  ;;  %5116 = vmatpush3.bf16.msra.mxu1 %v5373_v1  ;;  %v5388_v63 = vld [vmem:[#allocation3 + $0x198] sm:$0xff]  }
  0x4a   :  { %5117 = vmatprep.subr.bf16.mxu1 %v5374_v2  ;;  %v5390_v1 = vld [vmem:[#allocation3 + $0x218] sm:$0xff]  }
  0x4c   :  { %4652 = vmatpush3.bf16.msra.mxu0 %v5372_v0  ;;  %v5389_v0 = vld [vmem:[#allocation3 + $0x1d0] sm:$0xff]  }
  0x4d   :  { %5118 = vmatpush3.bf16.msra.mxu1 %v5374_v2  ;;  %4675 = vmatprep.subr.bf16.mxu0 %v5375_v3  ;;  %v5391_v2 = vld [vmem:[#allocation3 + $0x190] sm:$0xff]   ;;  %v5392_v3 = vld [vmem:[#allocation3 + $0x1c8] sm:$0xff]  }
  0x4e   :  { %5123 = vmatprep.subr.bf16.mxu1 %v5378_v53 }
  0xef   :  { %v4615_v4 = vpop.f32.mrf.mxu0  ;;  %v5101_v5 = vpop.f32.mrf.mxu1 }
  0xf1   :  { %v4616_v6 = vpop.f32.mrf.mxu0  ;;  %v347_v9 = vpop.f32.mrf.mxu1 }
  0xf2   :  { %v4617_v8 = vadd.f32 %v4616_v6, %v4615_v4  ;;  %v5393_v4 = vld [vmem:[#allocation3 + $0x210] sm:$0xff]   ;;  %v5395_v6 = vld [vmem:[#allocation3 + $0x1c0] sm:$0xff]  }
  0xf3   :  { %v4618_v10 = vpop.f32.mrf.mxu0  ;;  %v5102_v12 = vpop.f32.mrf.mxu1 }
  0xf4   :  { %v299_v11 = vadd.f32 %v4617_v8, %v4279_v7  ;;  %v5397_v8 = vld [vmem:[#allocation3 + $0x180] sm:$0xff]  }
  0xf5   :  { %v4619_v13 = vpop.f32.mrf.mxu0  ;;  %v350_v19 = vpop.f32.mrf.mxu1 }
  0xf6   :  { %v348_v14 = vadd.f32 %v347_v9, %v299_v11  ;;  %v4620_v15 = vadd.f32 %v4619_v13, %v4618_v10  ;;  %v5398_v9 = vld [vmem:[#allocation3 + $0x200] sm:$0xff]   ;;  %v5399_v10 = vld [vmem:[#allocation3 + $0x2b8] sm:$0xff]  }
  0xf7   :  { %v4621_v16 = vpop.f32.mrf.mxu0 }
  0xf8   :  { %vm362_vm0 = vcmp.gt.f32.partialorder %v348_v14, 0.0  ;;  %v366_v17 = vmul.f32 0.2, %v348_v14  ;;  %v302_v18 = vadd.f32 %v4620_v15, %v4279_v7 }
  0xf9   :  { %v4622_v20 = vpop.f32.mrf.mxu0 }
  0xfa   :  { %v5729_v21 = vsel %vm362_vm0, %v348_v14, %v366_v17  ;;  %v351_v22 = vadd.f32 %v350_v19, %v302_v18  ;;  %v4623_v23 = vadd.f32 %v4622_v20, %v4621_v16  ;;  %v4304_v16 = vld [vmem:[%s6135_s4 + $0x1] ss:$0 sm:$0xff]  ;;  %vm3470_vm0 = vcmask 1040384  }
  0xfb   :  { %374 = vst [vmem:[#allocation2 + $0x1] sm:$0xff] %v5729_v21  ;;  %v4624_v24 = vpop.f32.mrf.mxu0 }
  0xfc   :  { %vm363_vm1 = vcmp.gt.f32.partialorder %v351_v22, 0.0  ;;  %v367_v25 = vmul.f32 0.2, %v351_v22  ;;  %v307_v26 = vadd.f32 %v4623_v23, %v4279_v7 }
  0xfd   :  { %v4625_v27 = vpop.f32.mrf.mxu0 }
  0xfe   :  { %v5732_v28 = vsel %vm363_vm1, %v351_v22, %v367_v25  ;;  %v356_v29 = vadd.f32 %v5101_v5, %v307_v26  ;;  %v4626_v30 = vadd.f32 %v4625_v27, %v4624_v24  ;;  %v5394_v5 = vld [vmem:[#allocation3 + $0x188] sm:$0xff]   ;;  %vm3473_vm1 = vcmask 1041408  }
  0xff   :  { %375 = vst [vmem:[#allocation2 + $0x9] sm:$0xff] %v5732_v28  ;;  %v391_v31 = vpack.c.bf16 %v5732_v28, %v5729_v21 }
 0x100   :  { %vm364_vm2 = vcmp.gt.f32.partialorder %v356_v29, 0.0  ;;  %v368_v32 = vmul.f32 0.2, %v356_v29  ;;  %v310_v33 = vadd.f32 %v4626_v30, %v4279_v7  ;;  %v5396_v7 = vld [vmem:[#allocation3 + $0x208] sm:$0xff]  }
 0x101   :  { %626 = vmatprep.mubr.bf16.mxu0 %v391_v31 }
 0x102   :  { %v5737_v34 = vsel %vm364_vm2, %v356_v29, %v368_v32  ;;  %v359_v35 = vadd.f32 %v5102_v12, %v310_v33  ;;  %v378_v37 = vld [vmem:[#allocation2] sm:$0xff]  ;;  %vm3494_vm2 = vcmask 1042432  }
 0x103   :  { %376 = vst [vmem:[#allocation2 + $0x19] sm:$0xff] %v5737_v34 }
 0x104   :  { %vm365_vm3 = vcmp.gt.f32.partialorder %v359_v35, 0.0  ;;  %v369_v36 = vmul.f32 0.2, %v359_v35 }
 0x106   :  { %v379_v39 = vld [vmem:[#allocation2 + $0x8] sm:$0xff]  ;;  %v5740_v41 = vsel %vm365_vm3, %v359_v35, %v369_v36  ;;  %vm3521_vm3 = vsmask.f32 7424 }
 0x107   :  { %v386_v40 = vld [vmem:[#allocation2 + $0x2] sm:$0xff]  ;;  %v387_v42 = vld [vmem:[#allocation2 + $0xa] sm:$0xff]  ;;  %377 = vst [vmem:[#allocation2 + $0x21] sm:$0xff] %v5740_v41  ;;  %v390_v44 = vpack.c.bf16 %v379_v39, %v378_v37  ;;  %v394_v45 = vpack.c.bf16 %v5740_v41, %v5737_v34 }
 0x108   :  { %v392_v43 = vpack.c.bf16 %v387_v42, %v386_v40 }
 0x109   :  { %627 = vmatmul.mubr.bf16.vlgmr.msra.gmra.mxu0 %v390_v44 }
 0x10a   :  { %5119 = vmatprep.mubr.bf16.mxu1 %v392_v43  ;;  %634 = vmatprep.mubr.bf16.mxu0 %v394_v45  ;;  %v380_v46 = vld [vmem:[#allocation2 + $0x18] sm:$0xff] }
 0x10b   :  { %4676 = vmatpush3.bf16.msra.mxu0 %v5376_v38 }
 0x10c   :  { %4677 = vmatprep.subr.bf16.mxu0 %v5377_v52 }
 0x10e   :  { %v381_v47 = vld [vmem:[#allocation2 + $0x20] sm:$0xff] }
 0x10f   :  { %v388_v48 = vld [vmem:[#allocation2 + $0x1a] sm:$0xff]  ;;  %v389_v49 = vld [vmem:[#allocation2 + $0x22] sm:$0xff]  ;;  %v393_v51 = vpack.c.bf16 %v381_v47, %v380_v46  ;;  %4678 = vmatpush3.bf16.msra.mxu0 %v5379_v54 }
 0x110   :  { %v395_v50 = vpack.c.bf16 %v389_v49, %v388_v48  ;;  %4679 = vmatprep.subr.bf16.mxu0 %v5380_v55 }
 0x111   :  { %635 = vmatmul.mubr.bf16.gmra.mxu0 %v393_v51 }
 0x112   :  { %5120 = vmatmul.mubr.bf16.vlgmr.msra.gmra.mxu1 %v395_v50  ;;  %v5400_v50 = vld [vmem:[#allocation3 + $0x278] sm:$0xff]  }
 0x113   :  { %5124 = vmatpush3.bf16.msra.mxu1 %v5378_v53  ;;  %4680 = vmatpush3.bf16.msra.mxu0 %v5382_v57 }
 0x114   :  { %5125 = vmatprep.subr.bf16.mxu1 %v5381_v56  ;;  %4681 = vmatprep.subr.bf16.mxu0 %v5383_v58 }
 0x117   :  { %5126 = vmatpush3.bf16.msra.mxu1 %v5381_v56  ;;  %4682 = vmatpush3.bf16.msra.mxu0 %v5385_v60  ;;  %v5401_v56 = vld [vmem:[#allocation3 + $0x2b0] sm:$0xff]  }
 0x118   :  { %5127 = vmatprep.subr.bf16.mxu1 %v5384_v59  ;;  %4683 = vmatprep.subr.bf16.mxu0 %v5386_v61 }
 0x11b   :  { %5128 = vmatpush3.bf16.msra.mxu1 %v5384_v59  ;;  %4684 = vmatpush3.bf16.msra.mxu0 %v5388_v63 }
 0x11c   :  { %5129 = vmatprep.subr.bf16.mxu1 %v5387_v62  ;;  %4685 = vmatprep.subr.bf16.mxu0 %v5389_v0  ;;  %v5402_v0 = vld [vmem:[#allocation3 + $0x270] sm:$0xff]  }
 0x11f   :  { %5130 = vmatpush3.bf16.msra.mxu1 %v5387_v62  ;;  %4686 = vmatpush3.bf16.msra.mxu0 %v5391_v2  ;;  %v5404_v2 = vld [vmem:[#allocation3 + $0x2a8] sm:$0xff]  }
 0x120   :  { %5131 = vmatprep.subr.bf16.mxu1 %v5390_v1  ;;  %4687 = vmatprep.subr.bf16.mxu0 %v5392_v3  ;;  %v5405_v3 = vld [vmem:[#allocation3 + $0x268] sm:$0xff]  }
 0x123   :  { %5132 = vmatpush3.bf16.msra.mxu1 %v5390_v1  ;;  %4688 = vmatpush3.bf16.msra.mxu0 %v5394_v5  ;;  %v5403_v1 = vld [vmem:[#allocation3 + $0x2f8] sm:$0xff]   ;;  %v5407_v5 = vld [vmem:[#allocation3 + $0x2a0] sm:$0xff]  }
 0x124   :  { %5133 = vmatprep.subr.bf16.mxu1 %v5393_v4  ;;  %4689 = vmatprep.subr.bf16.mxu0 %v5395_v6  ;;  %v5408_v6 = vld [vmem:[#allocation3 + $0x260] sm:$0xff]  }
 0x127   :  { %5134 = vmatpush3.bf16.msra.mxu1 %v5393_v4  ;;  %4690 = vmatpush3.bf16.msra.mxu0 %v5397_v8  ;;  %v5406_v4 = vld [vmem:[#allocation3 + $0x2f0] sm:$0xff]   ;;  %v5410_v8 = vld [vmem:[#allocation3 + $0x298] sm:$0xff]  }
 0x128   :  { %5135 = vmatprep.subr.bf16.mxu1 %v5396_v7  ;;  %4713 = vmatprep.subr.bf16.mxu0 %v5399_v10  ;;  %v5412_v10 = vld [vmem:[#allocation3 + $0x2e0] sm:$0xff]  }
 0x12b   :  { %5136 = vmatpush3.bf16.msra.mxu1 %v5396_v7  ;;  %v5409_v7 = vld [vmem:[#allocation3 + $0x2e8] sm:$0xff]  }
 0x12c   :  { %5137 = vmatprep.subr.bf16.mxu1 %v5398_v9 }
 0x12f   :  { %5138 = vmatpush3.bf16.msra.mxu1 %v5398_v9  ;;  %v5411_v9 = vld [vmem:[#allocation3 + $0x258] sm:$0xff]  }
 0x130   :  { %5143 = vmatprep.subr.bf16.mxu1 %v5403_v1 }
 0x1c9   :  { %v4653_v11 = vpop.f32.mrf.mxu0 }
 0x1cb   :  { %v4654_v12 = vpop.f32.mrf.mxu0 }
 0x1cc   :  { %v4655_v14 = vadd.f32 %v4654_v12, %v4653_v11  ;;  %v5413_v11 = vld [vmem:[#allocation3 + $0x290] sm:$0xff]  }
 0x1cd   :  { %v4656_v13 = vpop.f32.mrf.mxu0  ;;  %v5414_v12 = vld [vmem:[#allocation3 + $0x250] sm:$0xff]  }
 0x1ce   :  { %v629_v20 = vadd.f32 %v4655_v14, %v4304_v16  ;;  %v5416_v14 = vld [vmem:[#allocation3 + $0x288] sm:$0xff]  }
 0x1cf   :  { %v4657_v15 = vpop.f32.mrf.mxu0 }
 0x1d0   :  { %v4658_v19 = vadd.f32 %v4657_v15, %v4656_v13  ;;  %v5415_v13 = vld [vmem:[#allocation3 + $0x2d8] sm:$0xff]   ;;  %v5417_v15 = vld [vmem:[#allocation3 + $0x248] sm:$0xff]  }
 0x1d1   :  { %v4659_v18 = vpop.f32.mrf.mxu0 }
 0x1d2   :  { %v5121_v17 = vpop.f32.mrf.mxu1  ;;  %v632_v31 = vadd.f32 %v4658_v19, %v4304_v16  ;;  %v5421_v19 = vld [vmem:[#allocation3 + $0x2c8] sm:$0xff]  }
 0x1d3   :  { %v4660_v23 = vpop.f32.mrf.mxu0 }
 0x1d4   :  { %v677_v22 = vpop.f32.mrf.mxu1  ;;  %v4661_v25 = vadd.f32 %v4660_v23, %v4659_v18  ;;  %v5420_v18 = vld [vmem:[#allocation3 + $0x240] sm:$0xff]  }
 0x1d5   :  { %v678_v24 = vadd.f32 %v677_v22, %v629_v20  ;;  %v4662_v27 = vpop.f32.mrf.mxu0  ;;  %v5422_v20 = vld [vmem:[#allocation3 + $0x2c0] sm:$0xff]   ;;  %v5423_v22 = vld [vmem:[%s6133_s2 + $0x38] sm:$0xff]  }
 0x1d6   :  { %v5122_v26 = vpop.f32.mrf.mxu1  ;;  %v637_v30 = vadd.f32 %v4661_v25, %v4304_v16  ;;  %v4329_v25 = vld [vmem:[%s6135_s4 + $0x2] ss:$0 sm:$0xff] }
 0x1d7   :  { %vm692_vm4 = vcmp.gt.f32.partialorder %v678_v24, 0.0  ;;  %v696_v29 = vmul.f32 0.2, %v678_v24  ;;  %v4663_v33 = vpop.f32.mrf.mxu0 }
 0x1d8   :  { %v680_v32 = vpop.f32.mrf.mxu1  ;;  %v686_v36 = vadd.f32 %v5121_v17, %v637_v30  ;;  %v4664_v38 = vadd.f32 %v4663_v33, %v4662_v27  ;;  %v5419_v17 = vld [vmem:[#allocation3 + $0x280] sm:$0xff]  }
 0x1d9   :  { %v5748_v35 = vsel %vm692_vm4, %v678_v24, %v696_v29  ;;  %v681_v37 = vadd.f32 %v680_v32, %v632_v31  ;;  %vm3552_vm4 = vcmask 1046528  }
 0x1da   :  { %704 = vst [vmem:[#allocation2 + $0x1] sm:$0xff] %v5748_v35  ;;  %vm694_vm5 = vcmp.gt.f32.partialorder %v686_v36, 0.0  ;;  %v698_v39 = vmul.f32 0.2, %v686_v36  ;;  %v640_v42 = vadd.f32 %v4664_v38, %v4304_v16  ;;  %v5418_v16 = vld [vmem:[#allocation3 + $0x2d0] sm:$0xff]  }
 0x1db   :  { %vm693_vm6 = vcmp.gt.f32.partialorder %v681_v37, 0.0  ;;  %v697_v40 = vmul.f32 0.2, %v681_v37 }
 0x1dc   :  { %v5751_v43 = vsel %vm694_vm5, %v686_v36, %v698_v39  ;;  %v689_v45 = vadd.f32 %v5122_v26, %v640_v42  ;;  %vm3561_vm5 = vsmask.f32 6400 }
 0x1dd   :  { %v5753_v44 = vsel %vm693_vm6, %v681_v37, %v697_v40  ;;  %706 = vst [vmem:[#allocation2 + $0x19] sm:$0xff] %v5751_v43  ;;  %vm3591_vm6 = vsmask.f32 5376 }
 0x1de   :  { %705 = vst [vmem:[#allocation2 + $0x9] sm:$0xff] %v5753_v44  ;;  %v721_v46 = vpack.c.bf16 %v5753_v44, %v5748_v35  ;;  %vm695_vm7 = vcmp.gt.f32.partialorder %v689_v45, 0.0  ;;  %v699_v47 = vmul.f32 0.2, %v689_v45 }
 0x1e0   :  { %956 = vmatprep.mubr.bf16.mxu0 %v721_v46  ;;  %v5759_v48 = vsel %vm695_vm7, %v689_v45, %v699_v47  ;;  %vm3608_vm7 = vcmask 1044480  }
 0x1e1   :  { %707 = vst [vmem:[#allocation2 + $0x21] sm:$0xff] %v5759_v48  ;;  %v708_v49 = vld [vmem:[#allocation2] sm:$0xff]  ;;  %v724_v57 = vpack.c.bf16 %v5759_v48, %v5751_v43 }
 0x1e4   :  { %v710_v62 = vld [vmem:[#allocation2 + $0x18] sm:$0xff] }
 0x1e5   :  { %v709_v51 = vld [vmem:[#allocation2 + $0x8] sm:$0xff] }
 0x1e6   :  { %v716_v52 = vld [vmem:[#allocation2 + $0x2] sm:$0xff]  ;;  %v717_v53 = vld [vmem:[#allocation2 + $0xa] sm:$0xff]  ;;  %v720_v55 = vpack.c.bf16 %v709_v51, %v708_v49 }
 0x1e7   :  { %v722_v54 = vpack.c.bf16 %v717_v53, %v716_v52 }
 0x1e8   :  { %957 = vmatmul.mubr.bf16.vlgmr.msra.gmra.mxu0 %v720_v55  ;;  %v718_v58 = vld [vmem:[#allocation2 + $0x1a] sm:$0xff]  ;;  %v719_v59 = vld [vmem:[#allocation2 + $0x22] sm:$0xff] }
 0x1e9   :  { %5139 = vmatprep.mubr.bf16.mxu1 %v722_v54  ;;  %964 = vmatprep.mubr.bf16.mxu0 %v724_v57  ;;  %v725_v60 = vpack.c.bf16 %v719_v59, %v718_v58  ;;  %v711_v61 = vld [vmem:[#allocation2 + $0x20] sm:$0xff] }
 0x1ea   :  { %4714 = vmatpush3.bf16.msra.mxu0 %v5400_v50  ;;  %v723_v63 = vpack.c.bf16 %v711_v61, %v710_v62 }
 0x1eb   :  { %4715 = vmatprep.subr.bf16.mxu0 %v5401_v56  ;;  %5140 = vmatmul.mubr.bf16.vlgmr.msra.gmra.mxu1 %v725_v60 }
 0x1ec   :  { %5144 = vmatpush3.bf16.msra.mxu1 %v5403_v1 }
 0x1ed   :  { %5145 = vmatprep.subr.bf16.mxu1 %v5406_v4 }
 0x1ee   :  { %4716 = vmatpush3.bf16.msra.mxu0 %v5402_v0 }
 0x1ef   :  { %4717 = vmatprep.subr.bf16.mxu0 %v5404_v2 }
 0x1f0   :  { %965 = vmatmul.mubr.bf16.gmra.mxu0 %v723_v63  ;;  %5146 = vmatpush3.bf16.msra.mxu1 %v5406_v4 }
 0x1f1   :  { %5147 = vmatprep.subr.bf16.mxu1 %v5409_v7 }
 0x1f2   :  { %4718 = vmatpush3.bf16.msra.mxu0 %v5405_v3 }
 0x1f3   :  { %4719 = vmatprep.subr.bf16.mxu0 %v5407_v5 }
 0x1f4   :  { %5148 = vmatpush3.bf16.msra.mxu1 %v5409_v7  ;;  %v5424_v7 = vld [vmem:[%s6133_s2 + $0x30] sm:$0xff]  }
 0x1f5   :  { %5149 = vmatprep.subr.bf16.mxu1 %v5412_v10 }
 0x1f6   :  { %4720 = vmatpush3.bf16.msra.mxu0 %v5408_v6 }
 0x1f7   :  { %4721 = vmatprep.subr.bf16.mxu0 %v5410_v8 }
 0x1f8   :  { %5150 = vmatpush3.bf16.msra.mxu1 %v5412_v10 }
 0x1f9   :  { %5151 = vmatprep.subr.bf16.mxu1 %v5415_v13 }
 0x1fa   :  { %4722 = vmatpush3.bf16.msra.mxu0 %v5411_v9 }
 0x1fb   :  { %4723 = vmatprep.subr.bf16.mxu0 %v5413_v11 }
 0x1fc   :  { %5152 = vmatpush3.bf16.msra.mxu1 %v5415_v13 }
 0x1fd   :  { %5153 = vmatprep.subr.bf16.mxu1 %v5418_v16 }
 0x1fe   :  { %4724 = vmatpush3.bf16.msra.mxu0 %v5414_v12 }
 0x1ff   :  { %4725 = vmatprep.subr.bf16.mxu0 %v5416_v14  ;;  %v5425_v14 = vld [vmem:[%s6133_s2 + $0x28] sm:$0xff]  }
 0x200   :  { %5154 = vmatpush3.bf16.msra.mxu1 %v5418_v16  ;;  %v5427_v16 = vld [vmem:[%s6133_s2 + $0x18] sm:$0xff]  }
 0x201   :  { %5155 = vmatprep.subr.bf16.mxu1 %v5421_v19 }
 0x202   :  { %4726 = vmatpush3.bf16.msra.mxu0 %v5417_v15  ;;  %v5426_v15 = vld [vmem:[%s6133_s2 + $0x20] sm:$0xff]  }
 0x203   :  { %4727 = vmatprep.subr.bf16.mxu0 %v5419_v17  ;;  %v5428_v17 = vld [vmem:[%s6133_s2 + $0x10] sm:$0xff]  }
 0x204   :  { %5156 = vmatpush3.bf16.msra.mxu1 %v5421_v19  ;;  %v5430_v19 = vld [vmem:[%s6133_s2] sm:$0xff]  }
 0x205   :  { %5157 = vmatprep.subr.bf16.mxu1 %v5422_v20 }
 0x206   :  { %4728 = vmatpush3.bf16.msra.mxu0 %v5420_v18  ;;  %v5429_v18 = vld [vmem:[%s6133_s2 + $0x8] sm:$0xff]  }
 0x207   :  { %5163 = vmatprep.subr.bf16.mxu0 %v5423_v22 }
 0x208   :  { %5158 = vmatpush3.bf16.msra.mxu1 %v5422_v20 }
 0x2a8   :  { %v4691_v23 = vpop.f32.mrf.mxu0 }
 0x2aa   :  { %v4692_v24 = vpop.f32.mrf.mxu0 }
 0x2ab   :  { %v4693_v26 = vadd.f32 %v4692_v24, %v4691_v23  ;;  %v5141_v29 = vpop.f32.mrf.mxu1 }
 0x2ac   :  { %v4694_v27 = vpop.f32.mrf.mxu0 }
 0x2ad   :  { %v959_v30 = vadd.f32 %v4693_v26, %v4329_v25  ;;  %v1007_v33 = vpop.f32.mrf.mxu1 }
 0x2ae   :  { %v4695_v31 = vpop.f32.mrf.mxu0 }
 0x2af   :  { %v4696_v32 = vadd.f32 %v4695_v31, %v4694_v27  ;;  %v1008_v36 = vadd.f32 %v1007_v33, %v959_v30  ;;  %v5142_v38 = vpop.f32.mrf.mxu1 }
 0x2b0   :  { %v4697_v37 = vpop.f32.mrf.mxu0 }
 0x2b1   :  { %v962_v39 = vadd.f32 %v4696_v32, %v4329_v25  ;;  %vm1022_vm8 = vcmp.gt.f32.partialorder %v1008_v36, 0.0  ;;  %v1026_v40 = vmul.f32 0.2, %v1008_v36  ;;  %v1010_v46 = vpop.f32.mrf.mxu1 }
 0x2b2   :  { %v4698_v42 = vpop.f32.mrf.mxu0 }
 0x2b3   :  { %v4699_v45 = vadd.f32 %v4698_v42, %v4697_v37  ;;  %v5770_v47 = vsel %vm1022_vm8, %v1008_v36, %v1026_v40  ;;  %v1011_v49 = vadd.f32 %v1010_v46, %v962_v39  ;;  %vm3582_vm8 = vcmask 1045504  }
 0x2b4   :  { %v4700_v50 = vpop.f32.mrf.mxu0  ;;  %1034 = vst [vmem:[#allocation2 + $0x1] sm:$0xff] %v5770_v47 }
 0x2b5   :  { %v967_v51 = vadd.f32 %v4699_v45, %v4329_v25  ;;  %vm1023_vm9 = vcmp.gt.f32.partialorder %v1011_v49, 0.0  ;;  %v1027_v52 = vmul.f32 0.2, %v1011_v49 }
 0x2b6   :  { %v4701_v53 = vpop.f32.mrf.mxu0 }
 0x2b7   :  { %v1016_v54 = vadd.f32 %v5141_v29, %v967_v51  ;;  %v4702_v55 = vadd.f32 %v4701_v53, %v4700_v50  ;;  %v5773_v56 = vsel %vm1023_vm9, %v1011_v49, %v1027_v52 }
 0x2b8   :  { %1035 = vst [vmem:[#allocation2 + $0x9] sm:$0xff] %v5773_v56  ;;  %v1051_v59 = vpack.c.bf16 %v5773_v56, %v5770_v47 }
 0x2b9   :  { %vm1024_vm10 = vcmp.gt.f32.partialorder %v1016_v54, 0.0  ;;  %v1028_v57 = vmul.f32 0.2, %v1016_v54  ;;  %v970_v58 = vadd.f32 %v4702_v55, %v4329_v25  ;;  %v4354_v25 = vld [vmem:[%s6135_s4 + $0x3] ss:$0 sm:$0xff] }
 0x2ba   :  { %1286 = vmatprep.mubr.bf16.mxu0 %v1051_v59 }
 0x2bb   :  { %v5778_v60 = vsel %vm1024_vm10, %v1016_v54, %v1028_v57  ;;  %v1019_v61 = vadd.f32 %v5142_v38, %v970_v58  ;;  %v1038_v0 = vld [vmem:[#allocation2] sm:$0xff] }
 0x2bc   :  { %1036 = vst [vmem:[#allocation2 + $0x19] sm:$0xff] %v5778_v60 }
 0x2bd   :  { %vm1025_vm11 = vcmp.gt.f32.partialorder %v1019_v61, 0.0  ;;  %v1029_v62 = vmul.f32 0.2, %v1019_v61 }
 0x2bf   :  { %v5781_v63 = vsel %vm1025_vm11, %v1019_v61, %v1029_v62  ;;  %v1046_v1 = vld [vmem:[#allocation2 + $0x2] sm:$0xff]  ;;  %v1047_v2 = vld [vmem:[#allocation2 + $0xa] sm:$0xff] }
 0x2c0   :  { %1037 = vst [vmem:[#allocation2 + $0x21] sm:$0xff] %v5781_v63  ;;  %v1039_v3 = vld [vmem:[#allocation2 + $0x8] sm:$0xff]  ;;  %v1054_v4 = vpack.c.bf16 %v5781_v63, %v5778_v60  ;;  %v1052_v5 = vpack.c.bf16 %v1047_v2, %v1046_v1 }
 0x2c1   :  { %v1050_v6 = vpack.c.bf16 %v1039_v3, %v1038_v0  ;;  %v5431_v3 = vld [vmem:[#allocation3 + $0x378] sm:$0xff]  }
 0x2c2   :  { %5159 = vmatprep.mubr.bf16.mxu1 %v1052_v5  ;;  %v5433_v5 = vld [vmem:[#allocation3 + $0x338] sm:$0xff]   ;;  %4761 = vmatprep.subr.bf16.mxu1 %v5431_v3 }
 0x2c3   :  { %1287 = vmatmul.mubr.bf16.vlgmr.msra.gmra.mxu0 %v1050_v6  ;;  %v1040_v8 = vld [vmem:[#allocation2 + $0x18] sm:$0xff]  ;;  %v5434_v6 = vld [vmem:[#allocation3 + $0x370] sm:$0xff]  }
 0x2c4   :  { %1294 = vmatprep.mubr.bf16.mxu0 %v1054_v4  ;;  %5164 = vmatpush3.bf16.msra.mxu0 %v5423_v22  ;;  %v5432_v4 = vld [vmem:[#allocation3 + $0x3b8] sm:$0xff]  }
 0x2c5   :  { %5165 = vmatprep.subr.bf16.mxu0 %v5424_v7 }
 0x2c7   :  { %v1048_v9 = vld [vmem:[#allocation2 + $0x1a] sm:$0xff]  ;;  %v1049_v10 = vld [vmem:[#allocation2 + $0x22] sm:$0xff] }
 0x2c8   :  { %v1041_v11 = vld [vmem:[#allocation2 + $0x20] sm:$0xff]  ;;  %v1055_v12 = vpack.c.bf16 %v1049_v10, %v1048_v9  ;;  %5166 = vmatpush3.bf16.msra.mxu0 %v5424_v7  ;;  %v5437_v9 = vld [vmem:[#allocation3 + $0x368] sm:$0xff]  }
 0x2c9   :  { %v1053_v13 = vpack.c.bf16 %v1041_v11, %v1040_v8  ;;  %5167 = vmatprep.subr.bf16.mxu0 %v5425_v14  ;;  %v5435_v7 = vld [vmem:[#allocation3 + $0x3b0] sm:$0xff]   ;;  %v5438_v10 = vld [vmem:[#allocation3 + $0x3a8] sm:$0xff]  }
 0x2ca   :  { %5160 = vmatmul.mubr.bf16.vlgmr.msra.gmra.mxu1 %v1055_v12  ;;  %v5436_v8 = vld [vmem:[#allocation3 + $0x330] sm:$0xff]   ;;  %v5439_v11 = vld [vmem:[#allocation3 + $0x328] sm:$0xff]   ;;  %v5440_v12 = vld [vmem:[#allocation3 + $0x360] sm:$0xff]  }
 0x2cb   :  { %1295 = vmatmul.mubr.bf16.gmra.mxu0 %v1053_v13  ;;  %4762 = vmatpush3.bf16.msra.mxu1 %v5433_v5  ;;  %v5441_v13 = vld [vmem:[#allocation3 + $0x3a0] sm:$0xff]  }
 0x2cc   :  { %5168 = vmatpush3.bf16.msra.mxu0 %v5425_v14  ;;  %4763 = vmatprep.subr.bf16.mxu1 %v5434_v6  ;;  %v5442_v14 = vld [vmem:[#allocation3 + $0x320] sm:$0xff]  }
 0x2cd   :  { %5169 = vmatprep.subr.bf16.mxu0 %v5426_v15 }
 0x2cf   :  { %4764 = vmatpush3.bf16.msra.mxu1 %v5436_v8 }
 0x2d0   :  { %5170 = vmatpush3.bf16.msra.mxu0 %v5426_v15  ;;  %4765 = vmatprep.subr.bf16.mxu1 %v5437_v9  ;;  %v5443_v15 = vld [vmem:[#allocation3 + $0x358] sm:$0xff]  }
 0x2d1   :  { %5171 = vmatprep.subr.bf16.mxu0 %v5427_v16 }
 0x2d3   :  { %4766 = vmatpush3.bf16.msra.mxu1 %v5439_v11 }
 0x2d4   :  { %5172 = vmatpush3.bf16.msra.mxu0 %v5427_v16  ;;  %4767 = vmatprep.subr.bf16.mxu1 %v5440_v12  ;;  %v5444_v16 = vld [vmem:[#allocation3 + $0x398] sm:$0xff]  }
 0x2d5   :  { %5173 = vmatprep.subr.bf16.mxu0 %v5428_v17 }
 0x2d7   :  { %4768 = vmatpush3.bf16.msra.mxu1 %v5442_v14 }
 0x2d8   :  { %5174 = vmatpush3.bf16.msra.mxu0 %v5428_v17  ;;  %v5445_v17 = vld [vmem:[#allocation3 + $0x318] sm:$0xff]   ;;  %4769 = vmatprep.subr.bf16.mxu1 %v5443_v15 }
 0x2d9   :  { %5175 = vmatprep.subr.bf16.mxu0 %v5429_v18 }
 0x2db   :  { %4770 = vmatpush3.bf16.msra.mxu1 %v5445_v17 }
 0x2dc   :  { %5176 = vmatpush3.bf16.msra.mxu0 %v5429_v18  ;;  %v5446_v18 = vld [vmem:[#allocation3 + $0x350] sm:$0xff]  }
 0x2dd   :  { %5177 = vmatprep.subr.bf16.mxu0 %v5430_v19  ;;  %4771 = vmatprep.subr.bf16.mxu1 %v5446_v18 }
 0x2e0   :  { %5178 = vmatpush3.bf16.msra.mxu0 %v5430_v19  ;;  %v5447_v19 = vld [vmem:[#allocation3 + $0x390] sm:$0xff]  }
 0x2e1   :  { %5183 = vmatprep.subr.bf16.mxu0 %v5432_v4 }
 0x383   :  { %v4729_v20 = vpop.f32.mrf.mxu0 }
 0x385   :  { %v4730_v22 = vpop.f32.mrf.mxu0 }
 0x386   :  { %v4731_v23 = vadd.f32 %v4730_v22, %v4729_v20  ;;  %v5448_v20 = vld [vmem:[#allocation3 + $0x310] sm:$0xff]   ;;  %v5449_v22 = vld [vmem:[#allocation3 + $0x348] sm:$0xff]  }
 0x387   :  { %v4732_v24 = vpop.f32.mrf.mxu0  ;;  %4772 = vmatpush3.bf16.msra.mxu1 %v5448_v20  ;;  %v5457_v20 = vld [vmem:[#allocation3 + $0x430] sm:$0xff]  }
 0x388   :  { %v1289_v31 = vadd.f32 %v4731_v23, %v4354_v25  ;;  %v5450_v23 = vld [vmem:[#allocation3 + $0x388] sm:$0xff]   ;;  %4773 = vmatprep.subr.bf16.mxu1 %v5449_v22  ;;  %v5458_v22 = vld [vmem:[#allocation3 + $0x3f0] sm:$0xff]  }
 0x389   :  { %v4733_v26 = vpop.f32.mrf.mxu0 }
 0x38a   :  { %v5161_v27 = vpop.f32.mrf.mxu1  ;;  %v4734_v29 = vadd.f32 %v4733_v26, %v4732_v24  ;;  %v5451_v24 = vld [vmem:[#allocation3 + $0x308] sm:$0xff]   ;;  %v5453_v26 = vld [vmem:[#allocation3 + $0x380] sm:$0xff]  }
 0x38b   :  { %v4735_v30 = vpop.f32.mrf.mxu0  ;;  %4774 = vmatpush3.bf16.msra.mxu1 %v5451_v24  ;;  %v5460_v24 = vld [vmem:[#allocation3 + $0x428] sm:$0xff]  }
 0x38c   :  { %v1337_v32 = vpop.f32.mrf.mxu1  ;;  %v1292_v40 = vadd.f32 %v4734_v29, %v4354_v25  ;;  %v5455_v29 = vld [vmem:[#allocation3 + $0x438] sm:$0xff]  }
 0x38d   :  { %v1338_v33 = vadd.f32 %v1337_v32, %v1289_v31  ;;  %v4736_v36 = vpop.f32.mrf.mxu0 }
 0x38e   :  { %v4737_v37 = vadd.f32 %v4736_v36, %v4735_v30  ;;  %v5162_v38 = vpop.f32.mrf.mxu1  ;;  %v4379_v30 = vld [vmem:[%s6135_s4 + $0x4] ss:$0 sm:$0xff] }
 0x38f   :  { %v4738_v39 = vpop.f32.mrf.mxu0  ;;  %v1356_v46 = vmul.f32 0.2, %v1338_v33  ;;  %vm1352_vm12 = vcmp.gt.f32.partialorder %v1338_v33, 0.0 }
 0x390   :  { %v1297_v42 = vadd.f32 %v4737_v37, %v4354_v25  ;;  %v1340_v45 = vpop.f32.mrf.mxu1 }
 0x391   :  { %v1341_v49 = vadd.f32 %v1340_v45, %v1292_v40  ;;  %v4739_v50 = vpop.f32.mrf.mxu0  ;;  %v5810_v55 = vsel %vm1352_vm12, %v1338_v33, %v1356_v46 }
 0x392   :  { %v1346_v51 = vadd.f32 %v5161_v27, %v1297_v42  ;;  %v4740_v52 = vadd.f32 %v4739_v50, %v4738_v39  ;;  %v5454_v27 = vld [vmem:[#allocation3 + $0x300] sm:$0xff]  }
 0x393   :  { %vm1353_vm13 = vcmp.gt.f32.partialorder %v1341_v49, 0.0  ;;  %v1357_v53 = vmul.f32 0.2, %v1341_v49 }
 0x394   :  { %v1300_v54 = vadd.f32 %v4740_v52, %v4354_v25  ;;  %v1358_v58 = vmul.f32 0.2, %v1346_v51  ;;  %vm1354_vm14 = vcmp.gt.f32.partialorder %v1346_v51, 0.0  ;;  %v5452_v25 = vld [vmem:[#allocation3 + $0x340] sm:$0xff]  }
 0x395   :  { %v5812_v57 = vsel %vm1353_vm13, %v1341_v49, %v1357_v53  ;;  %4775 = vmatprep.subr.bf16.mxu1 %v5452_v25  ;;  %v5461_v25 = vld [vmem:[#allocation3 + $0x3e8] sm:$0xff]  }
 0x396   :  { %v1349_v59 = vadd.f32 %v5162_v38, %v1300_v54  ;;  %v1364_v61 = vpack.c.bf16 %v5812_v57, %v5810_v55  ;;  %v5816_v0 = vsel %vm1354_vm14, %v1346_v51, %v1358_v58  ;;  %4776 = vmatpush3.bf16.msra.mxu1 %v5454_v27  ;;  %v5463_v27 = vld [vmem:[#allocation3 + $0x420] sm:$0xff]  }
 0x397   :  { %4799 = vmatprep.subr.bf16.mxu1 %v5455_v29  ;;  %v5464_v29 = vld [vmem:[#allocation3 + $0x3e0] sm:$0xff]  }
 0x398   :  { %vm1355_vm15 = vcmp.gt.f32.partialorder %v1349_v59, 0.0  ;;  %v1359_v62 = vmul.f32 0.2, %v1349_v59  ;;  %5179 = vmatprep.mubr.bf16.mxu0 %v1364_v61 }
 0x39a   :  { %v5818_v1 = vsel %vm1355_vm15, %v1349_v59, %v1359_v62 }
 0x39b   :  { %v1365_v2 = vpack.c.bf16 %v5818_v1, %v5816_v0 }
 0x39d   :  { %5180 = vmatmul.mubr.bf16.vlgmr.msra.gmra.mxu0 %v1365_v2 }
 0x39e   :  { %5184 = vmatpush3.bf16.msra.mxu0 %v5432_v4 }
 0x39f   :  { %5185 = vmatprep.subr.bf16.mxu0 %v5435_v7 }
 0x3a2   :  { %5186 = vmatpush3.bf16.msra.mxu0 %v5435_v7 }
 0x3a3   :  { %5187 = vmatprep.subr.bf16.mxu0 %v5438_v10 }
 0x3a6   :  { %5188 = vmatpush3.bf16.msra.mxu0 %v5438_v10 }
 0x3a7   :  { %5189 = vmatprep.subr.bf16.mxu0 %v5441_v13 }
 0x3aa   :  { %5190 = vmatpush3.bf16.msra.mxu0 %v5441_v13 }
 0x3ab   :  { %5191 = vmatprep.subr.bf16.mxu0 %v5444_v16 }
 0x3ae   :  { %5192 = vmatpush3.bf16.msra.mxu0 %v5444_v16 }
 0x3af   :  { %5193 = vmatprep.subr.bf16.mxu0 %v5447_v19 }
 0x3b2   :  { %5194 = vmatpush3.bf16.msra.mxu0 %v5447_v19 }
 0x3b3   :  { %5195 = vmatprep.subr.bf16.mxu0 %v5450_v23 }
 0x3b6   :  { %5196 = vmatpush3.bf16.msra.mxu0 %v5450_v23  ;;  %v5459_v23 = vld [vmem:[#allocation3 + $0x478] sm:$0xff]  }
 0x3b7   :  { %5197 = vmatprep.subr.bf16.mxu0 %v5453_v26 }
 0x3ba   :  { %5198 = vmatpush3.bf16.msra.mxu0 %v5453_v26  ;;  %v5462_v26 = vld [vmem:[#allocation3 + $0x470] sm:$0xff]  }
 0x3bb   :  { %5203 = vmatprep.subr.bf16.mxu0 %v5459_v23 }
 0x45d   :  { %v5181_v31 = vpop.f32.mrf.mxu0 }
 0x45e   :  { %v1478_v32 = vadd.f32 %v5181_v31, %v4379_v30  ;;  %v5466_v31 = vld [vmem:[#allocation3 + $0x418] sm:$0xff]  }
 0x45f   :  { %v1469_v33 = vpop.f32.mrf.mxu0 }
 0x460   :  { %v4390_v36 = vmul.f32 -1.442695, %v1478_v32  ;;  %v1470_v37 = vadd.f32 %v4379_v30, %v1469_v33  ;;  %v5467_v32 = vld [vmem:[#allocation3 + $0x3d8] sm:$0xff]   ;;  %v5468_v33 = vld [vmem:[#allocation3 + $0x460] sm:$0xff]  }
 0x461   :  { %v5182_v38 = vpop.f32.mrf.mxu0 }
 0x462   :  { %5631 = vpow2.f32 %v4390_v36  ;;  %v4388_v39 = vmul.f32 -1.442695, %v1470_v37  ;;  %v1481_v40 = vadd.f32 %v5182_v38, %v4379_v30  ;;  %v5469_v36 = vld [vmem:[#allocation3 + $0x410] sm:$0xff]   ;;  %v5471_v38 = vld [vmem:[#allocation3 + $0x458] sm:$0xff]  }
 0x463   :  { %v1472_v42 = vpop.f32.mrf.mxu0  ;;  %v5470_v37 = vld [vmem:[#allocation3 + $0x3d0] sm:$0xff]  }
 0x464   :  { %5633 = vpow2.f32 %v4388_v39  ;;  %v4391_v45 = vmul.f32 -1.442695, %v1481_v40  ;;  %v1473_v46 = vadd.f32 %v4379_v30, %v1472_v42  ;;  %v5465_v30 = vld [vmem:[#allocation3 + $0x468] sm:$0xff]   ;;  %v5474_v42 = vld [vmem:[#allocation3 + $0x450] sm:$0xff]  }
 0x465   :  { %v5472_v39 = vld [vmem:[#allocation3 + $0x408] sm:$0xff]  }
 0x466   :  { %5635 = vpow2.f32 %v4391_v45  ;;  %v4389_v49 = vmul.f32 -1.442695, %v1473_v46  ;;  %v5473_v40 = vld [vmem:[#allocation3 + $0x3c8] sm:$0xff]   ;;  %v5475_v45 = vld [vmem:[#allocation3 + $0x400] sm:$0xff]  }
 0x467   :  { %v5476_v46 = vld [vmem:[#allocation3 + $0x3c0] sm:$0xff]  }
 0x468   :  { %5637 = vpow2.f32 %v4389_v49  ;;  %v5477_v49 = vld [vmem:[#allocation3 + $0x448] sm:$0xff]  }
 0x46f   :  { %v5632_v50 = vpop.eup %5631 }
 0x470   :  { %v1498_v51 = vadd.f32 1.0, %v5632_v50  ;;  %v5478_v50 = vld [vmem:[#allocation3 + $0x440] sm:$0xff]  }
 0x471   :  { %v5634_v52 = vpop.eup %5633 }
 0x472   :  { %5639 = vrcp.f32 %v1498_v51  ;;  %v1496_v53 = vadd.f32 1.0, %v5634_v52  ;;  %v5479_v51 = vld [vmem:[#allocation3 + $0x4f8] sm:$0xff]  }
 0x473   :  { %v5636_v54 = vpop.eup %5635 }
 0x474   :  { %5641 = vrcp.f32 %v1496_v53  ;;  %v1499_v58 = vadd.f32 1.0, %v5636_v54 }
 0x475   :  { %v5638_v59 = vpop.eup %5637 }
 0x476   :  { %5643 = vrcp.f32 %v1499_v58  ;;  %v1497_v61 = vadd.f32 1.0, %v5638_v59  ;;  %v4392_v58 = vld [vmem:[%s6135_s4 + $0x5] ss:$0 sm:$0xff] }
 0x478   :  { %5645 = vrcp.f32 %v1497_v61 }
 0x47f   :  { %v5640_v62 = vpop.eup %5639 }
 0x480   :  { %v1510_v2 = vmul.f32 %v5640_v62, %v5816_v0 }
 0x481   :  { %v5642_v3 = vpop.eup %5641 }
 0x482   :  { %1514 = vst [vmem:[#allocation2 + $0x19] sm:$0xff] %v1510_v2  ;;  %v1508_v4 = vmul.f32 %v5642_v3, %v5810_v55  ;;  %v5456_v55 = vld [vmem:[#allocation3 + $0x3f8] sm:$0xff]  }
 0x483   :  { %v5644_v5 = vpop.eup %5643 }
 0x484   :  { %1512 = vst [vmem:[#allocation2 + $0x1] sm:$0xff] %v1508_v4  ;;  %v1511_v6 = vmul.f32 %v5644_v5, %v5818_v1 }
 0x485   :  { %v5646_v7 = vpop.eup %5645 }
 0x486   :  { %1515 = vst [vmem:[#allocation2 + $0x21] sm:$0xff] %v1511_v6  ;;  %v1509_v8 = vmul.f32 %v5646_v7, %v5812_v57  ;;  %v1532_v18 = vpack.c.bf16 %v1511_v6, %v1510_v2 }
 0x488   :  { %1513 = vst [vmem:[#allocation2 + $0x9] sm:$0xff] %v1509_v8  ;;  %v1529_v9 = vpack.c.bf16 %v1509_v8, %v1508_v4 }
 0x489   :  { %v1518_v1 = vld [vmem:[#allocation2 + $0x18] sm:$0xff] }
 0x48a   :  { %1764 = vmatprep.mubr.bf16.mxu1 %v1529_v9 }
 0x48b   :  { %v1516_v10 = vld [vmem:[#allocation2] sm:$0xff] }
 0x48d   :  { %v1526_v11 = vld [vmem:[#allocation2 + $0x1a] sm:$0xff]  ;;  %v1527_v12 = vld [vmem:[#allocation2 + $0x22] sm:$0xff] }
 0x48e   :  { %v1533_v17 = vpack.c.bf16 %v1527_v12, %v1526_v11  ;;  %v1519_v57 = vld [vmem:[#allocation2 + $0x20] sm:$0xff] }
 0x48f   :  { %v1524_v13 = vld [vmem:[#allocation2 + $0x2] sm:$0xff]  ;;  %v1525_v0 = vld [vmem:[#allocation2 + $0xa] sm:$0xff]  ;;  %v1531_v19 = vpack.c.bf16 %v1519_v57, %v1518_v1 }
 0x490   :  { %v1517_v14 = vld [vmem:[#allocation2 + $0x8] sm:$0xff]  ;;  %v1530_v15 = vpack.c.bf16 %v1525_v0, %v1524_v13 }
 0x491   :  { %v1528_v16 = vpack.c.bf16 %v1517_v14, %v1516_v10 }
 0x492   :  { %5199 = vmatprep.mubr.bf16.mxu0 %v1530_v15 }
 0x493   :  { %1765 = vmatmul.mubr.bf16.vlgmr.msra.gmra.mxu1 %v1528_v16  ;;  %5200 = vmatmul.mubr.bf16.vlgmr.msra.gmra.mxu0 %v1533_v17 }
 0x494   :  { %1772 = vmatprep.mubr.bf16.mxu1 %v1532_v18  ;;  %4800 = vmatpush3.bf16.msra.mxu1 %v5456_v55 }
 0x495   :  { %4801 = vmatprep.subr.bf16.mxu1 %v5457_v20  ;;  %5204 = vmatpush3.bf16.msra.mxu0 %v5459_v23 }
 0x496   :  { %5205 = vmatprep.subr.bf16.mxu0 %v5462_v26 }
 0x498   :  { %4802 = vmatpush3.bf16.msra.mxu1 %v5458_v22 }
 0x499   :  { %4803 = vmatprep.subr.bf16.mxu1 %v5460_v24  ;;  %5206 = vmatpush3.bf16.msra.mxu0 %v5462_v26  ;;  %v5480_v26 = vld [vmem:[#allocation3 + $0x4b8] sm:$0xff]  }
 0x49a   :  { %5207 = vmatprep.subr.bf16.mxu0 %v5465_v30 }
 0x49b   :  { %1773 = vmatmul.mubr.bf16.gmra.mxu1 %v1531_v19 }
 0x49c   :  { %4804 = vmatpush3.bf16.msra.mxu1 %v5461_v25 }
 0x49d   :  { %4805 = vmatprep.subr.bf16.mxu1 %v5463_v27  ;;  %5208 = vmatpush3.bf16.msra.mxu0 %v5465_v30 }
 0x49e   :  { %5209 = vmatprep.subr.bf16.mxu0 %v5468_v33 }
 0x4a0   :  { %4806 = vmatpush3.bf16.msra.mxu1 %v5464_v29 }
 0x4a1   :  { %4807 = vmatprep.subr.bf16.mxu1 %v5466_v31  ;;  %5210 = vmatpush3.bf16.msra.mxu0 %v5468_v33 }
 0x4a2   :  { %5211 = vmatprep.subr.bf16.mxu0 %v5471_v38 }
 0x4a4   :  { %4808 = vmatpush3.bf16.msra.mxu1 %v5467_v32 }
 0x4a5   :  { %4809 = vmatprep.subr.bf16.mxu1 %v5469_v36  ;;  %5212 = vmatpush3.bf16.msra.mxu0 %v5471_v38 }
 0x4a6   :  { %5213 = vmatprep.subr.bf16.mxu0 %v5474_v42 }
 0x4a8   :  { %4810 = vmatpush3.bf16.msra.mxu1 %v5470_v37 }
 0x4a9   :  { %4811 = vmatprep.subr.bf16.mxu1 %v5472_v39  ;;  %5214 = vmatpush3.bf16.msra.mxu0 %v5474_v42  ;;  %v5483_v42 = vld [vmem:[#allocation3 + $0x4b0] sm:$0xff]  }
 0x4aa   :  { %5215 = vmatprep.subr.bf16.mxu0 %v5477_v49 }
 0x4ac   :  { %4812 = vmatpush3.bf16.msra.mxu1 %v5473_v40  ;;  %v5482_v40 = vld [vmem:[#allocation3 + $0x538] sm:$0xff]  }
 0x4ad   :  { %4813 = vmatprep.subr.bf16.mxu1 %v5475_v45  ;;  %5216 = vmatpush3.bf16.msra.mxu0 %v5477_v49  ;;  %v5484_v45 = vld [vmem:[#allocation3 + $0x4e8] sm:$0xff]  }
 0x4ae   :  { %5217 = vmatprep.subr.bf16.mxu0 %v5478_v50  ;;  %v5486_v49 = vld [vmem:[#allocation3 + $0x4a8] sm:$0xff]  }
 0x4b0   :  { %4814 = vmatpush3.bf16.msra.mxu1 %v5476_v46  ;;  %v5485_v46 = vld [vmem:[#allocation3 + $0x530] sm:$0xff]  }
 0x4b1   :  { %5218 = vmatpush3.bf16.msra.mxu0 %v5478_v50  ;;  %4837 = vmatprep.subr.bf16.mxu1 %v5479_v51  ;;  %v5487_v50 = vld [vmem:[#allocation3 + $0x4e0] sm:$0xff]   ;;  %v5488_v51 = vld [vmem:[#allocation3 + $0x528] sm:$0xff]  }
 0x4b2   :  { %5223 = vmatprep.subr.bf16.mxu0 %v5482_v40 }
 0x553   :  { %v4777_v52 = vpop.f32.mrf.mxu1  ;;  %v5201_v53 = vpop.f32.mrf.mxu0 }
 0x555   :  { %v4778_v54 = vpop.f32.mrf.mxu1  ;;  %v1815_v61 = vpop.f32.mrf.mxu0 }
 0x556   :  { %v4779_v59 = vadd.f32 %v4778_v54, %v4777_v52  ;;  %v5489_v52 = vld [vmem:[#allocation3 + $0x4a0] sm:$0xff]  }
 0x557   :  { %v4780_v62 = vpop.f32.mrf.mxu1  ;;  %v5202_v3 = vpop.f32.mrf.mxu0  ;;  %v5491_v54 = vld [vmem:[#allocation3 + $0x520] sm:$0xff]  }
 0x558   :  { %v1767_v2 = vadd.f32 %v4779_v59, %v4392_v58  ;;  %v5493_v59 = vld [vmem:[#allocation3 + $0x4d0] sm:$0xff]  }
 0x559   :  { %v4781_v4 = vpop.f32.mrf.mxu1  ;;  %v1818_v10 = vpop.f32.mrf.mxu0 }
 0x55a   :  { %v1816_v5 = vadd.f32 %v1815_v61, %v1767_v2  ;;  %v4782_v6 = vadd.f32 %v4781_v4, %v4780_v62  ;;  %v5494_v61 = vld [vmem:[#allocation3 + $0x518] sm:$0xff]   ;;  %v5495_v62 = vld [vmem:[#allocation3 + $0x490] sm:$0xff]   ;;  %v5496_v2 = vld [vmem:[#allocation3 + $0x4c8] sm:$0xff]  }
 0x55b   :  { %v4783_v7 = vpop.f32.mrf.mxu1  ;;  %v5498_v4 = vld [vmem:[#allocation3 + $0x488] sm:$0xff]  }
 0x55c   :  { %v1830_v8 = vmax.f32 %v1816_v5, 0.0  ;;  %v1770_v9 = vadd.f32 %v4782_v6, %v4392_v58  ;;  %v5499_v5 = vld [vmem:[#allocation3 + $0x4c0] sm:$0xff]   ;;  %v5500_v6 = vld [vmem:[#allocation3 + $0x508] sm:$0xff]  }
 0x55d   :  { %v4784_v11 = vpop.f32.mrf.mxu1 }
 0x55e   :  { %v1834_v12 = vadd.f32 %v1830_v8, %v5770_v47  ;;  %v1819_v13 = vadd.f32 %v1818_v10, %v1770_v9  ;;  %v4785_v0 = vadd.f32 %v4784_v11, %v4783_v7  ;;  %v5501_v7 = vld [vmem:[#allocation3 + $0x480] sm:$0xff]   ;;  %v5503_v9 = vld [vmem:[#allocation3 + $0x5b8] sm:$0xff]  }
 0x55f   :  { %v4786_v14 = vpop.f32.mrf.mxu1  ;;  %v5502_v8 = vld [vmem:[#allocation3 + $0x500] sm:$0xff]  }
 0x560   :  { %1838 = vst [vmem:[#allocation2 + $0x1] sm:$0xff] %v1834_v12  ;;  %v1831_v15 = vmax.f32 %v1819_v13, 0.0  ;;  %v1775_v16 = vadd.f32 %v4785_v0, %v4392_v58 }
 0x561   :  { %v4787_v55 = vpop.f32.mrf.mxu1 }
 0x562   :  { %v1835_v17 = vadd.f32 %v1831_v15, %v5773_v56  ;;  %v1824_v18 = vadd.f32 %v5201_v53, %v1775_v16  ;;  %v4788_v57 = vadd.f32 %v4787_v55, %v4786_v14  ;;  %v5490_v53 = vld [vmem:[#allocation3 + $0x4d8] sm:$0xff]   ;;  %v4417_v14 = vld [vmem:[%s6135_s4 + $0x6] ss:$0 sm:$0xff] }
 0x564   :  { %1839 = vst [vmem:[#allocation2 + $0x9] sm:$0xff] %v1835_v17  ;;  %v1832_v1 = vmax.f32 %v1824_v18, 0.0  ;;  %v1778_v19 = vadd.f32 %v4788_v57, %v4392_v58  ;;  %v1855_v20 = vpack.c.bf16 %v1835_v17, %v1834_v12  ;;  %v5492_v58 = vld [vmem:[#allocation3 + $0x498] sm:$0xff]  }
 0x566   :  { %v1836_v22 = vadd.f32 %v1832_v1, %v5778_v60  ;;  %v1827_v23 = vadd.f32 %v5202_v3, %v1778_v19  ;;  %2090 = vmatprep.mubr.bf16.mxu1 %v1855_v20  ;;  %v5497_v3 = vld [vmem:[#allocation3 + $0x510] sm:$0xff]  }
 0x567   :  { %v1842_v25 = vld [vmem:[#allocation2] sm:$0xff] }
 0x568   :  { %1840 = vst [vmem:[#allocation2 + $0x19] sm:$0xff] %v1836_v22  ;;  %v1833_v47 = vmax.f32 %v1827_v23, 0.0 }
 0x56a   :  { %v1837_v24 = vadd.f32 %v1833_v47, %v5781_v63  ;;  %v5481_v63 = vld [vmem:[#allocation3 + $0x4f0] sm:$0xff]  }
 0x56b   :  { %v1850_v27 = vld [vmem:[#allocation2 + $0x2] sm:$0xff]  ;;  %v1851_v29 = vld [vmem:[#allocation2 + $0xa] sm:$0xff] }
 0x56c   :  { %v1843_v30 = vld [vmem:[#allocation2 + $0x8] sm:$0xff]  ;;  %1841 = vst [vmem:[#allocation2 + $0x21] sm:$0xff] %v1837_v24  ;;  %v1856_v56 = vpack.c.bf16 %v1851_v29, %v1850_v27  ;;  %v1858_v32 = vpack.c.bf16 %v1837_v24, %v1836_v22 }
 0x56d   :  { %v1854_v31 = vpack.c.bf16 %v1843_v30, %v1842_v25 }
 0x56e   :  { %5219 = vmatprep.mubr.bf16.mxu0 %v1856_v56 }
 0x56f   :  { %2091 = vmatmul.mubr.bf16.vlgmr.msra.gmra.mxu1 %v1854_v31  ;;  %v1844_v60 = vld [vmem:[#allocation2 + $0x18] sm:$0xff] }
 0x570   :  { %2098 = vmatprep.mubr.bf16.mxu1 %v1858_v32  ;;  %4838 = vmatpush3.bf16.msra.mxu1 %v5480_v26 }
 0x571   :  { %4839 = vmatprep.subr.bf16.mxu1 %v5481_v63 }
 0x573   :  { %v1852_v33 = vld [vmem:[#allocation2 + $0x1a] sm:$0xff]  ;;  %v1853_v36 = vld [vmem:[#allocation2 + $0x22] sm:$0xff] }
 0x574   :  { %v1845_v37 = vld [vmem:[#allocation2 + $0x20] sm:$0xff]  ;;  %v1859_v38 = vpack.c.bf16 %v1853_v36, %v1852_v33  ;;  %4840 = vmatpush3.bf16.msra.mxu1 %v5483_v42 }
 0x575   :  { %v1857_v39 = vpack.c.bf16 %v1845_v37, %v1844_v60  ;;  %4841 = vmatprep.subr.bf16.mxu1 %v5484_v45 }
 0x576   :  { %5220 = vmatmul.mubr.bf16.vlgmr.msra.gmra.mxu0 %v1859_v38  ;;  %v5504_v38 = vld [vmem:[#allocation3 + $0x578] sm:$0xff]  }
 0x577   :  { %2099 = vmatmul.mubr.bf16.gmra.mxu1 %v1857_v39  ;;  %5224 = vmatpush3.bf16.msra.mxu0 %v5482_v40 }
 0x578   :  { %5225 = vmatprep.subr.bf16.mxu0 %v5485_v46  ;;  %4842 = vmatpush3.bf16.msra.mxu1 %v5486_v49 }
 0x579   :  { %4843 = vmatprep.subr.bf16.mxu1 %v5487_v50 }
 0x57b   :  { %5226 = vmatpush3.bf16.msra.mxu0 %v5485_v46 }
 0x57c   :  { %5227 = vmatprep.subr.bf16.mxu0 %v5488_v51  ;;  %4844 = vmatpush3.bf16.msra.mxu1 %v5489_v52 }
 0x57d   :  { %4845 = vmatprep.subr.bf16.mxu1 %v5490_v53 }
 0x57f   :  { %5228 = vmatpush3.bf16.msra.mxu0 %v5488_v51 }
 0x580   :  { %5229 = vmatprep.subr.bf16.mxu0 %v5491_v54  ;;  %4846 = vmatpush3.bf16.msra.mxu1 %v5492_v58  ;;  %v5505_v58 = vld [vmem:[#allocation3 + $0x5b0] sm:$0xff]  }
 0x581   :  { %4847 = vmatprep.subr.bf16.mxu1 %v5493_v59  ;;  %v5506_v59 = vld [vmem:[#allocation3 + $0x570] sm:$0xff]  }
 0x583   :  { %5230 = vmatpush3.bf16.msra.mxu0 %v5491_v54 }
 0x584   :  { %5231 = vmatprep.subr.bf16.mxu0 %v5494_v61  ;;  %4848 = vmatpush3.bf16.msra.mxu1 %v5495_v62  ;;  %v5508_v62 = vld [vmem:[#allocation3 + $0x5a8] sm:$0xff]  }
 0x585   :  { %4849 = vmatprep.subr.bf16.mxu1 %v5496_v2  ;;  %v5509_v2 = vld [vmem:[#allocation3 + $0x568] sm:$0xff]  }
 0x587   :  { %5232 = vmatpush3.bf16.msra.mxu0 %v5494_v61  ;;  %v5507_v61 = vld [vmem:[#allocation3 + $0x5f8] sm:$0xff]  }
 0x588   :  { %5233 = vmatprep.subr.bf16.mxu0 %v5497_v3  ;;  %4850 = vmatpush3.bf16.msra.mxu1 %v5498_v4  ;;  %v5511_v4 = vld [vmem:[#allocation3 + $0x5a0] sm:$0xff]  }
 0x589   :  { %4851 = vmatprep.subr.bf16.mxu1 %v5499_v5  ;;  %v5512_v5 = vld [vmem:[#allocation3 + $0x560] sm:$0xff]  }
 0x58b   :  { %5234 = vmatpush3.bf16.msra.mxu0 %v5497_v3  ;;  %v5510_v3 = vld [vmem:[#allocation3 + $0x5f0] sm:$0xff]  }
 0x58c   :  { %5235 = vmatprep.subr.bf16.mxu0 %v5500_v6  ;;  %4852 = vmatpush3.bf16.msra.mxu1 %v5501_v7  ;;  %v5514_v7 = vld [vmem:[#allocation3 + $0x598] sm:$0xff]  }
 0x58d   :  { %4875 = vmatprep.subr.bf16.mxu1 %v5503_v9  ;;  %v5516_v9 = vld [vmem:[#allocation3 + $0x5e0] sm:$0xff]  }
 0x58f   :  { %5236 = vmatpush3.bf16.msra.mxu0 %v5500_v6  ;;  %v5513_v6 = vld [vmem:[#allocation3 + $0x5e8] sm:$0xff]  }
 0x590   :  { %5237 = vmatprep.subr.bf16.mxu0 %v5502_v8 }
 0x593   :  { %5238 = vmatpush3.bf16.msra.mxu0 %v5502_v8  ;;  %v5515_v8 = vld [vmem:[#allocation3 + $0x558] sm:$0xff]  }
 0x594   :  { %5243 = vmatprep.subr.bf16.mxu0 %v5507_v61 }
 0x62f   :  { %v4815_v10 = vpop.f32.mrf.mxu1 }
 0x631   :  { %v4816_v11 = vpop.f32.mrf.mxu1 }
 0x632   :  { %v4817_v13 = vadd.f32 %v4816_v11, %v4815_v10  ;;  %v5517_v10 = vld [vmem:[#allocation3 + $0x590] sm:$0xff]  }
 0x633   :  { %v4818_v12 = vpop.f32.mrf.mxu1  ;;  %v5518_v11 = vld [vmem:[#allocation3 + $0x550] sm:$0xff]  }
 0x634   :  { %v2093_v17 = vadd.f32 %v4817_v13, %v4417_v14  ;;  %v5520_v13 = vld [vmem:[#allocation3 + $0x588] sm:$0xff]  }
 0x635   :  { %v4819_v0 = vpop.f32.mrf.mxu1 }
 0x636   :  { %v5221_v15 = vpop.f32.mrf.mxu0  ;;  %v4820_v55 = vadd.f32 %v4819_v0, %v4818_v12  ;;  %v5519_v12 = vld [vmem:[#allocation3 + $0x5d8] sm:$0xff]   ;;  %v5521_v0 = vld [vmem:[#allocation3 + $0x548] sm:$0xff]  }
 0x637   :  { %v4821_v16 = vpop.f32.mrf.mxu1 }
 0x638   :  { %v2141_v18 = vpop.f32.mrf.mxu0  ;;  %v2096_v24 = vadd.f32 %v4820_v55, %v4417_v14  ;;  %v5525_v55 = vld [vmem:[#allocation3 + $0x5c8] sm:$0xff]  }
 0x639   :  { %v4822_v57 = vpop.f32.mrf.mxu1  ;;  %v2142_v1 = vadd.f32 %v2141_v18, %v2093_v17  ;;  %v5526_v17 = vld [vmem:[#allocation3 + $0x5c0] sm:$0xff]   ;;  %v5527_v18 = vld [vmem:[#allocation3 + $0x678] sm:$0xff]  }
 0x63a   :  { %v4823_v19 = vadd.f32 %v4822_v57, %v4821_v16  ;;  %v5222_v20 = vpop.f32.mrf.mxu0  ;;  %v5524_v16 = vld [vmem:[#allocation3 + $0x540] sm:$0xff]  }
 0x63b   :  { %v4824_v22 = vpop.f32.mrf.mxu1  ;;  %v2156_v23 = vmax.f32 %v2142_v1, 0.0 }
 0x63c   :  { %v2101_v47 = vadd.f32 %v4823_v19, %v4417_v14  ;;  %v2144_v25 = vpop.f32.mrf.mxu0  ;;  %v4442_v19 = vld [vmem:[%s6135_s4 + $0x7] ss:$0 sm:$0xff] }
 0x63d   :  { %v4825_v26 = vpop.f32.mrf.mxu1  ;;  %2160 = vst [vmem:[#allocation2 + $0x1] sm:$0xff] %v2156_v23  ;;  %v2145_v29 = vadd.f32 %v2144_v25, %v2096_v24 }
 0x63e   :  { %v2150_v27 = vadd.f32 %v5221_v15, %v2101_v47  ;;  %v4826_v30 = vadd.f32 %v4825_v26, %v4824_v22  ;;  %v5523_v15 = vld [vmem:[#allocation3 + $0x580] sm:$0xff]  }
 0x63f   :  { %v2157_v31 = vmax.f32 %v2145_v29, 0.0 }
 0x640   :  { %v2158_v56 = vmax.f32 %v2150_v27, 0.0  ;;  %v2104_v32 = vadd.f32 %v4826_v30, %v4417_v14  ;;  %v5522_v14 = vld [vmem:[#allocation3 + $0x5d0] sm:$0xff]  }
 0x641   :  { %2161 = vst [vmem:[#allocation2 + $0x9] sm:$0xff] %v2157_v31  ;;  %v2177_v33 = vpack.c.bf16 %v2157_v31, %v2156_v23 }
 0x642   :  { %2162 = vst [vmem:[#allocation2 + $0x19] sm:$0xff] %v2158_v56  ;;  %v2153_v60 = vadd.f32 %v5222_v20, %v2104_v32 }
 0x643   :  { %2412 = vmatprep.mubr.bf16.mxu1 %v2177_v33 }
 0x644   :  { %v2159_v36 = vmax.f32 %v2153_v60, 0.0  ;;  %v2164_v37 = vld [vmem:[#allocation2] sm:$0xff] }
 0x646   :  { %2163 = vst [vmem:[#allocation2 + $0x21] sm:$0xff] %v2159_v36  ;;  %v2180_v46 = vpack.c.bf16 %v2159_v36, %v2158_v56 }
 0x648   :  { %v2172_v39 = vld [vmem:[#allocation2 + $0x2] sm:$0xff]  ;;  %v2173_v63 = vld [vmem:[#allocation2 + $0xa] sm:$0xff] }
 0x649   :  { %v2165_v40 = vld [vmem:[#allocation2 + $0x8] sm:$0xff]  ;;  %v2178_v42 = vpack.c.bf16 %v2173_v63, %v2172_v39  ;;  %v2166_v53 = vld [vmem:[#allocation2 + $0x18] sm:$0xff] }
 0x64a   :  { %v2176_v45 = vpack.c.bf16 %v2165_v40, %v2164_v37 }
 0x64b   :  { %5239 = vmatprep.mubr.bf16.mxu0 %v2178_v42 }
 0x64c   :  { %2413 = vmatmul.mubr.bf16.vlgmr.msra.gmra.mxu1 %v2176_v45 }
 0x64d   :  { %2420 = vmatprep.mubr.bf16.mxu1 %v2180_v46  ;;  %v2174_v49 = vld [vmem:[#allocation2 + $0x1a] sm:$0xff]  ;;  %v2175_v50 = vld [vmem:[#allocation2 + $0x22] sm:$0xff]  ;;  %4876 = vmatpush3.bf16.msra.mxu1 %v5504_v38 }
 0x64e   :  { %v2181_v51 = vpack.c.bf16 %v2175_v50, %v2174_v49  ;;  %v2167_v52 = vld [vmem:[#allocation2 + $0x20] sm:$0xff]  ;;  %4877 = vmatprep.subr.bf16.mxu1 %v5505_v58 }
 0x64f   :  { %v2179_v54 = vpack.c.bf16 %v2167_v52, %v2166_v53 }
 0x650   :  { %5240 = vmatmul.mubr.bf16.vlgmr.msra.gmra.mxu0 %v2181_v51 }
 0x651   :  { %4878 = vmatpush3.bf16.msra.mxu1 %v5506_v59  ;;  %5244 = vmatpush3.bf16.msra.mxu0 %v5507_v61  ;;  %v5528_v59 = vld [vmem:[#allocation3 + $0x638] sm:$0xff]  }
 0x652   :  { %4879 = vmatprep.subr.bf16.mxu1 %v5508_v62  ;;  %5245 = vmatprep.subr.bf16.mxu0 %v5510_v3 }
 0x654   :  { %2421 = vmatmul.mubr.bf16.gmra.mxu1 %v2179_v54 }
 0x655   :  { %4880 = vmatpush3.bf16.msra.mxu1 %v5509_v2  ;;  %5246 = vmatpush3.bf16.msra.mxu0 %v5510_v3 }
 0x656   :  { %4881 = vmatprep.subr.bf16.mxu1 %v5511_v4  ;;  %5247 = vmatprep.subr.bf16.mxu0 %v5513_v6 }
 0x659   :  { %4882 = vmatpush3.bf16.msra.mxu1 %v5512_v5  ;;  %5248 = vmatpush3.bf16.msra.mxu0 %v5513_v6 }
 0x65a   :  { %4883 = vmatprep.subr.bf16.mxu1 %v5514_v7  ;;  %5249 = vmatprep.subr.bf16.mxu0 %v5516_v9 }
 0x65d   :  { %4884 = vmatpush3.bf16.msra.mxu1 %v5515_v8  ;;  %5250 = vmatpush3.bf16.msra.mxu0 %v5516_v9 }
 0x65e   :  { %4885 = vmatprep.subr.bf16.mxu1 %v5517_v10  ;;  %5251 = vmatprep.subr.bf16.mxu0 %v5519_v12  ;;  %v5530_v10 = vld [vmem:[#allocation3 + $0x6b8] sm:$0xff]  }
 0x661   :  { %4886 = vmatpush3.bf16.msra.mxu1 %v5518_v11  ;;  %5252 = vmatpush3.bf16.msra.mxu0 %v5519_v12  ;;  %v5531_v11 = vld [vmem:[#allocation3 + $0x630] sm:$0xff]   ;;  %v5532_v12 = vld [vmem:[#allocation3 + $0x668] sm:$0xff]  }
 0x662   :  { %4887 = vmatprep.subr.bf16.mxu1 %v5520_v13  ;;  %5253 = vmatprep.subr.bf16.mxu0 %v5522_v14  ;;  %v5533_v13 = vld [vmem:[#allocation3 + $0x6b0] sm:$0xff]  }
 0x665   :  { %4888 = vmatpush3.bf16.msra.mxu1 %v5521_v0  ;;  %5254 = vmatpush3.bf16.msra.mxu0 %v5522_v14  ;;  %v5534_v0 = vld [vmem:[#allocation3 + $0x628] sm:$0xff]   ;;  %v5535_v14 = vld [vmem:[#allocation3 + $0x660] sm:$0xff]  }
 0x666   :  { %4889 = vmatprep.subr.bf16.mxu1 %v5523_v15  ;;  %5255 = vmatprep.subr.bf16.mxu0 %v5525_v55  ;;  %v5536_v15 = vld [vmem:[#allocation3 + $0x6a8] sm:$0xff]  }
 0x669   :  { %4890 = vmatpush3.bf16.msra.mxu1 %v5524_v16  ;;  %5256 = vmatpush3.bf16.msra.mxu0 %v5525_v55  ;;  %v5537_v16 = vld [vmem:[#allocation3 + $0x620] sm:$0xff]   ;;  %v5538_v55 = vld [vmem:[#allocation3 + $0x658] sm:$0xff]  }
 0x66a   :  { %5257 = vmatprep.subr.bf16.mxu0 %v5526_v17  ;;  %4913 = vmatprep.subr.bf16.mxu1 %v5527_v18  ;;  %v5540_v18 = vld [vmem:[#allocation3 + $0x618] sm:$0xff]  }
 0x66d   :  { %5258 = vmatpush3.bf16.msra.mxu0 %v5526_v17  ;;  %v5539_v17 = vld [vmem:[#allocation3 + $0x6a0] sm:$0xff]  }
 0x66e   :  { %5263 = vmatprep.subr.bf16.mxu0 %v5530_v10 }
 0x70c   :  { %v4853_v57 = vpop.f32.mrf.mxu1 }
 0x70e   :  { %v4854_v1 = vpop.f32.mrf.mxu1 }
 0x70f   :  { %v4855_v20 = vadd.f32 %v4854_v1, %v4853_v57  ;;  %v5541_v57 = vld [vmem:[#allocation3 + $0x650] sm:$0xff]   ;;  %v5542_v1 = vld [vmem:[#allocation3 + $0x698] sm:$0xff]  }
 0x710   :  { %v4856_v22 = vpop.f32.mrf.mxu1  ;;  %v5241_v23 = vpop.f32.mrf.mxu0 }
 0x711   :  { %v2415_v47 = vadd.f32 %v4855_v20, %v4442_v19  ;;  %v5544_v20 = vld [vmem:[#allocation3 + $0x648] sm:$0xff]  }
 0x712   :  { %v4857_v24 = vpop.f32.mrf.mxu1  ;;  %v2463_v25 = vpop.f32.mrf.mxu0 }
 0x713   :  { %v4858_v26 = vadd.f32 %v4857_v24, %v4856_v22  ;;  %v2464_v27 = vadd.f32 %v2463_v25, %v2415_v47  ;;  %v5545_v22 = vld [vmem:[#allocation3 + $0x690] sm:$0xff]   ;;  %v5547_v47 = vld [vmem:[#allocation3 + $0x640] sm:$0xff]   ;;  %v5548_v24 = vld [vmem:[#allocation3 + $0x688] sm:$0xff]  }
 0x714   :  { %v4859_v29 = vpop.f32.mrf.mxu1  ;;  %v5242_v30 = vpop.f32.mrf.mxu0  ;;  %v5549_v25 = vld [vmem:[#allocation3 + $0x600] sm:$0xff]  }
 0x715   :  { %v2478_v56 = vmax.f32 %v2464_v27, 0.0  ;;  %v2418_v31 = vadd.f32 %v4858_v26, %v4442_v19  ;;  %v5550_v26 = vld [vmem:[#allocation3 + $0x680] sm:$0xff]   ;;  %v5551_v27 = vld [vmem:[#allocation3 + $0x738] sm:$0xff]  }
 0x716   :  { %v4860_v32 = vpop.f32.mrf.mxu1  ;;  %v2466_v60 = vpop.f32.mrf.mxu0 }
 0x717   :  { %v2482_v33 = vadd.f32 %v2478_v56, %v5748_v35  ;;  %v4861_v36 = vadd.f32 %v4860_v32, %v4859_v29  ;;  %v2467_v37 = vadd.f32 %v2466_v60, %v2418_v31  ;;  %v4467_v60 = vld [vmem:[%s6135_s4 + $0x8] ss:$0 sm:$0xff] }
 0x718   :  { %v4862_v38 = vpop.f32.mrf.mxu1 }
 0x719   :  { %2486 = vst [vmem:[#allocation2 + $0x1] sm:$0xff] %v2482_v33  ;;  %v2423_v39 = vadd.f32 %v4861_v36, %v4442_v19  ;;  %v2479_v63 = vmax.f32 %v2467_v37, 0.0 }
 0x71a   :  { %v4863_v40 = vpop.f32.mrf.mxu1 }
 0x71b   :  { %v2472_v42 = vadd.f32 %v5241_v23, %v2423_v39  ;;  %v2483_v45 = vadd.f32 %v2479_v63, %v5753_v44  ;;  %v4864_v46 = vadd.f32 %v4863_v40, %v4862_v38  ;;  %v5546_v23 = vld [vmem:[#allocation3 + $0x608] sm:$0xff]  }
 0x71d   :  { %v2480_v49 = vmax.f32 %v2472_v42, 0.0  ;;  %2487 = vst [vmem:[#allocation2 + $0x9] sm:$0xff] %v2483_v45  ;;  %v2426_v50 = vadd.f32 %v4864_v46, %v4442_v19  ;;  %v2503_v51 = vpack.c.bf16 %v2483_v45, %v2482_v33  ;;  %v5543_v19 = vld [vmem:[#allocation3 + $0x610] sm:$0xff]  }
 0x71f   :  { %v2484_v52 = vadd.f32 %v2480_v49, %v5751_v43  ;;  %v2475_v53 = vadd.f32 %v5242_v30, %v2426_v50  ;;  %2738 = vmatprep.mubr.bf16.mxu1 %v2503_v51 }
 0x720   :  { %v2490_v58 = vld [vmem:[#allocation2] sm:$0xff] }
 0x721   :  { %2488 = vst [vmem:[#allocation2 + $0x19] sm:$0xff] %v2484_v52  ;;  %v2481_v35 = vmax.f32 %v2475_v53, 0.0 }
 0x723   :  { %v2485_v54 = vadd.f32 %v2481_v35, %v5759_v48  ;;  %v5529_v48 = vld [vmem:[#allocation3 + $0x670] sm:$0xff]  }
 0x724   :  { %v2498_v61 = vld [vmem:[#allocation2 + $0x2] sm:$0xff]  ;;  %v2499_v62 = vld [vmem:[#allocation2 + $0xa] sm:$0xff] }
 0x725   :  { %v2491_v2 = vld [vmem:[#allocation2 + $0x8] sm:$0xff]  ;;  %2489 = vst [vmem:[#allocation2 + $0x21] sm:$0xff] %v2485_v54  ;;  %v2504_v44 = vpack.c.bf16 %v2499_v62, %v2498_v61  ;;  %v2506_v4 = vpack.c.bf16 %v2485_v54, %v2484_v52 }
 0x726   :  { %v2502_v3 = vpack.c.bf16 %v2491_v2, %v2490_v58 }
 0x727   :  { %5259 = vmatprep.mubr.bf16.mxu0 %v2504_v44 }
 0x728   :  { %2739 = vmatmul.mubr.bf16.vlgmr.msra.gmra.mxu1 %v2502_v3  ;;  %v2492_v43 = vld [vmem:[#allocation2 + $0x18] sm:$0xff] }
 0x729   :  { %2746 = vmatprep.mubr.bf16.mxu1 %v2506_v4  ;;  %4914 = vmatpush3.bf16.msra.mxu1 %v5528_v59 }
 0x72a   :  { %4915 = vmatprep.subr.bf16.mxu1 %v5529_v48 }
 0x72c   :  { %v2500_v5 = vld [vmem:[#allocation2 + $0x1a] sm:$0xff]  ;;  %v2501_v6 = vld [vmem:[#allocation2 + $0x22] sm:$0xff] }
 0x72d   :  { %v2493_v7 = vld [vmem:[#allocation2 + $0x20] sm:$0xff]  ;;  %v2507_v8 = vpack.c.bf16 %v2501_v6, %v2500_v5  ;;  %4916 = vmatpush3.bf16.msra.mxu1 %v5531_v11 }
 0x72e   :  { %v2505_v9 = vpack.c.bf16 %v2493_v7, %v2492_v43  ;;  %4917 = vmatprep.subr.bf16.mxu1 %v5532_v12  ;;  %v5552_v43 = vld [vmem:[#allocation3 + $0x6f8] sm:$0xff]  }
 0x72f   :  { %5260 = vmatmul.mubr.bf16.vlgmr.msra.gmra.mxu0 %v2507_v8 }
 0x730   :  { %2747 = vmatmul.mubr.bf16.gmra.mxu1 %v2505_v9  ;;  %5264 = vmatpush3.bf16.msra.mxu0 %v5530_v10 }
 0x731   :  { %5265 = vmatprep.subr.bf16.mxu0 %v5533_v13  ;;  %4918 = vmatpush3.bf16.msra.mxu1 %v5534_v0 }
 0x732   :  { %4919 = vmatprep.subr.bf16.mxu1 %v5535_v14 }
 0x734   :  { %5266 = vmatpush3.bf16.msra.mxu0 %v5533_v13 }
 0x735   :  { %5267 = vmatprep.subr.bf16.mxu0 %v5536_v15  ;;  %4920 = vmatpush3.bf16.msra.mxu1 %v5537_v16  ;;  %v5554_v16 = vld [vmem:[#allocation3 + $0x6f0] sm:$0xff]  }
 0x736   :  { %4921 = vmatprep.subr.bf16.mxu1 %v5538_v55  ;;  %v5555_v55 = vld [vmem:[#allocation3 + $0x778] sm:$0xff]  }
 0x738   :  { %5268 = vmatpush3.bf16.msra.mxu0 %v5536_v15  ;;  %v5553_v15 = vld [vmem:[#allocation3 + $0x730] sm:$0xff]  }
 0x739   :  { %5269 = vmatprep.subr.bf16.mxu0 %v5539_v17  ;;  %4922 = vmatpush3.bf16.msra.mxu1 %v5540_v18  ;;  %v5557_v18 = vld [vmem:[#allocation3 + $0x6e8] sm:$0xff]  }
 0x73a   :  { %4923 = vmatprep.subr.bf16.mxu1 %v5541_v57  ;;  %v5558_v57 = vld [vmem:[#allocation3 + $0x770] sm:$0xff]  }
 0x73c   :  { %5270 = vmatpush3.bf16.msra.mxu0 %v5539_v17  ;;  %v5556_v17 = vld [vmem:[#allocation3 + $0x728] sm:$0xff]  }
 0x73d   :  { %5271 = vmatprep.subr.bf16.mxu0 %v5542_v1  ;;  %4924 = vmatpush3.bf16.msra.mxu1 %v5543_v19  ;;  %v5560_v19 = vld [vmem:[#allocation3 + $0x6e0] sm:$0xff]  }
 0x73e   :  { %4925 = vmatprep.subr.bf16.mxu1 %v5544_v20  ;;  %v5561_v20 = vld [vmem:[#allocation3 + $0x768] sm:$0xff]  }
 0x740   :  { %5272 = vmatpush3.bf16.msra.mxu0 %v5542_v1  ;;  %v5559_v1 = vld [vmem:[#allocation3 + $0x720] sm:$0xff]  }
 0x741   :  { %5273 = vmatprep.subr.bf16.mxu0 %v5545_v22  ;;  %4926 = vmatpush3.bf16.msra.mxu1 %v5546_v23  ;;  %v5563_v23 = vld [vmem:[#allocation3 + $0x6d8] sm:$0xff]  }
 0x742   :  { %4927 = vmatprep.subr.bf16.mxu1 %v5547_v47  ;;  %v5564_v47 = vld [vmem:[#allocation3 + $0x760] sm:$0xff]  }
 0x744   :  { %5274 = vmatpush3.bf16.msra.mxu0 %v5545_v22  ;;  %v5562_v22 = vld [vmem:[#allocation3 + $0x718] sm:$0xff]  }
 0x745   :  { %5275 = vmatprep.subr.bf16.mxu0 %v5548_v24  ;;  %4928 = vmatpush3.bf16.msra.mxu1 %v5549_v25  ;;  %v5566_v25 = vld [vmem:[#allocation3 + $0x6d0] sm:$0xff]  }
 0x746   :  { %4951 = vmatprep.subr.bf16.mxu1 %v5551_v27  ;;  %v5568_v27 = vld [vmem:[#allocation3 + $0x708] sm:$0xff]  }
 0x748   :  { %5276 = vmatpush3.bf16.msra.mxu0 %v5548_v24  ;;  %v5565_v24 = vld [vmem:[#allocation3 + $0x710] sm:$0xff]  }
 0x749   :  { %5277 = vmatprep.subr.bf16.mxu0 %v5550_v26 }
 0x74c   :  { %5278 = vmatpush3.bf16.msra.mxu0 %v5550_v26  ;;  %v5567_v26 = vld [vmem:[#allocation3 + $0x758] sm:$0xff]  }
 0x74d   :  { %5283 = vmatprep.subr.bf16.mxu0 %v5555_v55 }
 0x7e8   :  { %v4891_v29 = vpop.f32.mrf.mxu1 }
 0x7ea   :  { %v4892_v30 = vpop.f32.mrf.mxu1 }
 0x7eb   :  { %v4893_v31 = vadd.f32 %v4892_v30, %v4891_v29  ;;  %v5569_v29 = vld [vmem:[#allocation3 + $0x6c8] sm:$0xff]   ;;  %v5570_v30 = vld [vmem:[#allocation3 + $0x750] sm:$0xff]  }
 0x7ec   :  { %v4894_v56 = vpop.f32.mrf.mxu1 }
 0x7ed   :  { %v2741_v38 = vadd.f32 %v4893_v31, %v4467_v60  ;;  %v5572_v31 = vld [vmem:[#allocation3 + $0x6c0] sm:$0xff]  }
 0x7ee   :  { %v4895_v32 = vpop.f32.mrf.mxu1 }
 0x7ef   :  { %v5261_v33 = vpop.f32.mrf.mxu0  ;;  %v4896_v37 = vadd.f32 %v4895_v32, %v4894_v56  ;;  %v5571_v56 = vld [vmem:[#allocation3 + $0x700] sm:$0xff]   ;;  %v5573_v32 = vld [vmem:[#allocation3 + $0x748] sm:$0xff]  }
 0x7f0   :  { %v4897_v36 = vpop.f32.mrf.mxu1 }
 0x7f1   :  { %v2789_v39 = vpop.f32.mrf.mxu0  ;;  %v2744_v51 = vadd.f32 %v4896_v37, %v4467_v60  ;;  %v4492_v37 = vld [vmem:[%s6135_s4 + $0x9] ss:$0 sm:$0xff] }
 0x7f2   :  { %v4898_v63 = vpop.f32.mrf.mxu1  ;;  %v2790_v40 = vadd.f32 %v2789_v39, %v2741_v38 }
 0x7f3   :  { %v4899_v42 = vadd.f32 %v4898_v63, %v4897_v36  ;;  %v5262_v45 = vpop.f32.mrf.mxu0 }
 0x7f4   :  { %v4900_v46 = vpop.f32.mrf.mxu1  ;;  %v2804_v49 = vmax.f32 %v2790_v40, 0.0 }
 0x7f5   :  { %v2749_v50 = vadd.f32 %v4899_v42, %v4467_v60  ;;  %v2792_v52 = vpop.f32.mrf.mxu0 }
 0x7f6   :  { %v4901_v53 = vpop.f32.mrf.mxu1  ;;  %2808 = vst [vmem:[#allocation2 + $0x1] sm:$0xff] %v2804_v49  ;;  %v2793_v54 = vadd.f32 %v2792_v52, %v2744_v51 }
 0x7f7   :  { %v2798_v35 = vadd.f32 %v5261_v33, %v2749_v50  ;;  %v4902_v58 = vadd.f32 %v4901_v53, %v4900_v46 }
 0x7f8   :  { %v2805_v61 = vmax.f32 %v2793_v54, 0.0 }
 0x7f9   :  { %v2806_v59 = vmax.f32 %v2798_v35, 0.0  ;;  %v2752_v62 = vadd.f32 %v4902_v58, %v4467_v60  ;;  %v5574_v60 = vld [vmem:[#allocation3 + $0x740] sm:$0xff]  }
 0x7fa   :  { %2809 = vst [vmem:[#allocation2 + $0x9] sm:$0xff] %v2805_v61  ;;  %v2825_v44 = vpack.c.bf16 %v2805_v61, %v2804_v49 }
 0x7fb   :  { %2810 = vst [vmem:[#allocation2 + $0x19] sm:$0xff] %v2806_v59  ;;  %v2801_v2 = vadd.f32 %v5262_v45, %v2752_v62 }
 0x7fc   :  { %3060 = vmatprep.mubr.bf16.mxu1 %v2825_v44 }
 0x7fd   :  { %v2807_v3 = vmax.f32 %v2801_v2, 0.0  ;;  %v2812_v4 = vld [vmem:[#allocation2] sm:$0xff] }
 0x7ff   :  { %2811 = vst [vmem:[#allocation2 + $0x21] sm:$0xff] %v2807_v3  ;;  %v2828_v48 = vpack.c.bf16 %v2807_v3, %v2806_v59 }
 0x801   :  { %v2820_v5 = vld [vmem:[#allocation2 + $0x2] sm:$0xff]  ;;  %v2821_v6 = vld [vmem:[#allocation2 + $0xa] sm:$0xff] }
 0x802   :  { %v2813_v7 = vld [vmem:[#allocation2 + $0x8] sm:$0xff]  ;;  %v2826_v8 = vpack.c.bf16 %v2821_v6, %v2820_v5  ;;  %v2814_v0 = vld [vmem:[#allocation2 + $0x18] sm:$0xff] }
 0x803   :  { %v2824_v9 = vpack.c.bf16 %v2813_v7, %v2812_v4 }
 0x804   :  { %5279 = vmatprep.mubr.bf16.mxu0 %v2826_v8 }
 0x805   :  { %3061 = vmatmul.mubr.bf16.vlgmr.msra.gmra.mxu1 %v2824_v9 }
 0x806   :  { %3068 = vmatprep.mubr.bf16.mxu1 %v2828_v48  ;;  %v2822_v10 = vld [vmem:[#allocation2 + $0x1a] sm:$0xff]  ;;  %v2823_v11 = vld [vmem:[#allocation2 + $0x22] sm:$0xff]  ;;  %4952 = vmatpush3.bf16.msra.mxu1 %v5552_v43 }
 0x807   :  { %v2829_v12 = vpack.c.bf16 %v2823_v11, %v2822_v10  ;;  %v2815_v13 = vld [vmem:[#allocation2 + $0x20] sm:$0xff]  ;;  %4953 = vmatprep.subr.bf16.mxu1 %v5553_v15 }
 0x808   :  { %v2827_v14 = vpack.c.bf16 %v2815_v13, %v2814_v0 }
 0x809   :  { %5280 = vmatmul.mubr.bf16.vlgmr.msra.gmra.mxu0 %v2829_v12 }
 0x80a   :  { %4954 = vmatpush3.bf16.msra.mxu1 %v5554_v16  ;;  %5284 = vmatpush3.bf16.msra.mxu0 %v5555_v55 }
 0x80b   :  { %4955 = vmatprep.subr.bf16.mxu1 %v5556_v17  ;;  %5285 = vmatprep.subr.bf16.mxu0 %v5558_v57 }
 0x80d   :  { %3069 = vmatmul.mubr.bf16.gmra.mxu1 %v2827_v14 }
 0x80e   :  { %4956 = vmatpush3.bf16.msra.mxu1 %v5557_v18  ;;  %5286 = vmatpush3.bf16.msra.mxu0 %v5558_v57 }
 0x80f   :  { %4957 = vmatprep.subr.bf16.mxu1 %v5559_v1  ;;  %5287 = vmatprep.subr.bf16.mxu0 %v5561_v20  ;;  %v5576_v1 = vld [vmem:[%s6134_s3 + $0x38] sm:$0xff]  }
 0x812   :  { %4958 = vmatpush3.bf16.msra.mxu1 %v5560_v19  ;;  %5288 = vmatpush3.bf16.msra.mxu0 %v5561_v20  ;;  %v5577_v19 = vld [vmem:[%s6134_s3 + $0xf8] sm:$0xff]  }
 0x813   :  { %4959 = vmatprep.subr.bf16.mxu1 %v5562_v22  ;;  %5289 = vmatprep.subr.bf16.mxu0 %v5564_v47  ;;  %v5578_v20 = vld [vmem:[%s6134_s3 + $0xb8] sm:$0xff]   ;;  %v5579_v22 = vld [vmem:[%s6134_s3 + $0x70] sm:$0xff]  }
 0x816   :  { %4960 = vmatpush3.bf16.msra.mxu1 %v5563_v23  ;;  %5290 = vmatpush3.bf16.msra.mxu0 %v5564_v47  ;;  %v5580_v23 = vld [vmem:[%s6134_s3 + $0x30] sm:$0xff]  }
 0x817   :  { %4961 = vmatprep.subr.bf16.mxu1 %v5565_v24  ;;  %5291 = vmatprep.subr.bf16.mxu0 %v5567_v26  ;;  %v5581_v47 = vld [vmem:[%s6134_s3 + $0xf0] sm:$0xff]  }
 0x818   :  { %v5582_v24 = vld [vmem:[%s6134_s3 + $0xb0] sm:$0xff]  }
 0x81a   :  { %4962 = vmatpush3.bf16.msra.mxu1 %v5566_v25  ;;  %5292 = vmatpush3.bf16.msra.mxu0 %v5567_v26  ;;  %v5583_v25 = vld [vmem:[%s6134_s3 + $0x68] sm:$0xff]  }
 0x81b   :  { %4963 = vmatprep.subr.bf16.mxu1 %v5568_v27  ;;  %5293 = vmatprep.subr.bf16.mxu0 %v5570_v30  ;;  %v5584_v26 = vld [vmem:[%s6134_s3 + $0x28] sm:$0xff]  }
 0x81c   :  { %v5585_v27 = vld [vmem:[%s6134_s3 + $0xe8] sm:$0xff]  }
 0x81e   :  { %4964 = vmatpush3.bf16.msra.mxu1 %v5569_v29  ;;  %5294 = vmatpush3.bf16.msra.mxu0 %v5570_v30  ;;  %v5586_v29 = vld [vmem:[%s6134_s3 + $0xa8] sm:$0xff]   ;;  %v5587_v30 = vld [vmem:[%s6134_s3 + $0x60] sm:$0xff]  }
 0x81f   :  { %4965 = vmatprep.subr.bf16.mxu1 %v5571_v56  ;;  %5295 = vmatprep.subr.bf16.mxu0 %v5573_v32  ;;  %v5588_v56 = vld [vmem:[%s6134_s3 + $0x20] sm:$0xff]  }
 0x822   :  { %4966 = vmatpush3.bf16.msra.mxu1 %v5572_v31  ;;  %5296 = vmatpush3.bf16.msra.mxu0 %v5573_v32  ;;  %v5589_v31 = vld [vmem:[%s6134_s3 + $0xe0] sm:$0xff]  }
 0x823   :  { %5297 = vmatprep.subr.bf16.mxu0 %v5574_v60  ;;  %v5590_v32 = vld [vmem:[%s6134_s3 + $0xa0] sm:$0xff]  }
 0x826   :  { %5298 = vmatpush3.bf16.msra.mxu0 %v5574_v60  ;;  %v5591_v60 = vld [vmem:[%s6134_s3 + $0x58] sm:$0xff]  }
 0x827   :  { %5017 = vmatprep.subr.bf16.mxu0 %v5577_v19 }
 0x8c5   :  { %v4929_v33 = vpop.f32.mrf.mxu1 }
 0x8c7   :  { %v4930_v36 = vpop.f32.mrf.mxu1 }
 0x8c8   :  { %v4931_v38 = vadd.f32 %v4930_v36, %v4929_v33  ;;  %v5592_v33 = vld [vmem:[%s6134_s3 + $0x18] sm:$0xff]  }
 0x8c9   :  { %v4932_v39 = vpop.f32.mrf.mxu1  ;;  %v5281_v63 = vpop.f32.mrf.mxu0  ;;  %v5593_v36 = vld [vmem:[%s6134_s3 + $0xd8] sm:$0xff]  }
 0x8ca   :  { %v3063_v40 = vadd.f32 %v4931_v38, %v4492_v37  ;;  %v5595_v38 = vld [vmem:[%s6134_s3 + $0x50] sm:$0xff]  }
 0x8cb   :  { %v4933_v42 = vpop.f32.mrf.mxu1  ;;  %v3111_v45 = vpop.f32.mrf.mxu0 }
 0x8cc   :  { %v4934_v46 = vadd.f32 %v4933_v42, %v4932_v39  ;;  %v3112_v49 = vadd.f32 %v3111_v45, %v3063_v40  ;;  %v5596_v39 = vld [vmem:[%s6134_s3 + $0x10] sm:$0xff]   ;;  %v5599_v42 = vld [vmem:[%s6134_s3 + $0x48] sm:$0xff]  }
 0x8cd   :  { %v4935_v50 = vpop.f32.mrf.mxu1  ;;  %v5282_v51 = vpop.f32.mrf.mxu0  ;;  %v5598_v40 = vld [vmem:[%s6134_s3 + $0x90] sm:$0xff]   ;;  %v5600_v45 = vld [vmem:[%s6134_s3 + $0x8] sm:$0xff]  }
 0x8ce   :  { %v3126_v52 = vmax.f32 %v3112_v49, 0.0  ;;  %v3066_v53 = vadd.f32 %v4934_v46, %v4492_v37  ;;  %v5601_v46 = vld [vmem:[%s6134_s3 + $0xc8] sm:$0xff]  }
 0x8cf   :  { %v4936_v35 = vpop.f32.mrf.mxu1  ;;  %v3114_v54 = vpop.f32.mrf.mxu0  ;;  %v5602_v49 = vld [vmem:[%s6134_s3 + $0x88] sm:$0xff]  }
 0x8d0   :  { %v3130_v58 = vadd.f32 %v3126_v52, %v5729_v21  ;;  %v4937_v59 = vadd.f32 %v4936_v35, %v4935_v50  ;;  %v3115_v61 = vadd.f32 %v3114_v54, %v3066_v53  ;;  %v5603_v50 = vld [vmem:[%s6134_s3 + $0x40] sm:$0xff]   ;;  %v5607_v35 = vld [vmem:[%s6134_s3 + $0x178] sm:$0xff]  }
 0x8d1   :  { %v4938_v62 = vpop.f32.mrf.mxu1  ;;  %v5605_v52 = vld [vmem:[%s6134_s3 + $0xc0] sm:$0xff]   ;;  %v5958_v54 = vld [vmem:[%s6134_s3 + $0x1b8] sm:$0xff]  }
 0x8d2   :  { %3134 = vst [vmem:[#allocation2 + $0x1] sm:$0xff] %v3130_v58  ;;  %v3071_v2 = vadd.f32 %v4937_v59, %v4492_v37  ;;  %v3127_v44 = vmax.f32 %v3115_v61, 0.0  ;;  %v5606_v53 = vld [vmem:[%s6134_s3 + $0x80] sm:$0xff]  }
 0x8d3   :  { %v4939_v3 = vpop.f32.mrf.mxu1 }
 0x8d4   :  { %v3120_v4 = vadd.f32 %v5281_v63, %v3071_v2  ;;  %v3131_v43 = vadd.f32 %v3127_v44, %v5732_v28  ;;  %v4940_v5 = vadd.f32 %v4939_v3, %v4938_v62  ;;  %v5597_v63 = vld [vmem:[%s6134_s3 + $0xd0] sm:$0xff]   ;;  %v4517_v44 = vld [vmem:[%s6135_s4 + $0xa] ss:$0 sm:$0xff] }
 0x8d6   :  { %v3128_v6 = vmax.f32 %v3120_v4, 0.0  ;;  %3135 = vst [vmem:[#allocation2 + $0x9] sm:$0xff] %v3131_v43  ;;  %v3074_v7 = vadd.f32 %v4940_v5, %v4492_v37  ;;  %v3151_v8 = vpack.c.bf16 %v3131_v43, %v3130_v58  ;;  %v5594_v37 = vld [vmem:[%s6134_s3 + $0x98] sm:$0xff]  }
 0x8d8   :  { %v3132_v9 = vadd.f32 %v3128_v6, %v5737_v34  ;;  %v3123_v48 = vadd.f32 %v5282_v51, %v3074_v7  ;;  %3386 = vmatprep.mubr.bf16.mxu1 %v3151_v8  ;;  %v5604_v51 = vld [vmem:[%s6134_s3] sm:$0xff]  }
 0x8d9   :  { %v3138_v11 = vld [vmem:[#allocation2] sm:$0xff] }
 0x8da   :  { %3136 = vst [vmem:[#allocation2 + $0x19] sm:$0xff] %v3132_v9  ;;  %v3129_v21 = vmax.f32 %v3123_v48, 0.0 }
 0x8dc   :  { %v3133_v10 = vadd.f32 %v3129_v21, %v5740_v41  ;;  %v5575_v41 = vld [vmem:[%s6134_s3 + $0x78] sm:$0xff]  }
 0x8dd   :  { %v3146_v12 = vld [vmem:[#allocation2 + $0x2] sm:$0xff]  ;;  %v3147_v13 = vld [vmem:[#allocation2 + $0xa] sm:$0xff]  ;;  %4989 = vmatprep.subr.bf16.mxu1 %v5575_v41 }
 0x8de   :  { %v3139_v0 = vld [vmem:[#allocation2 + $0x8] sm:$0xff]  ;;  %3137 = vst [vmem:[#allocation2 + $0x21] sm:$0xff] %v3133_v10  ;;  %v3152_v14 = vpack.c.bf16 %v3147_v13, %v3146_v12  ;;  %v3154_v15 = vpack.c.bf16 %v3133_v10, %v3132_v9 }
 0x8df   :  { %v3150_v28 = vpack.c.bf16 %v3139_v0, %v3138_v11 }
 0x8e0   :  { %5299 = vmatprep.mubr.bf16.mxu0 %v3152_v14 }
 0x8e1   :  { %3387 = vmatmul.mubr.bf16.vlgmr.msra.gmra.mxu1 %v3150_v28  ;;  %v3140_v16 = vld [vmem:[#allocation2 + $0x18] sm:$0xff] }
 0x8e2   :  { %3394 = vmatprep.mubr.bf16.mxu1 %v3154_v15  ;;  %4990 = vmatpush3.bf16.msra.mxu1 %v5576_v1 }
 0x8e3   :  { %4991 = vmatprep.subr.bf16.mxu1 %v5579_v22 }
 0x8e5   :  { %v3148_v55 = vld [vmem:[#allocation2 + $0x1a] sm:$0xff]  ;;  %v3149_v34 = vld [vmem:[#allocation2 + $0x22] sm:$0xff] }
 0x8e6   :  { %v3141_v17 = vld [vmem:[#allocation2 + $0x20] sm:$0xff]  ;;  %v3155_v18 = vpack.c.bf16 %v3149_v34, %v3148_v55  ;;  %4992 = vmatpush3.bf16.msra.mxu1 %v5580_v23 }
 0x8e7   :  { %v3153_v57 = vpack.c.bf16 %v3141_v17, %v3140_v16  ;;  %4993 = vmatprep.subr.bf16.mxu1 %v5583_v25 }
 0x8e8   :  { %5300 = vmatmul.mubr.bf16.vlgmr.msra.gmra.mxu0 %v3155_v18 }
 0x8e9   :  { %3395 = vmatmul.mubr.bf16.gmra.mxu1 %v3153_v57  ;;  %5018 = vmatpush3.bf16.msra.mxu0 %v5578_v20 }
 0x8ea   :  { %5019 = vmatprep.subr.bf16.mxu0 %v5581_v47  ;;  %4994 = vmatpush3.bf16.msra.mxu1 %v5584_v26 }
 0x8eb   :  { %4995 = vmatprep.subr.bf16.mxu1 %v5587_v30 }
 0x8ed   :  { %5020 = vmatpush3.bf16.msra.mxu0 %v5582_v24 }
 0x8ee   :  { %5021 = vmatprep.subr.bf16.mxu0 %v5585_v27  ;;  %4996 = vmatpush3.bf16.msra.mxu1 %v5588_v56 }
 0x8ef   :  { %4997 = vmatprep.subr.bf16.mxu1 %v5591_v60 }
 0x8f1   :  { %5022 = vmatpush3.bf16.msra.mxu0 %v5586_v29 }
 0x8f2   :  { %5023 = vmatprep.subr.bf16.mxu0 %v5589_v31  ;;  %4998 = vmatpush3.bf16.msra.mxu1 %v5592_v33 }
 0x8f3   :  { %4999 = vmatprep.subr.bf16.mxu1 %v5595_v38 }
 0x8f5   :  { %5024 = vmatpush3.bf16.msra.mxu0 %v5590_v32 }
 0x8f6   :  { %5025 = vmatprep.subr.bf16.mxu0 %v5593_v36  ;;  %5000 = vmatpush3.bf16.msra.mxu1 %v5596_v39 }
 0x8f7   :  { %5001 = vmatprep.subr.bf16.mxu1 %v5599_v42 }
 0x8f9   :  { %5026 = vmatpush3.bf16.msra.mxu0 %v5594_v37 }
 0x8fa   :  { %5027 = vmatprep.subr.bf16.mxu0 %v5597_v63  ;;  %5002 = vmatpush3.bf16.msra.mxu1 %v5600_v45 }
 0x8fb   :  { %5003 = vmatprep.subr.bf16.mxu1 %v5603_v50 }
 0x8fd   :  { %5028 = vmatpush3.bf16.msra.mxu0 %v5598_v40 }
 0x8fe   :  { %5029 = vmatprep.subr.bf16.mxu0 %v5601_v46  ;;  %5004 = vmatpush3.bf16.msra.mxu1 %v5604_v51 }
 0x8ff   :  { %5045 = vmatprep.subr.bf16.mxu1 %v5607_v35 }
 0x901   :  { %5030 = vmatpush3.bf16.msra.mxu0 %v5602_v49 }
 0x902   :  { %5031 = vmatprep.subr.bf16.mxu0 %v5605_v52 }
 0x905   :  { %5032 = vmatpush3.bf16.msra.mxu0 %v5606_v53 }
 0x906   :  { %5303 = vmatprep.subr.bf16.mxu0 %v5958_v54 }
 0x9a1   :  { %v4967_v58 = vpop.f32.mrf.mxu1 }
 0x9a3   :  { %v4968_v59 = vpop.f32.mrf.mxu1 }
 0x9a4   :  { %v4969_v62 = vadd.f32 %v4968_v59, %v4967_v58 }
 0x9a5   :  { %v4970_v61 = vpop.f32.mrf.mxu1 }
 0x9a6   :  { %v3389_v43 = vadd.f32 %v4969_v62, %v4517_v44 }
 0x9a7   :  { %v4971_v2 = vpop.f32.mrf.mxu1 }
 0x9a8   :  { %v5301_v3 = vpop.f32.mrf.mxu0  ;;  %v4972_v5 = vadd.f32 %v4971_v2, %v4970_v61 }
 0x9a9   :  { %v4973_v4 = vpop.f32.mrf.mxu1 }
 0x9aa   :  { %v3437_v6 = vpop.f32.mrf.mxu0  ;;  %v3392_v12 = vadd.f32 %v4972_v5, %v4517_v44 }
 0x9ab   :  { %v4974_v7 = vpop.f32.mrf.mxu1  ;;  %v3438_v8 = vadd.f32 %v3437_v6, %v3389_v43 }
 0x9ac   :  { %v4975_v9 = vadd.f32 %v4974_v7, %v4973_v4  ;;  %v5302_v48 = vpop.f32.mrf.mxu0 }
 0x9ad   :  { %v4976_v21 = vpop.f32.mrf.mxu1  ;;  %v3452_v10 = vmax.f32 %v3438_v8, 0.0 }
 0x9ae   :  { %v3397_v11 = vadd.f32 %v4975_v9, %v4517_v44  ;;  %v3440_v13 = vpop.f32.mrf.mxu0 }
 0x9af   :  { %v4977_v0 = vpop.f32.mrf.mxu1  ;;  %v3458_v14 = vrot.slane %v3452_v10, 3  ;;  %v3462_v28 = vrot.slane %v3452_v10, 1  ;;  %v3466_v15 = vrot.slane %v3452_v10, 7  ;;  %v3441_v55 = vadd.f32 %v3440_v13, %v3392_v12 }
 0x9b0   :  { %v3446_v16 = vadd.f32 %v5301_v3, %v3397_v11  ;;  %v4978_v34 = vadd.f32 %v4977_v0, %v4976_v21  ;;  %v3495_v1 = vrot.slane %v3452_v10, 5  ;;  %v5610_v0 = vld [vmem:[%s6134_s3 + $0x170] sm:$0xff]  }
 0x9b1   :  { %v3471_v17 = vsel %vm3470_vm0, %v3458_v14, %v3462_v28  ;;  %v3453_v57 = vmax.f32 %v3441_v55, 0.0 }
 0x9b2   :  { %v3454_v18 = vmax.f32 %v3446_v16, 0.0  ;;  %v3400_v41 = vadd.f32 %v4978_v34, %v4517_v44  ;;  %v3474_v19 = vsel %vm3473_vm1, %v3471_v17, %v3466_v15 }
 0x9b3   :  { %v3478_v47 = vrot.slane %v3453_v57, 6  ;;  %v3482_v24 = vrot.slane %v3453_v57, 4  ;;  %v3486_v25 = vrot.slane %v3453_v57, 2  ;;  %v3496_v26 = vrot.slane %v3453_v57, 5 }
 0x9b4   :  { %v3459_v20 = vrot.slane %v3454_v18, 3  ;;  %v3463_v22 = vrot.slane %v3454_v18, 1  ;;  %v3467_v23 = vrot.slane %v3454_v18, 7  ;;  %v3449_v29 = vadd.f32 %v5302_v48, %v3400_v41  ;;  %v5608_v48 = vld [vmem:[%s6134_s3 + $0x138] sm:$0xff]  }
 0x9b5   :  { %v3513_v30 = vsel %vm3494_vm2, %v3474_v19, %v3495_v1  ;;  %v3490_v56 = vsel %vm3470_vm0, %v3478_v47, %v3482_v24  ;;  %v3497_v31 = vsel %vm3494_vm2, %v3495_v1, %v3496_v26  ;;  %v3498_v37 = vrot.slane %v3454_v18, 5  ;;  %v5611_v19 = vld [vmem:[%s6134_s3 + $0x130] sm:$0xff]   ;;  %v5613_v24 = vld [vmem:[%s6134_s3 + $0x168] sm:$0xff]  }
 0x9b6   :  { %v3472_v27 = vsel %vm3470_vm0, %v3459_v20, %v3463_v22  ;;  %v3492_v32 = vsel %vm3473_vm1, %v3490_v56, %v3486_v25  ;;  %v5971_v60 = vpack.c.bf16 %v3497_v31, %v3513_v30  ;;  %v3455_v33 = vmax.f32 %v3449_v29, 0.0  ;;  %v5612_v20 = vld [vmem:[%s6134_s3 + $0x1b0] sm:$0xff]  }
 0x9b7   :  { %v3475_v36 = vsel %vm3473_vm1, %v3472_v27, %v3467_v23  ;;  %v3509_v38 = vrot.slane %v3492_v32, 5  ;;  %v5614_v32 = vld [vmem:[%s6134_s3 + $0x128] sm:$0xff]  }
 0x9b8   :  { %v3479_v39 = vrot.slane %v3455_v33, 6  ;;  %v3483_v63 = vrot.slane %v3455_v33, 4  ;;  %v3487_v40 = vrot.slane %v3455_v33, 2  ;;  %v3499_v42 = vrot.slane %v3455_v33, 5 }
 0x9b9   :  { %v3515_v45 = vsel %vm3494_vm2, %v3496_v26, %v3509_v38  ;;  %v5976_v46 = vshrl.u32 %v5971_v60, 16  ;;  %v5979_v49 = vshll.u32 %v5971_v60, 16  ;;  %v3514_v50 = vsel %vm3494_vm2, %v3475_v36, %v3498_v37  ;;  %v5615_v36 = vld [vmem:[%s6134_s3 + $0x1a8] sm:$0xff]  }
 0x9ba   :  { %v5982_v51 = vpack.c.bf16 %v3515_v45, %v3515_v45  ;;  %v3491_v52 = vsel %vm3470_vm0, %v3479_v39, %v3483_v63  ;;  %v3500_v53 = vsel %vm3494_vm2, %v3498_v37, %v3499_v42  ;;  %v3553_v34 = vrot.slane %v5971_v60, 1  ;;  %v5616_v37 = vld [vmem:[%s6134_s3 + $0x160] sm:$0xff]  }
 0x9bb   :  { %v3493_v35 = vsel %vm3473_vm1, %v3491_v52, %v3487_v40  ;;  %v5987_v58 = vpack.c.bf16 %v3500_v53, %v3514_v50  ;;  %v3527_v59 = vrot.slane %v5979_v49, 1  ;;  %v3562_v61 = vrot.slane %v5976_v46, 1  ;;  %v5618_v45 = vld [vmem:[%s6134_s3 + $0x1a0] sm:$0xff]   ;;  %v5620_v52 = vld [vmem:[%s6134_s3 + $0x118] sm:$0xff]  }
 0x9bc   :  { %v3510_v62 = vrot.slane %v3493_v35, 5  ;;  %v3530_v2 = vshll.u32 %v5982_v51, 16  ;;  %v3563_v44 = vrot.slane %v5979_v49, 2  ;;  %v3565_v3 = vshrl.u32 %v5982_v51, 16  ;;  %v5621_v53 = vld [vmem:[%s6134_s3 + $0x198] sm:$0xff]   ;;  %v5622_v35 = vld [vmem:[%s6134_s3 + $0x150] sm:$0xff]  }
 0x9bd   :  { %v5995_v4 = vshrl.u32 %v5987_v58, 16  ;;  %v5998_v43 = vshll.u32 %v5987_v58, 16  ;;  %v3528_v6 = vor.u32 %v3527_v59, %v5976_v46  ;;  %v3554_v13 = vrot.slane %v5982_v51, 1  ;;  %v5623_v59 = vld [vmem:[%s6134_s3 + $0x110] sm:$0xff]  }
 0x9be   :  { %v3516_v5 = vsel %vm3494_vm2, %v3499_v42, %v3510_v62  ;;  %v3532_v7 = vrot.slane %v3530_v2, 1  ;;  %v3567_v8 = vrot.slane %v3565_v3, 1  ;;  %v3568_v21 = vrot.slane %v3530_v2, 2  ;;  %v5617_v42 = vld [vmem:[%s6134_s3 + $0x120] sm:$0xff]   ;;  %v5625_v62 = vld [vmem:[%s6134_s3 + $0x148] sm:$0xff]  }
 0x9bf   :  { %v6002_v9 = vpack.c.bf16 %v3516_v5, %v3516_v5  ;;  %v3539_v10 = vrot.slane %v5998_v43, 1  ;;  %v3564_v12 = vor.u32 %v3563_v44, %v3562_v61  ;;  %v3571_v14 = vrot.slane %v5995_v4, 1  ;;  %v5624_v61 = vld [vmem:[%s6134_s3 + $0x190] sm:$0xff]   ;;  %v5627_v44 = vld [vmem:[%s6134_s3 + $0x188] sm:$0xff]  }
 0x9c0   :  { %v3533_v11 = vsel %vm3521_vm3, %v3528_v6, %v3532_v7  ;;  %v3569_v28 = vor.u32 %v3568_v21, %v3567_v8  ;;  %v3572_v16 = vrot.slane %v5998_v43, 2  ;;  %v3595_v18 = vrot.slane %v3565_v3, 2  ;;  %v5628_v3 = vld [vmem:[%s6134_s3 + $0x140] sm:$0xff]  }
 0x9c1   :  { %4102 = vmatprep.mubr.bf16.mxu1 %v3533_v11  ;;  %v6015_v15 = vshll.u32 %v6002_v9, 16  ;;  %v3574_v55 = vshrl.u32 %v6002_v9, 16  ;;  %v3540_v17 = vor.u32 %v3539_v10, %v5995_v4  ;;  %v3596_v57 = vrot.slane %v3530_v2, 3  ;;  %v5626_v2 = vld [vmem:[%s6134_s3 + $0x108] sm:$0xff]   ;;  %v5629_v7 = vld [vmem:[%s6134_s3 + $0x100] sm:$0xff]  }
 0x9c2   :  { %4103 = vmatmul.mubr.bf16.vlgmr.msra.gmra.mxu1 %v5971_v60  ;;  %v3570_v41 = vsel %vm3561_vm5, %v3564_v12, %v3569_v28  ;;  %v3555_v47 = vsel %vm3552_vm4, %v3553_v34, %v3554_v13  ;;  %v3592_v25 = vrot.slane %v5976_v46, 2  ;;  %v3593_v26 = vrot.slane %v5979_v49, 3  ;;  %v5619_v49 = vld [vmem:[%s6134_s3 + $0x158] sm:$0xff]   ;;  %v5630_v8 = vld [vmem:[%s6134_s3 + $0x180] sm:$0xff]  }
 0x9c3   :  { %5046 = vmatpush3.bf16.msra.mxu1 %v5608_v48  ;;  %v3544_v1 = vrot.slane %v6015_v15, 1  ;;  %v3576_v22 = vrot.slane %v3574_v55, 1  ;;  %v3577_v23 = vrot.slane %v6015_v15, 2  ;;  %4151 = vmatprep.mubr.bf16.mxu0 %v3570_v41  ;;  %v3573_v29 = vor.u32 %v3572_v16, %v3571_v14 }
 0x9c4   :  { %5047 = vmatprep.subr.bf16.mxu1 %v5610_v0  ;;  %4152 = vmatmul.mubr.bf16.vlgmr.msra.gmra.mxu0 %v3555_v47  ;;  %v3597_v56 = vor.u32 %v3596_v57, %v3595_v18  ;;  %v3594_v33 = vor.u32 %v3593_v26, %v3592_v25  ;;  %v3610_v38 = vrot.slane %v5982_v51, 3  ;;  %v3556_v63 = vrot.slane %v5987_v58, 1 }
 0x9c5   :  { %v3545_v27 = vsel %vm3521_vm3, %v3540_v17, %v3544_v1  ;;  %v3578_v30 = vor.u32 %v3577_v23, %v3576_v22  ;;  %5304 = vmatpush3.bf16.msra.mxu0 %v5958_v54  ;;  %v3557_v54 = vrot.slane %v6002_v9, 1  ;;  %v3609_v40 = vrot.slane %v5971_v60, 3 }
 0x9c6   :  { %4110 = vmatprep.mubr.bf16.mxu1 %v3545_v27  ;;  %5305 = vmatprep.subr.bf16.mxu0 %v5612_v20  ;;  %v3598_v39 = vsel %vm3591_vm6, %v3594_v33, %v3597_v56  ;;  %v3602_v5 = vrot.slane %v3574_v55, 2  ;;  %v3603_v6 = vrot.slane %v6015_v15, 3  ;;  %v3599_v48 = vrot.slane %v5995_v4, 2 }
 0x9c7   :  { %5048 = vmatpush3.bf16.msra.mxu1 %v5611_v19  ;;  %v3579_v31 = vsel %vm3561_vm5, %v3573_v29, %v3578_v30  ;;  %v3558_v46 = vsel %vm3552_vm4, %v3556_v63, %v3557_v54  ;;  %v3611_v50 = vsel %vm3608_vm7, %v3609_v40, %v3610_v38  ;;  %v3600_v21 = vrot.slane %v5998_v43, 3 }
 0x9c8   :  { %4159 = vmatprep.mubr.bf16.mxu0 %v3579_v31  ;;  %5049 = vmatprep.subr.bf16.mxu1 %v5613_v24  ;;  %v3584_v10 = vrot.slane %v5982_v51, 2  ;;  %v3604_v11 = vor.u32 %v3603_v6, %v3602_v5  ;;  %v3583_v12 = vrot.slane %v5971_v60, 2  ;;  %v3613_v0 = vrot.slane %v6002_v9, 3 }
 0x9c9   :  { %5306 = vmatpush3.bf16.msra.mxu0 %v5612_v20  ;;  %v3601_v13 = vor.u32 %v3600_v21, %v3599_v48  ;;  %v3612_v43 = vrot.slane %v5987_v58, 3  ;;  %v3587_v28 = vrot.slane %v6002_v9, 2  ;;  %v3586_v15 = vrot.slane %v5987_v58, 2 }
 0x9ca   :  { %4111 = vmatmul.mubr.bf16.gmra.mxu1 %v5987_v58  ;;  %5307 = vmatprep.subr.bf16.mxu0 %v5615_v36  ;;  %v3585_v14 = vsel %vm3582_vm8, %v3583_v12, %v3584_v10  ;;  %v4542_v58 = vld [vmem:[%s6135_s4 + $0xb] ss:$0 sm:$0xff] }
 0x9cb   :  { %5050 = vmatpush3.bf16.msra.mxu1 %v5614_v32  ;;  %4200 = vmatprep.mubr.bf16.mxu1 %v3598_v39  ;;  %v3605_v4 = vsel %vm3591_vm6, %v3601_v13, %v3604_v11  ;;  %v3614_v51 = vsel %vm3608_vm7, %v3612_v43, %v3613_v0  ;;  %v3588_v60 = vsel %vm3582_vm8, %v3586_v15, %v3587_v28 }
 0x9cc   :  { %5051 = vmatprep.subr.bf16.mxu1 %v5616_v37  ;;  %4160 = vmatmul.mubr.bf16.gmra.mxu0 %v3558_v46 }
 0x9cd   :  { %5308 = vmatpush3.bf16.msra.mxu0 %v5615_v36  ;;  %5319 = vmatprep.mubr.bf16.mxu0 %v3611_v50 }
 0x9ce   :  { %5309 = vmatprep.subr.bf16.mxu0 %v5618_v45 }
 0x9cf   :  { %5052 = vmatpush3.bf16.msra.mxu1 %v5617_v42 }
 0x9d0   :  { %5053 = vmatprep.subr.bf16.mxu1 %v5619_v49 }
 0x9d1   :  { %5310 = vmatpush3.bf16.msra.mxu0 %v5618_v45 }
 0x9d2   :  { %5311 = vmatprep.subr.bf16.mxu0 %v5621_v53 }
 0x9d3   :  { %5054 = vmatpush3.bf16.msra.mxu1 %v5620_v52 }
 0x9d4   :  { %5055 = vmatprep.subr.bf16.mxu1 %v5622_v35 }
 0x9d5   :  { %5312 = vmatpush3.bf16.msra.mxu0 %v5621_v53 }
 0x9d6   :  { %5313 = vmatprep.subr.bf16.mxu0 %v5624_v61 }
 0x9d7   :  { %5056 = vmatpush3.bf16.msra.mxu1 %v5623_v59 }
 0x9d8   :  { %5057 = vmatprep.subr.bf16.mxu1 %v5625_v62 }
 0x9d9   :  { %5314 = vmatpush3.bf16.msra.mxu0 %v5624_v61 }
 0x9da   :  { %5315 = vmatprep.subr.bf16.mxu0 %v5627_v44 }
 0x9db   :  { %5058 = vmatpush3.bf16.msra.mxu1 %v5626_v2 }
 0x9dc   :  { %5059 = vmatprep.subr.bf16.mxu1 %v5628_v3 }
 0x9dd   :  { %5316 = vmatpush3.bf16.msra.mxu0 %v5627_v44 }
 0x9de   :  { %5317 = vmatprep.subr.bf16.mxu0 %v5630_v8 }
 0x9df   :  { %5060 = vmatpush3.bf16.msra.mxu1 %v5629_v7 }
 0x9e1   :  { %5318 = vmatpush3.bf16.msra.mxu0 %v5630_v8 }
 0x9e2   :  { %4201 = vmatmul.mubr.bf16.vlgmr.msra.gmra.mxu1 %v3585_v14 }
 0x9e3   :  { %4208 = vmatprep.mubr.bf16.mxu1 %v3605_v4 }
 0x9e4   :  { %5320 = vmatmul.mubr.bf16.vlgmr.msra.gmra.mxu0 %v3614_v51 }
 0x9ea   :  { %4209 = vmatmul.mubr.bf16.gmra.mxu1 %v3588_v60 }
 0xa82   :  { %v5005_v16 = vpop.f32.mrf.mxu1 }
 0xa84   :  { %v5033_v55 = vpop.f32.mrf.mxu0  ;;  %v5006_v34 = vpop.f32.mrf.mxu1 }
 0xa85   :  { %v5007_v24 = vadd.f32 %v5006_v34, %v5005_v16 }
 0xa86   :  { %v5034_v17 = vpop.f32.mrf.mxu0  ;;  %v5008_v18 = vpop.f32.mrf.mxu1 }
 0xa87   :  { %v4105_v26 = vadd.f32 %v5007_v24, %v4542_v58  ;;  %v5035_v27 = vadd.f32 %v5034_v17, %v5033_v55 }
 0xa88   :  { %v5036_v57 = vpop.f32.mrf.mxu0  ;;  %v5009_v41 = vpop.f32.mrf.mxu1 }
 0xa89   :  { %v5010_v29 = vadd.f32 %v5009_v41, %v5008_v18  ;;  %v4154_v33 = vadd.f32 %v5035_v27, %v4105_v26 }
 0xa8a   :  { %v5037_v1 = vpop.f32.mrf.mxu0  ;;  %v5011_v19 = vpop.f32.mrf.mxu1 }
 0xa8b   :  { %v4108_v36 = vadd.f32 %v5010_v29, %v4542_v58  ;;  %v5038_v54 = vadd.f32 %v5037_v1, %v5036_v57 }
 0xa8c   :  { %v5039_v20 = vpop.f32.mrf.mxu0  ;;  %v5012_v22 = vpop.f32.mrf.mxu1 }
 0xa8d   :  { %v5013_v31 = vadd.f32 %v5012_v22, %v5011_v19  ;;  %v4157_v49 = vadd.f32 %v5038_v54, %v4108_v36 }
 0xa8e   :  { %v5040_v23 = vpop.f32.mrf.mxu0  ;;  %v5014_v47 = vpop.f32.mrf.mxu1 }
 0xa8f   :  { %v4113_v42 = vadd.f32 %v5013_v31, %v4542_v58  ;;  %v5041_v45 = vadd.f32 %v5040_v23, %v5039_v20 }
 0xa90   :  { %v5042_v9 = vpop.f32.mrf.mxu0  ;;  %v5015_v25 = vpop.f32.mrf.mxu1 }
 0xa91   :  { %v5016_v50 = vadd.f32 %v5015_v25, %v5014_v47  ;;  %v4162_v62 = vadd.f32 %v5041_v45, %v4113_v42 }
 0xa92   :  { %v5043_v56 = vpop.f32.mrf.mxu0 }
 0xa93   :  { %v4116_v3 = vadd.f32 %v5016_v50, %v4542_v58  ;;  %v5044_v5 = vadd.f32 %v5043_v56, %v5042_v9 }
 0xa95   :  { %v4165_v10 = vadd.f32 %v5044_v5, %v4116_v3 }
 0xaa2   :  { %v5061_v30 = vpop.f32.mrf.mxu1 }
 0xaa4   :  { %v5062_v32 = vpop.f32.mrf.mxu1  ;;  %v5321_v38 = vpop.f32.mrf.mxu0 }
 0xaa5   :  { %v5063_v37 = vadd.f32 %v5062_v32, %v5061_v30 }
 0xaa6   :  { %v5064_v39 = vpop.f32.mrf.mxu1  ;;  %v4251_v40 = vpop.f32.mrf.mxu0 }
 0xaa7   :  { %v4203_v63 = vadd.f32 %v5063_v37, %v4154_v33 }
 0xaa8   :  { %v5065_v46 = vpop.f32.mrf.mxu1  ;;  %v5322_v35 = vpop.f32.mrf.mxu0 }
 0xaa9   :  { %v4252_v52 = vadd.f32 %v4251_v40, %v4203_v63  ;;  %v5066_v53 = vadd.f32 %v5065_v46, %v5064_v39 }
 0xaaa   :  { %v5067_v59 = vpop.f32.mrf.mxu1  ;;  %v4254_v2 = vpop.f32.mrf.mxu0 }
 0xaab   :  { %5647 = vtanh.f32 %v4252_v52  ;;  %v4206_v61 = vadd.f32 %v5066_v53, %v4157_v49 }
 0xaac   :  { %v5068_v44 = vpop.f32.mrf.mxu1 }
 0xaad   :  { %v4255_v6 = vadd.f32 %v4254_v2, %v4206_v61  ;;  %v5069_v7 = vadd.f32 %v5068_v44, %v5067_v59 }
 0xaae   :  { %v5070_v8 = vpop.f32.mrf.mxu1 }
 0xaaf   :  { %5649 = vtanh.f32 %v4255_v6  ;;  %v4211_v48 = vadd.f32 %v5069_v7, %v4162_v62 }
 0xab0   :  { %v5071_v21 = vpop.f32.mrf.mxu1 }
 0xab1   :  { %v4260_v11 = vadd.f32 %v5321_v38, %v4211_v48  ;;  %v5072_v12 = vadd.f32 %v5071_v21, %v5070_v8 }
 0xab3   :  { %5651 = vtanh.f32 %v4260_v11  ;;  %v4214_v13 = vadd.f32 %v5072_v12, %v4165_v10 }
 0xab5   :  { %v4263_v0 = vadd.f32 %v5322_v35, %v4214_v13 }
 0xab7   :  { %5653 = vtanh.f32 %v4263_v0 }
 0xab8   :  { %v5648_v14 = vpop.eup %5647 }
 0xab9   :  { %4270 = vst [vmem:[%s6136_s5] sm:$0xff] %v5648_v14 }
 0xabc   :  { %v5650_v4 = vpop.eup %5649 }
 0xabd   :  { %4271 = vst [vmem:[%s6136_s5 + $0x8] sm:$0xff] %v5650_v4 }
 0xac0   :  { %v5652_v43 = vpop.eup %5651 }
 0xac1   :  { %4272 = vst [vmem:[%s6136_s5 + $0x10] sm:$0xff] %v5652_v43 }
 0xac4   :  { %v5654_v51 = vpop.eup %5653 }
 0xac5   :  { %4273 = vst [vmem:[%s6136_s5 + $0x18] sm:$0xff] %v5654_v51 }
 0xac6   :  { %4278 = vsyncpa [#allocation4], 1 }

</bundles_post_ra>
